<compile_context>
chip_gen: v6e
topology: v6e:2x2x1
jax: 0.10.0
libtpu: 0.0.40
codegen_flags: <defaults>
</compile_context>

<pallas_src>
import functools

import jax
import jax.numpy as jnp
from jax.experimental import pallas as pl
from jax.experimental.pallas import tpu as pltpu

LANE = 128
EPS = 1e-5
SLOPE = 0.2


# ----------------------------- small helpers --------------------------------

def _pad128(n):
    return ((n + LANE - 1) // LANE) * LANE


def _pad_last(x, target):
    extra = target - x.shape[-1]
    if extra == 0:
        return x
    cfg = [(0, 0)] * (x.ndim - 1) + [(0, extra)]
    return jnp.pad(x, cfg)


def _pick_tn(c):
    for t in (512, 256, 128):
        if c % t == 0:
            return t
    return c


# ----------------------------- Pallas kernels -------------------------------

def _conv_row_kernel(*refs, kw, w_out, kh, has_residual):
    """One output row-block of a conv: accumulate KW taps (static unroll) for the
    current dy (grid axis 3), fuse bias/residual and emit partial BN stats on
    the last tap."""
    if has_residual:
        x_ref, w_ref, b_ref, r_ref, y_ref, s_ref, acc_ref = refs
    else:
        x_ref, w_ref, b_ref, y_ref, s_ref, acc_ref = refs
        r_ref = None
    dy = pl.program_id(3)

    @pl.when(dy == 0)
    def _init():
        acc_ref[...] = jnp.zeros_like(acc_ref)

    acc = acc_ref[...]
    for dx in range(kw):                              # static unroll over width taps
        xs = x_ref[dx:dx + w_out, :]                  # (W, Cin_pad) bf16, static slice
        acc = acc + jnp.dot(xs, w_ref[dx], preferred_element_type=jnp.float32)
    acc_ref[...] = acc

    @pl.when(dy == kh - 1)
    def _finalize():
        y = acc_ref[...] + b_ref[...]
        if has_residual:
            y = y + r_ref[...].astype(jnp.float32)
        y_ref[...] = y.astype(y_ref.dtype)
        # partial BatchNorm statistics (sum, sum of squares) over this row block
        s_ref[...] = jnp.concatenate(
            [jnp.sum(y, axis=0, keepdims=True),
             jnp.sum(y * y, axis=0, keepdims=True)], axis=0)


def _bn_lrelu_kernel(x_ref, sc_ref, sh_ref, o_ref):
    y = x_ref[...].astype(jnp.float32) * sc_ref[...] + sh_ref[...]
    o_ref[...] = jnp.where(y >= 0.0, y, SLOPE * y).astype(o_ref.dtype)


def _fc_relu_kernel(x_ref, w_ref, b_ref, o_ref):
    y = jnp.dot(x_ref[...], w_ref[...], preferred_element_type=jnp.float32) + b_ref[...]
    o_ref[...] = jnp.maximum(y, 0.0).astype(o_ref.dtype)


# ----------------------------- kernel wrappers -------------------------------

def conv2d(x, w_taps, bias=None, residual=None, *, pad, out_dtype=jnp.bfloat16):
    """Tap-streamed conv.  x: (B,H,W,Cin_p) bf16 NHWC; w_taps: (KH,KW,Cin_p,Cout_p)
    bf16; bias: (Cout_p,) f32 or None; residual: (B,H,W,Cout_p) bf16 or None.
    Returns (y, stats): y (B,H,W,Cout_p), stats (B,H,2,Cout_p) partial BN sums."""
    b, h, w, cin = x.shape
    kh, kw, cin_w, cout = w_taps.shape
    assert cin_w == cin
    xp = jnp.pad(x, ((0, 0), (pad, pad), (pad, pad), (0, 0)))
    wp = w + 2 * pad
    if bias is None:
        bias = jnp.zeros((cout,), jnp.float32)
    bias2 = bias.reshape(1, cout).astype(jnp.float32)

    tn = _pick_tn(cout)
    nt = cout // tn
    grid = (b, h, nt, kh)

    in_specs = [
        pl.BlockSpec((None, None, wp, cin), lambda bi, hi, ni, ki: (bi, hi + ki, 0, 0)),
        pl.BlockSpec((None, kw, cin, tn), lambda bi, hi, ni, ki: (ki, 0, 0, ni)),
        pl.BlockSpec((1, tn), lambda bi, hi, ni, ki: (0, ni)),
    ]
    args = [xp, w_taps, bias2]
    if residual is not None:
        in_specs.append(
            pl.BlockSpec((None, None, w, tn), lambda bi, hi, ni, ki: (bi, hi, 0, ni)))
        args.append(residual)

    out_shape = (jax.ShapeDtypeStruct((b, h, w, cout), out_dtype),
                 jax.ShapeDtypeStruct((b, h, 2, cout), jnp.float32))
    out_specs = (
        pl.BlockSpec((None, None, w, tn), lambda bi, hi, ni, ki: (bi, hi, 0, ni)),
        pl.BlockSpec((None, None, 2, tn), lambda bi, hi, ni, ki: (bi, hi, 0, ni)),
    )

    kern = functools.partial(_conv_row_kernel, kw=kw, w_out=w, kh=kh,
                             has_residual=residual is not None)
    flops = 2 * b * h * w * cin * cout * kh * kw
    bytes_accessed = int(xp.size * 2 * kh + w_taps.size * 2
                         + b * h * w * cout * jnp.dtype(out_dtype).itemsize)

    return pl.pallas_call(
        kern,
        grid=grid,
        in_specs=in_specs,
        out_specs=out_specs,
        out_shape=out_shape,
        scratch_shapes=[pltpu.VMEM((w, tn), jnp.float32)],
        compiler_params=pltpu.CompilerParams(
            dimension_semantics=("parallel", "parallel", "parallel", "arbitrary")),
        cost_estimate=pl.CostEstimate(flops=flops, transcendentals=0,
                                      bytes_accessed=bytes_accessed),
    )(*args)


def bn_lrelu(y, stats, gamma, beta):
    """Train-mode BatchNorm (batch statistics from the conv-epilogue partial sums)
    fused with LeakyReLU(0.2), applied by a tiled elementwise Pallas kernel."""
    b, h, w, c = y.shape
    count = b * h * w
    # Tiny per-channel finalization of the partial sums (scalar prep / glue).
    ssum = jnp.sum(stats[:, :, 0, :], axis=(0, 1))
    ssq = jnp.sum(stats[:, :, 1, :], axis=(0, 1))
    mean = ssum / count
    var = jnp.maximum(ssq / count - mean * mean, 0.0)      # biased var (train mode)
    inv = jax.lax.rsqrt(var + EPS)
    scale = (gamma * inv).reshape(1, c).astype(jnp.float32)
    shift = (beta - mean * gamma * inv).reshape(1, c).astype(jnp.float32)

    tn = _pick_tn(c)
    grid = (b, h, c // tn)
    blk = pl.BlockSpec((None, None, w, tn), lambda bi, hi, ni: (bi, hi, 0, ni))
    vec = pl.BlockSpec((1, tn), lambda bi, hi, ni: (0, ni))
    return pl.pallas_call(
        _bn_lrelu_kernel,
        grid=grid,
        in_specs=[blk, vec, vec],
        out_specs=blk,
        out_shape=jax.ShapeDtypeStruct((b, h, w, c), jnp.bfloat16),
        compiler_params=pltpu.CompilerParams(
            dimension_semantics=("parallel", "parallel", "parallel")),
    )(y, scale, shift)


def fc_relu(z, w, bias):
    """y = relu(z @ w + bias), tiled over the output (lane) dimension."""
    m, k = z.shape
    _, n = w.shape
    tn = _pick_tn(n)
    grid = (n // tn,)
    return pl.pallas_call(
        _fc_relu_kernel,
        grid=grid,
        in_specs=[pl.BlockSpec((m, k), lambda ni: (0, 0)),
                  pl.BlockSpec((k, tn), lambda ni: (0, ni)),
                  pl.BlockSpec((1, tn), lambda ni: (0, ni))],
        out_specs=pl.BlockSpec((m, tn), lambda ni: (0, ni)),
        out_shape=jax.ShapeDtypeStruct((m, n), jnp.bfloat16),
        compiler_params=pltpu.CompilerParams(dimension_semantics=("parallel",)),
    )(z, w, bias)


def upsample2x(x):
    # TODO(synk): fold the 2x nearest upsample into the next conv's BlockSpec
    # index_map instead of materializing the 4x larger activation in HBM.
    return jnp.repeat(jnp.repeat(x, 2, axis=1), 2, axis=2)


# ----------------------------- parameters -----------------------------------

def _conv_w(key, cout, cin, k, scale=0.05):
    return jax.random.normal(key, (cout, cin, k, k), jnp.float32) * scale


def _to_taps(w_oihw, cin_pad, cout_pad):
    """PyTorch conv weight (Cout,Cin,KH,KW) -> (KH,KW,Cin_pad,Cout_pad) bf16."""
    cout, cin, kh, kw = w_oihw.shape
    w = jnp.transpose(w_oihw, (2, 3, 1, 0))
    w = jnp.pad(w, ((0, 0), (0, 0), (0, cin_pad - cin), (0, cout_pad - cout)))
    return w.astype(jnp.bfloat16)


def init_resblock(key, inc, outc, scale=1.0):
    midc = int(outc * scale)
    inc_p, midc_p, outc_p = _pad128(inc), _pad128(midc), _pad128(outc)
    k1, k2, k3 = jax.random.split(key, 3)
    p = {"expand_w": None}
    if inc != outc:
        p["expand_w"] = _to_taps(_conv_w(k1, outc, inc, 1), inc_p, outc_p)
    p["w1"] = _to_taps(_conv_w(k2, midc, inc, 3), inc_p, midc_p)
    p["g1"] = _pad_last(jnp.ones((midc,), jnp.float32), midc_p)   # pad gamma with 0
    p["b1"] = jnp.zeros((midc_p,), jnp.float32)
    p["w2"] = _to_taps(_conv_w(k3, outc, midc, 3), midc_p, outc_p)
    p["g2"] = _pad_last(jnp.ones((outc,), jnp.float32), outc_p)
    p["b2"] = jnp.zeros((outc_p,), jnp.float32)
    return p


def init_generator(key, cdim, hdim, channels):
    cc = channels[-1]
    hdim_p = _pad128(hdim)
    keys = jax.random.split(key, len(channels) + 3)
    fc_w = jax.random.normal(keys[0], (hdim, cc * 4 * 4), jnp.float32) * 0.05
    fc_w = jnp.pad(fc_w, ((0, hdim_p - hdim), (0, 0))).astype(jnp.bfloat16)
    params = {"fc_w": fc_w,
              "fc_b": jnp.zeros((1, cc * 4 * 4), jnp.float32)}
    blocks = []
    c = cc
    for i, ch in enumerate(channels[::-1]):
        blocks.append(init_resblock(keys[1 + i], c, ch))
        c = ch
    blocks.append(init_resblock(keys[1 + len(channels)], c, c))
    params["blocks"] = blocks
    params["pred_w"] = _to_taps(_conv_w(keys[-1], cdim, c, 5), _pad128(c), _pad128(cdim))
    params["pred_b"] = jnp.zeros((_pad128(cdim),), jnp.float32)
    return params


# ----------------------------- forward pass ----------------------------------

def residual_block_forward(x, p):
    if p["expand_w"] is not None:
        identity, _ = conv2d(x, p["expand_w"], pad=0)             # 1x1 expand
    else:
        identity = x
    h1, s1 = conv2d(x, p["w1"], pad=1)                            # conv1
    h1 = bn_lrelu(h1, s1, p["g1"], p["b1"])                       # bn1 + lrelu
    out, s2 = conv2d(h1, p["w2"], pad=1, residual=identity)       # conv2 (+identity)
    return bn_lrelu(out, s2, p["g2"], p["b2"])                    # bn2 + lrelu


def introvae_generator_forward(params, z, channels, cdim):
    bsz = z.shape[0]
    z = z.reshape(bsz, -1)
    zp = _pad_last(z, params["fc_w"].shape[0]).astype(jnp.bfloat16)
    y = fc_relu(zp, params["fc_w"], params["fc_b"])               # Linear + ReLU
    cc = channels[-1]
    # PyTorch view -> (B, cc, 4, 4) NCHW; convert to NHWC + lane padding (glue).
    y = y.astype(jnp.float32).reshape(bsz, cc, 4, 4).transpose(0, 2, 3, 1)
    y = _pad_last(y, _pad128(cc)).astype(jnp.bfloat16)
    for i in range(len(channels)):
        y = residual_block_forward(y, params["blocks"][i])
        y = upsample2x(y)                                         # nearest, 2x
    y = residual_block_forward(y, params["blocks"][len(channels)])
    # predict: Conv2d(cc, cdim, 5, 1, 2) with bias
    out, _ = conv2d(y, params["pred_w"], params["pred_b"], pad=2,
                    out_dtype=jnp.float32)
    return out[..., :cdim].transpose(0, 3, 1, 2)                  # NCHW, drop pad


# ----------------------------- main ------------------------------------------

if __name__ == "__main__":
    # Small config consistent with the module's assert: 2**len(channels) * 4 == image_size
    cdim, hdim = 3, 32
    channels = [8, 16]
    image_size = 16
    assert 2 ** len(channels) * 4 == image_size

    key = jax.random.PRNGKey(0)
    pkey, zkey = jax.random.split(key)
    params = init_generator(pkey, cdim, hdim, channels)

    batch = 2
    z = jax.random.normal(zkey, (batch, hdim), jnp.float32)

    fwd = jax.jit(functools.partial(introvae_generator_forward,
                                    channels=tuple(channels), cdim=cdim))
    out = jax.block_until_ready(fwd(params, z))
    assert out.shape == (batch, cdim, image_size, image_size), out.shape
    assert bool(jnp.all(jnp.isfinite(out)))
    print("KERNEL_OK")
</pallas_src>

<mosaic_0001>
module attributes {stable_mosaic.version = 11 : i64} {
  func.func @_fc_relu_kernel(%arg0: i32, %arg1: memref<2x128xbf16, #tpu.memory_space<vmem>>, %arg2: memref<128x256xbf16, #tpu.memory_space<vmem>>, %arg3: memref<1x256xf32, #tpu.memory_space<vmem>>, %arg4: memref<2x256xbf16, #tpu.memory_space<vmem>>) attributes {dimension_semantics = [#tpu.dimension_semantics<parallel>], iteration_bounds = array<i64: 1>, scalar_prefetch = 0 : i64, scratch_operands = 0 : i64, tpu.core_type = #tpu.core_type<tc>, window_params = [{pipeline_mode = #tpu.pipeline_mode<synchronous>, transform_indices = @transform_0, window_bounds = array<i64: 2, 128>}, {transform_indices = @transform_1, window_bounds = array<i64: 128, 256>}, {transform_indices = @transform_2, window_bounds = array<i64: 1, 256>}, {transform_indices = @transform_3, window_bounds = array<i64: 2, 256>}]} {
    %c0 = arith.constant 0 : index
    %c0_0 = arith.constant 0 : index
    %0 = vector.load %arg1[%c0, %c0_0] : memref<2x128xbf16, #tpu.memory_space<vmem>>, vector<2x128xbf16>
    %c0_1 = arith.constant 0 : index
    %c0_2 = arith.constant 0 : index
    %1 = vector.load %arg2[%c0_1, %c0_2] : memref<128x256xbf16, #tpu.memory_space<vmem>>, vector<128x256xbf16>
    %cst = arith.constant dense<0.000000e+00> : vector<2x256xf32>
    %2 = tpu.matmul %0, %1, %cst {dimension_numbers = #tpu.dot_dimension_numbers<[1], [0], [0], [1], [0, 0, 1, 1], [], []>} : vector<2x128xbf16>, vector<128x256xbf16>, vector<2x256xf32> -> vector<2x256xf32>
    %c0_3 = arith.constant 0 : index
    %c0_4 = arith.constant 0 : index
    %3 = vector.load %arg3[%c0_3, %c0_4] : memref<1x256xf32, #tpu.memory_space<vmem>>, vector<1x256xf32>
    %4 = vector.broadcast %3 : vector<1x256xf32> to vector<2x256xf32>
    %5 = arith.addf %2, %4 : vector<2x256xf32>
    %cst_5 = arith.constant 0.000000e+00 : f32
    %6 = vector.broadcast %cst_5 : f32 to vector<2x256xf32>
    %7 = arith.maximumf %5, %6 : vector<2x256xf32>
    %8 = arith.truncf %7 : vector<2x256xf32> to vector<2x256xbf16>
    %c0_6 = arith.constant 0 : index
    %c0_7 = arith.constant 0 : index
    %9 = vector.load %arg4[%c0_6, %c0_7] : memref<2x256xbf16, #tpu.memory_space<vmem>>, vector<2x256xbf16>
    tpu.vector_store %arg4[%c0_6, %c0_7], %8 {strides = array<i32>} : memref<2x256xbf16, #tpu.memory_space<vmem>>, vector<2x256xbf16>,
    return
  }
  func.func @transform_0(%arg0: i32) -> (i32, i32) {
    %c0_i32 = arith.constant 0 : i32
    %c0_i32_0 = arith.constant 0 : i32
    %c0_i32_1 = arith.constant 0 : i32
    return %c0_i32, %c0_i32_0 : i32, i32
  }
  func.func @transform_1(%arg0: i32) -> (i32, i32) {
    %c0_i32 = arith.constant 0 : i32
    %c0_i32_0 = arith.constant 0 : i32
    return %c0_i32, %arg0 : i32, i32
  }
  func.func @transform_2(%arg0: i32) -> (i32, i32) {
    %c0_i32 = arith.constant 0 : i32
    %c0_i32_0 = arith.constant 0 : i32
    return %c0_i32, %arg0 : i32, i32
  }
  func.func @transform_3(%arg0: i32) -> (i32, i32) {
    %c0_i32 = arith.constant 0 : i32
    %c0_i32_0 = arith.constant 0 : i32
    return %c0_i32, %arg0 : i32, i32
  }
}

module attributes {stable_mosaic.version = 11 : i64} {
  func.func @_conv_row_kernel(%arg0: i32, %arg1: i32, %arg2: i32, %arg3: i32, %arg4: memref<1x1x6x128xbf16, #tpu.memory_space<vmem>>, %arg5: memref<1x3x128x128xbf16, #tpu.memory_space<vmem>>, %arg6: memref<1x128xf32, #tpu.memory_space<vmem>>, %arg7: memref<1x1x4x128xbf16, #tpu.memory_space<vmem>>, %arg8: memref<1x1x2x128xf32, #tpu.memory_space<vmem>>, %arg9: memref<4x128xf32, #tpu.memory_space<vmem>>) attributes {dimension_semantics = [#tpu.dimension_semantics<parallel>, #tpu.dimension_semantics<parallel>, #tpu.dimension_semantics<parallel>, #tpu.dimension_semantics<arbitrary>], iteration_bounds = array<i64: 2, 4, 1, 3>, scalar_prefetch = 0 : i64, scratch_operands = 1 : i64, tpu.core_type = #tpu.core_type<tc>, window_params = [{transform_indices = @transform_0, window_bounds = array<i64: 1, 1, 6, 128>}, {transform_indices = @transform_1, window_bounds = array<i64: 1, 3, 128, 128>}, {transform_indices = @transform_2, window_bounds = array<i64: 1, 128>}, {transform_indices = @transform_3, window_bounds = array<i64: 1, 1, 4, 128>}, {transform_indices = @transform_4, window_bounds = array<i64: 1, 1, 2, 128>}]} {
    %c0_i32 = arith.constant 0 : i32
    %0 = arith.cmpi eq, %arg3, %c0_i32 : i32
    %1 = arith.extui %0 : i1 to i32
    %c0_i32_0 = arith.constant 0 : i32
    %2 = arith.cmpi ne, %1, %c0_i32_0 : i32
    scf.if %2 {
      %cst_29 = arith.constant 0.000000e+00 : f32
      %26 = vector.broadcast %cst_29 : f32 to vector<4x128xf32>
      %c0_30 = arith.constant 0 : index
      %c0_31 = arith.constant 0 : index
      %27 = vector.load %arg9[%c0_30, %c0_31] : memref<4x128xf32, #tpu.memory_space<vmem>>, vector<4x128xf32>
      tpu.vector_store %arg9[%c0_30, %c0_31], %26 {strides = array<i32>} : memref<4x128xf32, #tpu.memory_space<vmem>>, vector<4x128xf32>,
    } else {
    }
    %c0 = arith.constant 0 : index
    %c0_1 = arith.constant 0 : index
    %3 = vector.load %arg9[%c0, %c0_1] : memref<4x128xf32, #tpu.memory_space<vmem>>, vector<4x128xf32>
    %c0_2 = arith.constant 0 : index
    %c0_3 = arith.constant 0 : index
    %c0_4 = arith.constant 0 : index
    %c0_5 = arith.constant 0 : index
    %4 = vector.load %arg4[%c0_2, %c0_3, %c0_4, %c0_5] : memref<1x1x6x128xbf16, #tpu.memory_space<vmem>>, vector<1x1x4x128xbf16>
    %5 = vector.shape_cast %4 : vector<1x1x4x128xbf16> to vector<4x128xbf16>
    %c0_6 = arith.constant 0 : index
    %c0_7 = arith.constant 0 : index
    %c0_8 = arith.constant 0 : index
    %c0_9 = arith.constant 0 : index
    %6 = vector.load %arg5[%c0_6, %c0_7, %c0_8, %c0_9] : memref<1x3x128x128xbf16, #tpu.memory_space<vmem>>, vector<1x1x128x128xbf16>
    %7 = vector.shape_cast %6 : vector<1x1x128x128xbf16> to vector<128x128xbf16>
    %cst = arith.constant dense<0.000000e+00> : vector<4x128xf32>
    %8 = tpu.matmul %5, %7, %cst {dimension_numbers = #tpu.dot_dimension_numbers<[1], [0], [0], [1], [0, 0, 1, 1], [], []>} : vector<4x128xbf16>, vector<128x128xbf16>, vector<4x128xf32> -> vector<4x128xf32>
    %9 = arith.addf %3, %8 : vector<4x128xf32>
    %c0_10 = arith.constant 0 : index
    %c0_11 = arith.constant 0 : index
    %c1 = arith.constant 1 : index
    %c0_12 = arith.constant 0 : index
    %10 = vector.load %arg4[%c0_10, %c0_11, %c1, %c0_12] : memref<1x1x6x128xbf16, #tpu.memory_space<vmem>>, vector<1x1x4x128xbf16>
    %11 = vector.shape_cast %10 : vector<1x1x4x128xbf16> to vector<4x128xbf16>
    %c0_13 = arith.constant 0 : index
    %c1_14 = arith.constant 1 : index
    %c0_15 = arith.constant 0 : index
    %c0_16 = arith.constant 0 : index
    %12 = vector.load %arg5[%c0_13, %c1_14, %c0_15, %c0_16] : memref<1x3x128x128xbf16, #tpu.memory_space<vmem>>, vector<1x1x128x128xbf16>
    %13 = vector.shape_cast %12 : vector<1x1x128x128xbf16> to vector<128x128xbf16>
    %cst_17 = arith.constant dense<0.000000e+00> : vector<4x128xf32>
    %14 = tpu.matmul %11, %13, %cst_17 {dimension_numbers = #tpu.dot_dimension_numbers<[1], [0], [0], [1], [0, 0, 1, 1], [], []>} : vector<4x128xbf16>, vector<128x128xbf16>, vector<4x128xf32> -> vector<4x128xf32>
    %15 = arith.addf %9, %14 : vector<4x128xf32>
    %c0_18 = arith.constant 0 : index
    %c0_19 = arith.constant 0 : index
    %c2 = arith.constant 2 : index
    %c0_20 = arith.constant 0 : index
    %16 = vector.load %arg4[%c0_18, %c0_19, %c2, %c0_20] : memref<1x1x6x128xbf16, #tpu.memory_space<vmem>>, vector<1x1x4x128xbf16>
    %17 = vector.shape_cast %16 : vector<1x1x4x128xbf16> to vector<4x128xbf16>
    %c0_21 = arith.constant 0 : index
    %c2_22 = arith.constant 2 : index
    %c0_23 = arith.constant 0 : index
    %c0_24 = arith.constant 0 : index
    %18 = vector.load %arg5[%c0_21, %c2_22, %c0_23, %c0_24] : memref<1x3x128x128xbf16, #tpu.memory_space<vmem>>, vector<1x1x128x128xbf16>
    %19 = vector.shape_cast %18 : vector<1x1x128x128xbf16> to vector<128x128xbf16>
    %cst_25 = arith.constant dense<0.000000e+00> : vector<4x128xf32>
    %20 = tpu.matmul %17, %19, %cst_25 {dimension_numbers = #tpu.dot_dimension_numbers<[1], [0], [0], [1], [0, 0, 1, 1], [], []>} : vector<4x128xbf16>, vector<128x128xbf16>, vector<4x128xf32> -> vector<4x128xf32>
    %21 = arith.addf %15, %20 : vector<4x128xf32>
    %c0_26 = arith.constant 0 : index
    %c0_27 = arith.constant 0 : index
    %22 = vector.load %arg9[%c0_26, %c0_27] : memref<4x128xf32, #tpu.memory_space<vmem>>, vector<4x128xf32>
    tpu.vector_store %arg9[%c0_26, %c0_27], %21 {strides = array<i32>} : memref<4x128xf32, #tpu.memory_space<vmem>>, vector<4x128xf32>,
    %c2_i32 = arith.constant 2 : i32
    %23 = arith.cmpi eq, %arg3, %c2_i32 : i32
    %24 = arith.extui %23 : i1 to i32
    %c0_i32_28 = arith.constant 0 : i32
    %25 = arith.cmpi ne, %24, %c0_i32_28 : i32
    scf.if %25 {
      %c0_29 = arith.constant 0 : index
      %c0_30 = arith.constant 0 : index
      %26 = vector.load %arg9[%c0_29, %c0_30] : memref<4x128xf32, #tpu.memory_space<vmem>>, vector<4x128xf32>
      %c0_31 = arith.constant 0 : index
      %c0_32 = arith.constant 0 : index
      %27 = vector.load %arg6[%c0_31, %c0_32] : memref<1x128xf32, #tpu.memory_space<vmem>>, vector<1x128xf32>
      %28 = vector.broadcast %27 : vector<1x128xf32> to vector<4x128xf32>
      %29 = arith.addf %26, %28 : vector<4x128xf32>
      %30 = arith.truncf %29 : vector<4x128xf32> to vector<4x128xbf16>
      %c0_33 = arith.constant 0 : index
      %c0_34 = arith.constant 0 : index
      %c0_35 = arith.constant 0 : index
      %c0_36 = arith.constant 0 : index
      %31 = vector.load %arg7[%c0_33, %c0_34, %c0_35, %c0_36] : memref<1x1x4x128xbf16, #tpu.memory_space<vmem>>, vector<1x1x4x128xbf16>
      %32 = vector.shape_cast %31 : vector<1x1x4x128xbf16> to vector<4x128xbf16>
      %33 = vector.shape_cast %30 : vector<4x128xbf16> to vector<1x1x4x128xbf16>
      tpu.vector_store %arg7[%c0_33, %c0_34, %c0_35, %c0_36], %33 {strides = array<i32>} : memref<1x1x4x128xbf16, #tpu.memory_space<vmem>>, vector<1x1x4x128xbf16>,
      %cst_37 = arith.constant dense<0.000000e+00> : vector<128xf32>
      %34 = vector.multi_reduction <add>, %29, %cst_37 [0] : vector<4x128xf32> to vector<128xf32>
      %35 = vector.shape_cast %34 : vector<128xf32> to vector<1x128xf32>
      %36 = arith.mulf %29, %29 : vector<4x128xf32>
      %cst_38 = arith.constant dense<0.000000e+00> : vector<128xf32>
      %37 = vector.multi_reduction <add>, %36, %cst_38 [0] : vector<4x128xf32> to vector<128xf32>
      %38 = vector.shape_cast %37 : vector<128xf32> to vector<1x128xf32>
      %39 = tpu.concatenate %35, %38 in 0 : vector<1x128xf32>, vector<1x128xf32> -> vector<2x128xf32>
      %c0_39 = arith.constant 0 : index
      %c0_40 = arith.constant 0 : index
      %c0_41 = arith.constant 0 : index
      %c0_42 = arith.constant 0 : index
      %40 = vector.load %arg8[%c0_39, %c0_40, %c0_41, %c0_42] : memref<1x1x2x128xf32, #tpu.memory_space<vmem>>, vector<1x1x2x128xf32>
      %41 = vector.shape_cast %40 : vector<1x1x2x128xf32> to vector<2x128xf32>
      %42 = vector.shape_cast %39 : vector<2x128xf32> to vector<1x1x2x128xf32>
      tpu.vector_store %arg8[%c0_39, %c0_40, %c0_41, %c0_42], %42 {strides = array<i32>} : memref<1x1x2x128xf32, #tpu.memory_space<vmem>>, vector<1x1x2x128xf32>,
    } else {
    }
    return
  }
  func.func @transform_0(%arg0: i32, %arg1: i32, %arg2: i32, %arg3: i32) -> (i32, i32, i32, i32) {
    %0 = arith.addi %arg1, %arg3 : i32
    %c0_i32 = arith.constant 0 : i32
    %c0_i32_0 = arith.constant 0 : i32
    %c0_i32_1 = arith.constant 0 : i32
    return %arg0, %0, %c0_i32, %c0_i32_0 : i32, i32, i32, i32
  }
  func.func @transform_1(%arg0: i32, %arg1: i32, %arg2: i32, %arg3: i32) -> (i32, i32, i32, i32) {
    %c0_i32 = arith.constant 0 : i32
    %c0_i32_0 = arith.constant 0 : i32
    %c0_i32_1 = arith.constant 0 : i32
    return %arg3, %c0_i32, %c0_i32_0, %arg2 : i32, i32, i32, i32
  }
  func.func @transform_2(%arg0: i32, %arg1: i32, %arg2: i32, %arg3: i32) -> (i32, i32) {
    %c0_i32 = arith.constant 0 : i32
    %c0_i32_0 = arith.constant 0 : i32
    return %c0_i32, %arg2 : i32, i32
  }
  func.func @transform_3(%arg0: i32, %arg1: i32, %arg2: i32, %arg3: i32) -> (i32, i32, i32, i32) {
    %c0_i32 = arith.constant 0 : i32
    %c0_i32_0 = arith.constant 0 : i32
    return %arg0, %arg1, %c0_i32, %arg2 : i32, i32, i32, i32
  }
  func.func @transform_4(%arg0: i32, %arg1: i32, %arg2: i32, %arg3: i32) -> (i32, i32, i32, i32) {
    %c0_i32 = arith.constant 0 : i32
    %c0_i32_0 = arith.constant 0 : i32
    return %arg0, %arg1, %c0_i32, %arg2 : i32, i32, i32, i32
  }
}

module attributes {stable_mosaic.version = 11 : i64} {
  func.func @_bn_lrelu_kernel(%arg0: i32, %arg1: i32, %arg2: i32, %arg3: memref<1x1x4x128xbf16, #tpu.memory_space<vmem>>, %arg4: memref<1x128xf32, #tpu.memory_space<vmem>>, %arg5: memref<1x128xf32, #tpu.memory_space<vmem>>, %arg6: memref<1x1x4x128xbf16, #tpu.memory_space<vmem>>) attributes {dimension_semantics = [#tpu.dimension_semantics<parallel>, #tpu.dimension_semantics<parallel>, #tpu.dimension_semantics<parallel>], iteration_bounds = array<i64: 2, 4, 1>, scalar_prefetch = 0 : i64, scratch_operands = 0 : i64, tpu.core_type = #tpu.core_type<tc>, window_params = [{transform_indices = @transform_0, window_bounds = array<i64: 1, 1, 4, 128>}, {transform_indices = @transform_1, window_bounds = array<i64: 1, 128>}, {transform_indices = @transform_2, window_bounds = array<i64: 1, 128>}, {transform_indices = @transform_3, window_bounds = array<i64: 1, 1, 4, 128>}]} {
    %c0 = arith.constant 0 : index
    %c0_0 = arith.constant 0 : index
    %c0_1 = arith.constant 0 : index
    %c0_2 = arith.constant 0 : index
    %0 = vector.load %arg3[%c0, %c0_0, %c0_1, %c0_2] : memref<1x1x4x128xbf16, #tpu.memory_space<vmem>>, vector<1x1x4x128xbf16>
    %1 = vector.shape_cast %0 : vector<1x1x4x128xbf16> to vector<4x128xbf16>
    %2 = arith.extf %1 : vector<4x128xbf16> to vector<4x128xf32>
    %c0_3 = arith.constant 0 : index
    %c0_4 = arith.constant 0 : index
    %3 = vector.load %arg4[%c0_3, %c0_4] : memref<1x128xf32, #tpu.memory_space<vmem>>, vector<1x128xf32>
    %4 = vector.broadcast %3 : vector<1x128xf32> to vector<4x128xf32>
    %5 = arith.mulf %2, %4 : vector<4x128xf32>
    %c0_5 = arith.constant 0 : index
    %c0_6 = arith.constant 0 : index
    %6 = vector.load %arg5[%c0_5, %c0_6] : memref<1x128xf32, #tpu.memory_space<vmem>>, vector<1x128xf32>
    %7 = vector.broadcast %6 : vector<1x128xf32> to vector<4x128xf32>
    %8 = arith.addf %5, %7 : vector<4x128xf32>
    %cst = arith.constant 0.000000e+00 : f32
    %9 = vector.broadcast %cst : f32 to vector<4x128xf32>
    %10 = arith.cmpf oge, %8, %9 : vector<4x128xf32>
    %cst_7 = arith.constant 2.000000e-01 : f32
    %11 = vector.broadcast %cst_7 : f32 to vector<4x128xf32>
    %12 = arith.mulf %11, %8 : vector<4x128xf32>
    %13 = arith.select %10, %8, %12 : vector<4x128xi1>, vector<4x128xf32>
    %14 = arith.truncf %13 : vector<4x128xf32> to vector<4x128xbf16>
    %c0_8 = arith.constant 0 : index
    %c0_9 = arith.constant 0 : index
    %c0_10 = arith.constant 0 : index
    %c0_11 = arith.constant 0 : index
    %15 = vector.load %arg6[%c0_8, %c0_9, %c0_10, %c0_11] : memref<1x1x4x128xbf16, #tpu.memory_space<vmem>>, vector<1x1x4x128xbf16>
    %16 = vector.shape_cast %15 : vector<1x1x4x128xbf16> to vector<4x128xbf16>
    %17 = vector.shape_cast %14 : vector<4x128xbf16> to vector<1x1x4x128xbf16>
    tpu.vector_store %arg6[%c0_8, %c0_9, %c0_10, %c0_11], %17 {strides = array<i32>} : memref<1x1x4x128xbf16, #tpu.memory_space<vmem>>, vector<1x1x4x128xbf16>,
    return
  }
  func.func @transform_0(%arg0: i32, %arg1: i32, %arg2: i32) -> (i32, i32, i32, i32) {
    %c0_i32 = arith.constant 0 : i32
    %c0_i32_0 = arith.constant 0 : i32
    return %arg0, %arg1, %c0_i32, %arg2 : i32, i32, i32, i32
  }
  func.func @transform_1(%arg0: i32, %arg1: i32, %arg2: i32) -> (i32, i32) {
    %c0_i32 = arith.constant 0 : i32
    %c0_i32_0 = arith.constant 0 : i32
    return %c0_i32, %arg2 : i32, i32
  }
  func.func @transform_2(%arg0: i32, %arg1: i32, %arg2: i32) -> (i32, i32) {
    %c0_i32 = arith.constant 0 : i32
    %c0_i32_0 = arith.constant 0 : i32
    return %c0_i32, %arg2 : i32, i32
  }
  func.func @transform_3(%arg0: i32, %arg1: i32, %arg2: i32) -> (i32, i32, i32, i32) {
    %c0_i32 = arith.constant 0 : i32
    %c0_i32_0 = arith.constant 0 : i32
    return %arg0, %arg1, %c0_i32, %arg2 : i32, i32, i32, i32
  }
}

module attributes {stable_mosaic.version = 11 : i64} {
  func.func @_conv_row_kernel(%arg0: i32, %arg1: i32, %arg2: i32, %arg3: i32, %arg4: memref<1x1x6x128xbf16, #tpu.memory_space<vmem>>, %arg5: memref<1x3x128x128xbf16, #tpu.memory_space<vmem>>, %arg6: memref<1x128xf32, #tpu.memory_space<vmem>>, %arg7: memref<1x1x4x128xbf16, #tpu.memory_space<vmem>>, %arg8: memref<1x1x4x128xbf16, #tpu.memory_space<vmem>>, %arg9: memref<1x1x2x128xf32, #tpu.memory_space<vmem>>, %arg10: memref<4x128xf32, #tpu.memory_space<vmem>>) attributes {dimension_semantics = [#tpu.dimension_semantics<parallel>, #tpu.dimension_semantics<parallel>, #tpu.dimension_semantics<parallel>, #tpu.dimension_semantics<arbitrary>], iteration_bounds = array<i64: 2, 4, 1, 3>, scalar_prefetch = 0 : i64, scratch_operands = 1 : i64, tpu.core_type = #tpu.core_type<tc>, window_params = [{transform_indices = @transform_0, window_bounds = array<i64: 1, 1, 6, 128>}, {transform_indices = @transform_1, window_bounds = array<i64: 1, 3, 128, 128>}, {transform_indices = @transform_2, window_bounds = array<i64: 1, 128>}, {transform_indices = @transform_3, window_bounds = array<i64: 1, 1, 4, 128>}, {transform_indices = @transform_4, window_bounds = array<i64: 1, 1, 4, 128>}, {transform_indices = @transform_5, window_bounds = array<i64: 1, 1, 2, 128>}]} {
    %c0_i32 = arith.constant 0 : i32
    %0 = arith.cmpi eq, %arg3, %c0_i32 : i32
    %1 = arith.extui %0 : i1 to i32
    %c0_i32_0 = arith.constant 0 : i32
    %2 = arith.cmpi ne, %1, %c0_i32_0 : i32
    scf.if %2 {
      %cst_29 = arith.constant 0.000000e+00 : f32
      %26 = vector.broadcast %cst_29 : f32 to vector<4x128xf32>
      %c0_30 = arith.constant 0 : index
      %c0_31 = arith.constant 0 : index
      %27 = vector.load %arg10[%c0_30, %c0_31] : memref<4x128xf32, #tpu.memory_space<vmem>>, vector<4x128xf32>
      tpu.vector_store %arg10[%c0_30, %c0_31], %26 {strides = array<i32>} : memref<4x128xf32, #tpu.memory_space<vmem>>, vector<4x128xf32>,
    } else {
    }
    %c0 = arith.constant 0 : index
    %c0_1 = arith.constant 0 : index
    %3 = vector.load %arg10[%c0, %c0_1] : memref<4x128xf32, #tpu.memory_space<vmem>>, vector<4x128xf32>
    %c0_2 = arith.constant 0 : index
    %c0_3 = arith.constant 0 : index
    %c0_4 = arith.constant 0 : index
    %c0_5 = arith.constant 0 : index
    %4 = vector.load %arg4[%c0_2, %c0_3, %c0_4, %c0_5] : memref<1x1x6x128xbf16, #tpu.memory_space<vmem>>, vector<1x1x4x128xbf16>
    %5 = vector.shape_cast %4 : vector<1x1x4x128xbf16> to vector<4x128xbf16>
    %c0_6 = arith.constant 0 : index
    %c0_7 = arith.constant 0 : index
    %c0_8 = arith.constant 0 : index
    %c0_9 = arith.constant 0 : index
    %6 = vector.load %arg5[%c0_6, %c0_7, %c0_8, %c0_9] : memref<1x3x128x128xbf16, #tpu.memory_space<vmem>>, vector<1x1x128x128xbf16>
    %7 = vector.shape_cast %6 : vector<1x1x128x128xbf16> to vector<128x128xbf16>
    %cst = arith.constant dense<0.000000e+00> : vector<4x128xf32>
    %8 = tpu.matmul %5, %7, %cst {dimension_numbers = #tpu.dot_dimension_numbers<[1], [0], [0], [1], [0, 0, 1, 1], [], []>} : vector<4x128xbf16>, vector<128x128xbf16>, vector<4x128xf32> -> vector<4x128xf32>
    %9 = arith.addf %3, %8 : vector<4x128xf32>
    %c0_10 = arith.constant 0 : index
    %c0_11 = arith.constant 0 : index
    %c1 = arith.constant 1 : index
    %c0_12 = arith.constant 0 : index
    %10 = vector.load %arg4[%c0_10, %c0_11, %c1, %c0_12] : memref<1x1x6x128xbf16, #tpu.memory_space<vmem>>, vector<1x1x4x128xbf16>
    %11 = vector.shape_cast %10 : vector<1x1x4x128xbf16> to vector<4x128xbf16>
    %c0_13 = arith.constant 0 : index
    %c1_14 = arith.constant 1 : index
    %c0_15 = arith.constant 0 : index
    %c0_16 = arith.constant 0 : index
    %12 = vector.load %arg5[%c0_13, %c1_14, %c0_15, %c0_16] : memref<1x3x128x128xbf16, #tpu.memory_space<vmem>>, vector<1x1x128x128xbf16>
    %13 = vector.shape_cast %12 : vector<1x1x128x128xbf16> to vector<128x128xbf16>
    %cst_17 = arith.constant dense<0.000000e+00> : vector<4x128xf32>
    %14 = tpu.matmul %11, %13, %cst_17 {dimension_numbers = #tpu.dot_dimension_numbers<[1], [0], [0], [1], [0, 0, 1, 1], [], []>} : vector<4x128xbf16>, vector<128x128xbf16>, vector<4x128xf32> -> vector<4x128xf32>
    %15 = arith.addf %9, %14 : vector<4x128xf32>
    %c0_18 = arith.constant 0 : index
    %c0_19 = arith.constant 0 : index
    %c2 = arith.constant 2 : index
    %c0_20 = arith.constant 0 : index
    %16 = vector.load %arg4[%c0_18, %c0_19, %c2, %c0_20] : memref<1x1x6x128xbf16, #tpu.memory_space<vmem>>, vector<1x1x4x128xbf16>
    %17 = vector.shape_cast %16 : vector<1x1x4x128xbf16> to vector<4x128xbf16>
    %c0_21 = arith.constant 0 : index
    %c2_22 = arith.constant 2 : index
    %c0_23 = arith.constant 0 : index
    %c0_24 = arith.constant 0 : index
    %18 = vector.load %arg5[%c0_21, %c2_22, %c0_23, %c0_24] : memref<1x3x128x128xbf16, #tpu.memory_space<vmem>>, vector<1x1x128x128xbf16>
    %19 = vector.shape_cast %18 : vector<1x1x128x128xbf16> to vector<128x128xbf16>
    %cst_25 = arith.constant dense<0.000000e+00> : vector<4x128xf32>
    %20 = tpu.matmul %17, %19, %cst_25 {dimension_numbers = #tpu.dot_dimension_numbers<[1], [0], [0], [1], [0, 0, 1, 1], [], []>} : vector<4x128xbf16>, vector<128x128xbf16>, vector<4x128xf32> -> vector<4x128xf32>
    %21 = arith.addf %15, %20 : vector<4x128xf32>
    %c0_26 = arith.constant 0 : index
    %c0_27 = arith.constant 0 : index
    %22 = vector.load %arg10[%c0_26, %c0_27] : memref<4x128xf32, #tpu.memory_space<vmem>>, vector<4x128xf32>
    tpu.vector_store %arg10[%c0_26, %c0_27], %21 {strides = array<i32>} : memref<4x128xf32, #tpu.memory_space<vmem>>, vector<4x128xf32>,
    %c2_i32 = arith.constant 2 : i32
    %23 = arith.cmpi eq, %arg3, %c2_i32 : i32
    %24 = arith.extui %23 : i1 to i32
    %c0_i32_28 = arith.constant 0 : i32
    %25 = arith.cmpi ne, %24, %c0_i32_28 : i32
    scf.if %25 {
      %c0_29 = arith.constant 0 : index
      %c0_30 = arith.constant 0 : index
      %26 = vector.load %arg10[%c0_29, %c0_30] : memref<4x128xf32, #tpu.memory_space<vmem>>, vector<4x128xf32>
      %c0_31 = arith.constant 0 : index
      %c0_32 = arith.constant 0 : index
      %27 = vector.load %arg6[%c0_31, %c0_32] : memref<1x128xf32, #tpu.memory_space<vmem>>, vector<1x128xf32>
      %28 = vector.broadcast %27 : vector<1x128xf32> to vector<4x128xf32>
      %29 = arith.addf %26, %28 : vector<4x128xf32>
      %c0_33 = arith.constant 0 : index
      %c0_34 = arith.constant 0 : index
      %c0_35 = arith.constant 0 : index
      %c0_36 = arith.constant 0 : index
      %30 = vector.load %arg7[%c0_33, %c0_34, %c0_35, %c0_36] : memref<1x1x4x128xbf16, #tpu.memory_space<vmem>>, vector<1x1x4x128xbf16>
      %31 = vector.shape_cast %30 : vector<1x1x4x128xbf16> to vector<4x128xbf16>
      %32 = arith.extf %31 : vector<4x128xbf16> to vector<4x128xf32>
      %33 = arith.addf %29, %32 : vector<4x128xf32>
      %34 = arith.truncf %33 : vector<4x128xf32> to vector<4x128xbf16>
      %c0_37 = arith.constant 0 : index
      %c0_38 = arith.constant 0 : index
      %c0_39 = arith.constant 0 : index
      %c0_40 = arith.constant 0 : index
      %35 = vector.load %arg8[%c0_37, %c0_38, %c0_39, %c0_40] : memref<1x1x4x128xbf16, #tpu.memory_space<vmem>>, vector<1x1x4x128xbf16>
      %36 = vector.shape_cast %35 : vector<1x1x4x128xbf16> to vector<4x128xbf16>
      %37 = vector.shape_cast %34 : vector<4x128xbf16> to vector<1x1x4x128xbf16>
      tpu.vector_store %arg8[%c0_37, %c0_38, %c0_39, %c0_40], %37 {strides = array<i32>} : memref<1x1x4x128xbf16, #tpu.memory_space<vmem>>, vector<1x1x4x128xbf16>,
      %cst_41 = arith.constant dense<0.000000e+00> : vector<128xf32>
      %38 = vector.multi_reduction <add>, %33, %cst_41 [0] : vector<4x128xf32> to vector<128xf32>
      %39 = vector.shape_cast %38 : vector<128xf32> to vector<1x128xf32>
      %40 = arith.mulf %33, %33 : vector<4x128xf32>
      %cst_42 = arith.constant dense<0.000000e+00> : vector<128xf32>
      %41 = vector.multi_reduction <add>, %40, %cst_42 [0] : vector<4x128xf32> to vector<128xf32>
      %42 = vector.shape_cast %41 : vector<128xf32> to vector<1x128xf32>
      %43 = tpu.concatenate %39, %42 in 0 : vector<1x128xf32>, vector<1x128xf32> -> vector<2x128xf32>
      %c0_43 = arith.constant 0 : index
      %c0_44 = arith.constant 0 : index
      %c0_45 = arith.constant 0 : index
      %c0_46 = arith.constant 0 : index
      %44 = vector.load %arg9[%c0_43, %c0_44, %c0_45, %c0_46] : memref<1x1x2x128xf32, #tpu.memory_space<vmem>>, vector<1x1x2x128xf32>
      %45 = vector.shape_cast %44 : vector<1x1x2x128xf32> to vector<2x128xf32>
      %46 = vector.shape_cast %43 : vector<2x128xf32> to vector<1x1x2x128xf32>
      tpu.vector_store %arg9[%c0_43, %c0_44, %c0_45, %c0_46], %46 {strides = array<i32>} : memref<1x1x2x128xf32, #tpu.memory_space<vmem>>, vector<1x1x2x128xf32>,
    } else {
    }
    return
  }
  func.func @transform_0(%arg0: i32, %arg1: i32, %arg2: i32, %arg3: i32) -> (i32, i32, i32, i32) {
    %0 = arith.addi %arg1, %arg3 : i32
    %c0_i32 = arith.constant 0 : i32
    %c0_i32_0 = arith.constant 0 : i32
    %c0_i32_1 = arith.constant 0 : i32
    return %arg0, %0, %c0_i32, %c0_i32_0 : i32, i32, i32, i32
  }
  func.func @transform_1(%arg0: i32, %arg1: i32, %arg2: i32, %arg3: i32) -> (i32, i32, i32, i32) {
    %c0_i32 = arith.constant 0 : i32
    %c0_i32_0 = arith.constant 0 : i32
    %c0_i32_1 = arith.constant 0 : i32
    return %arg3, %c0_i32, %c0_i32_0, %arg2 : i32, i32, i32, i32
  }
  func.func @transform_2(%arg0: i32, %arg1: i32, %arg2: i32, %arg3: i32) -> (i32, i32) {
    %c0_i32 = arith.constant 0 : i32
    %c0_i32_0 = arith.constant 0 : i32
    return %c0_i32, %arg2 : i32, i32
  }
  func.func @transform_3(%arg0: i32, %arg1: i32, %arg2: i32, %arg3: i32) -> (i32, i32, i32, i32) {
    %c0_i32 = arith.constant 0 : i32
    %c0_i32_0 = arith.constant 0 : i32
    return %arg0, %arg1, %c0_i32, %arg2 : i32, i32, i32, i32
  }
  func.func @transform_4(%arg0: i32, %arg1: i32, %arg2: i32, %arg3: i32) -> (i32, i32, i32, i32) {
    %c0_i32 = arith.constant 0 : i32
    %c0_i32_0 = arith.constant 0 : i32
    return %arg0, %arg1, %c0_i32, %arg2 : i32, i32, i32, i32
  }
  func.func @transform_5(%arg0: i32, %arg1: i32, %arg2: i32, %arg3: i32) -> (i32, i32, i32, i32) {
    %c0_i32 = arith.constant 0 : i32
    %c0_i32_0 = arith.constant 0 : i32
    return %arg0, %arg1, %c0_i32, %arg2 : i32, i32, i32, i32
  }
}

module attributes {stable_mosaic.version = 11 : i64} {
  func.func @_conv_row_kernel(%arg0: i32, %arg1: i32, %arg2: i32, %arg3: i32, %arg4: memref<1x1x8x128xbf16, #tpu.memory_space<vmem>>, %arg5: memref<1x1x128x128xbf16, #tpu.memory_space<vmem>>, %arg6: memref<1x128xf32, #tpu.memory_space<vmem>>, %arg7: memref<1x1x8x128xbf16, #tpu.memory_space<vmem>>, %arg8: memref<1x1x2x128xf32, #tpu.memory_space<vmem>>, %arg9: memref<8x128xf32, #tpu.memory_space<vmem>>) attributes {dimension_semantics = [#tpu.dimension_semantics<parallel>, #tpu.dimension_semantics<parallel>, #tpu.dimension_semantics<parallel>, #tpu.dimension_semantics<arbitrary>], iteration_bounds = array<i64: 2, 8, 1, 1>, scalar_prefetch = 0 : i64, scratch_operands = 1 : i64, tpu.core_type = #tpu.core_type<tc>, window_params = [{transform_indices = @transform_0, window_bounds = array<i64: 1, 1, 8, 128>}, {transform_indices = @transform_1, window_bounds = array<i64: 1, 1, 128, 128>}, {transform_indices = @transform_2, window_bounds = array<i64: 1, 128>}, {transform_indices = @transform_3, window_bounds = array<i64: 1, 1, 8, 128>}, {transform_indices = @transform_4, window_bounds = array<i64: 1, 1, 2, 128>}]} {
    %c0_i32 = arith.constant 0 : i32
    %0 = arith.cmpi eq, %arg3, %c0_i32 : i32
    %1 = arith.extui %0 : i1 to i32
    %c0_i32_0 = arith.constant 0 : i32
    %2 = arith.cmpi ne, %1, %c0_i32_0 : i32
    scf.if %2 {
      %cst_14 = arith.constant 0.000000e+00 : f32
      %14 = vector.broadcast %cst_14 : f32 to vector<8x128xf32>
      %c0_15 = arith.constant 0 : index
      %c0_16 = arith.constant 0 : index
      %15 = vector.load %arg9[%c0_15, %c0_16] : memref<8x128xf32, #tpu.memory_space<vmem>>, vector<8x128xf32>
      tpu.vector_store %arg9[%c0_15, %c0_16], %14 {strides = array<i32>} : memref<8x128xf32, #tpu.memory_space<vmem>>, vector<8x128xf32>,
    } else {
    }
    %c0 = arith.constant 0 : index
    %c0_1 = arith.constant 0 : index
    %3 = vector.load %arg9[%c0, %c0_1] : memref<8x128xf32, #tpu.memory_space<vmem>>, vector<8x128xf32>
    %c0_2 = arith.constant 0 : index
    %c0_3 = arith.constant 0 : index
    %c0_4 = arith.constant 0 : index
    %c0_5 = arith.constant 0 : index
    %4 = vector.load %arg4[%c0_2, %c0_3, %c0_4, %c0_5] : memref<1x1x8x128xbf16, #tpu.memory_space<vmem>>, vector<1x1x8x128xbf16>
    %5 = vector.shape_cast %4 : vector<1x1x8x128xbf16> to vector<8x128xbf16>
    %c0_6 = arith.constant 0 : index
    %c0_7 = arith.constant 0 : index
    %c0_8 = arith.constant 0 : index
    %c0_9 = arith.constant 0 : index
    %6 = vector.load %arg5[%c0_6, %c0_7, %c0_8, %c0_9] : memref<1x1x128x128xbf16, #tpu.memory_space<vmem>>, vector<1x1x128x128xbf16>
    %7 = vector.shape_cast %6 : vector<1x1x128x128xbf16> to vector<128x128xbf16>
    %cst = arith.constant dense<0.000000e+00> : vector<8x128xf32>
    %8 = tpu.matmul %5, %7, %cst {dimension_numbers = #tpu.dot_dimension_numbers<[1], [0], [0], [1], [0, 0, 1, 1], [], []>} : vector<8x128xbf16>, vector<128x128xbf16>, vector<8x128xf32> -> vector<8x128xf32>
    %9 = arith.addf %3, %8 : vector<8x128xf32>
    %c0_10 = arith.constant 0 : index
    %c0_11 = arith.constant 0 : index
    %10 = vector.load %arg9[%c0_10, %c0_11] : memref<8x128xf32, #tpu.memory_space<vmem>>, vector<8x128xf32>
    tpu.vector_store %arg9[%c0_10, %c0_11], %9 {strides = array<i32>} : memref<8x128xf32, #tpu.memory_space<vmem>>, vector<8x128xf32>,
    %c0_i32_12 = arith.constant 0 : i32
    %11 = arith.cmpi eq, %arg3, %c0_i32_12 : i32
    %12 = arith.extui %11 : i1 to i32
    %c0_i32_13 = arith.constant 0 : i32
    %13 = arith.cmpi ne, %12, %c0_i32_13 : i32
    scf.if %13 {
      %c0_14 = arith.constant 0 : index
      %c0_15 = arith.constant 0 : index
      %14 = vector.load %arg9[%c0_14, %c0_15] : memref<8x128xf32, #tpu.memory_space<vmem>>, vector<8x128xf32>
      %c0_16 = arith.constant 0 : index
      %c0_17 = arith.constant 0 : index
      %15 = vector.load %arg6[%c0_16, %c0_17] : memref<1x128xf32, #tpu.memory_space<vmem>>, vector<1x128xf32>
      %16 = vector.broadcast %15 : vector<1x128xf32> to vector<8x128xf32>
      %17 = arith.addf %14, %16 : vector<8x128xf32>
      %18 = arith.truncf %17 : vector<8x128xf32> to vector<8x128xbf16>
      %c0_18 = arith.constant 0 : index
      %c0_19 = arith.constant 0 : index
      %c0_20 = arith.constant 0 : index
      %c0_21 = arith.constant 0 : index
      %19 = vector.load %arg7[%c0_18, %c0_19, %c0_20, %c0_21] : memref<1x1x8x128xbf16, #tpu.memory_space<vmem>>, vector<1x1x8x128xbf16>
      %20 = vector.shape_cast %19 : vector<1x1x8x128xbf16> to vector<8x128xbf16>
      %21 = vector.shape_cast %18 : vector<8x128xbf16> to vector<1x1x8x128xbf16>
      tpu.vector_store %arg7[%c0_18, %c0_19, %c0_20, %c0_21], %21 {strides = array<i32>} : memref<1x1x8x128xbf16, #tpu.memory_space<vmem>>, vector<1x1x8x128xbf16>,
      %cst_22 = arith.constant dense<0.000000e+00> : vector<128xf32>
      %22 = vector.multi_reduction <add>, %17, %cst_22 [0] : vector<8x128xf32> to vector<128xf32>
      %23 = vector.shape_cast %22 : vector<128xf32> to vector<1x128xf32>
      %24 = arith.mulf %17, %17 : vector<8x128xf32>
      %cst_23 = arith.constant dense<0.000000e+00> : vector<128xf32>
      %25 = vector.multi_reduction <add>, %24, %cst_23 [0] : vector<8x128xf32> to vector<128xf32>
      %26 = vector.shape_cast %25 : vector<128xf32> to vector<1x128xf32>
      %27 = tpu.concatenate %23, %26 in 0 : vector<1x128xf32>, vector<1x128xf32> -> vector<2x128xf32>
      %c0_24 = arith.constant 0 : index
      %c0_25 = arith.constant 0 : index
      %c0_26 = arith.constant 0 : index
      %c0_27 = arith.constant 0 : index
      %28 = vector.load %arg8[%c0_24, %c0_25, %c0_26, %c0_27] : memref<1x1x2x128xf32, #tpu.memory_space<vmem>>, vector<1x1x2x128xf32>
      %29 = vector.shape_cast %28 : vector<1x1x2x128xf32> to vector<2x128xf32>
      %30 = vector.shape_cast %27 : vector<2x128xf32> to vector<1x1x2x128xf32>
      tpu.vector_store %arg8[%c0_24, %c0_25, %c0_26, %c0_27], %30 {strides = array<i32>} : memref<1x1x2x128xf32, #tpu.memory_space<vmem>>, vector<1x1x2x128xf32>,
    } else {
    }
    return
  }
  func.func @transform_0(%arg0: i32, %arg1: i32, %arg2: i32, %arg3: i32) -> (i32, i32, i32, i32) {
    %0 = arith.addi %arg1, %arg3 : i32
    %c0_i32 = arith.constant 0 : i32
    %c0_i32_0 = arith.constant 0 : i32
    %c0_i32_1 = arith.constant 0 : i32
    return %arg0, %0, %c0_i32, %c0_i32_0 : i32, i32, i32, i32
  }
  func.func @transform_1(%arg0: i32, %arg1: i32, %arg2: i32, %arg3: i32) -> (i32, i32, i32, i32) {
    %c0_i32 = arith.constant 0 : i32
    %c0_i32_0 = arith.constant 0 : i32
    %c0_i32_1 = arith.constant 0 : i32
    return %arg3, %c0_i32, %c0_i32_0, %arg2 : i32, i32, i32, i32
  }
  func.func @transform_2(%arg0: i32, %arg1: i32, %arg2: i32, %arg3: i32) -> (i32, i32) {
    %c0_i32 = arith.constant 0 : i32
    %c0_i32_0 = arith.constant 0 : i32
    return %c0_i32, %arg2 : i32, i32
  }
  func.func @transform_3(%arg0: i32, %arg1: i32, %arg2: i32, %arg3: i32) -> (i32, i32, i32, i32) {
    %c0_i32 = arith.constant 0 : i32
    %c0_i32_0 = arith.constant 0 : i32
    return %arg0, %arg1, %c0_i32, %arg2 : i32, i32, i32, i32
  }
  func.func @transform_4(%arg0: i32, %arg1: i32, %arg2: i32, %arg3: i32) -> (i32, i32, i32, i32) {
    %c0_i32 = arith.constant 0 : i32
    %c0_i32_0 = arith.constant 0 : i32
    return %arg0, %arg1, %c0_i32, %arg2 : i32, i32, i32, i32
  }
}

module attributes {stable_mosaic.version = 11 : i64} {
  func.func @_bn_lrelu_kernel(%arg0: i32, %arg1: i32, %arg2: i32, %arg3: memref<1x1x8x128xbf16, #tpu.memory_space<vmem>>, %arg4: memref<1x128xf32, #tpu.memory_space<vmem>>, %arg5: memref<1x128xf32, #tpu.memory_space<vmem>>, %arg6: memref<1x1x8x128xbf16, #tpu.memory_space<vmem>>) attributes {dimension_semantics = [#tpu.dimension_semantics<parallel>, #tpu.dimension_semantics<parallel>, #tpu.dimension_semantics<parallel>], iteration_bounds = array<i64: 2, 8, 1>, scalar_prefetch = 0 : i64, scratch_operands = 0 : i64, tpu.core_type = #tpu.core_type<tc>, window_params = [{transform_indices = @transform_0, window_bounds = array<i64: 1, 1, 8, 128>}, {transform_indices = @transform_1, window_bounds = array<i64: 1, 128>}, {transform_indices = @transform_2, window_bounds = array<i64: 1, 128>}, {transform_indices = @transform_3, window_bounds = array<i64: 1, 1, 8, 128>}]} {
    %c0 = arith.constant 0 : index
    %c0_0 = arith.constant 0 : index
    %c0_1 = arith.constant 0 : index
    %c0_2 = arith.constant 0 : index
    %0 = vector.load %arg3[%c0, %c0_0, %c0_1, %c0_2] : memref<1x1x8x128xbf16, #tpu.memory_space<vmem>>, vector<1x1x8x128xbf16>
    %1 = vector.shape_cast %0 : vector<1x1x8x128xbf16> to vector<8x128xbf16>
    %2 = arith.extf %1 : vector<8x128xbf16> to vector<8x128xf32>
    %c0_3 = arith.constant 0 : index
    %c0_4 = arith.constant 0 : index
    %3 = vector.load %arg4[%c0_3, %c0_4] : memref<1x128xf32, #tpu.memory_space<vmem>>, vector<1x128xf32>
    %4 = vector.broadcast %3 : vector<1x128xf32> to vector<8x128xf32>
    %5 = arith.mulf %2, %4 : vector<8x128xf32>
    %c0_5 = arith.constant 0 : index
    %c0_6 = arith.constant 0 : index
    %6 = vector.load %arg5[%c0_5, %c0_6] : memref<1x128xf32, #tpu.memory_space<vmem>>, vector<1x128xf32>
    %7 = vector.broadcast %6 : vector<1x128xf32> to vector<8x128xf32>
    %8 = arith.addf %5, %7 : vector<8x128xf32>
    %cst = arith.constant 0.000000e+00 : f32
    %9 = vector.broadcast %cst : f32 to vector<8x128xf32>
    %10 = arith.cmpf oge, %8, %9 : vector<8x128xf32>
    %cst_7 = arith.constant 2.000000e-01 : f32
    %11 = vector.broadcast %cst_7 : f32 to vector<8x128xf32>
    %12 = arith.mulf %11, %8 : vector<8x128xf32>
    %13 = arith.select %10, %8, %12 : vector<8x128xi1>, vector<8x128xf32>
    %14 = arith.truncf %13 : vector<8x128xf32> to vector<8x128xbf16>
    %c0_8 = arith.constant 0 : index
    %c0_9 = arith.constant 0 : index
    %c0_10 = arith.constant 0 : index
    %c0_11 = arith.constant 0 : index
    %15 = vector.load %arg6[%c0_8, %c0_9, %c0_10, %c0_11] : memref<1x1x8x128xbf16, #tpu.memory_space<vmem>>, vector<1x1x8x128xbf16>
    %16 = vector.shape_cast %15 : vector<1x1x8x128xbf16> to vector<8x128xbf16>
    %17 = vector.shape_cast %14 : vector<8x128xbf16> to vector<1x1x8x128xbf16>
    tpu.vector_store %arg6[%c0_8, %c0_9, %c0_10, %c0_11], %17 {strides = array<i32>} : memref<1x1x8x128xbf16, #tpu.memory_space<vmem>>, vector<1x1x8x128xbf16>,
    return
  }
  func.func @transform_0(%arg0: i32, %arg1: i32, %arg2: i32) -> (i32, i32, i32, i32) {
    %c0_i32 = arith.constant 0 : i32
    %c0_i32_0 = arith.constant 0 : i32
    return %arg0, %arg1, %c0_i32, %arg2 : i32, i32, i32, i32
  }
  func.func @transform_1(%arg0: i32, %arg1: i32, %arg2: i32) -> (i32, i32) {
    %c0_i32 = arith.constant 0 : i32
    %c0_i32_0 = arith.constant 0 : i32
    return %c0_i32, %arg2 : i32, i32
  }
  func.func @transform_2(%arg0: i32, %arg1: i32, %arg2: i32) -> (i32, i32) {
    %c0_i32 = arith.constant 0 : i32
    %c0_i32_0 = arith.constant 0 : i32
    return %c0_i32, %arg2 : i32, i32
  }
  func.func @transform_3(%arg0: i32, %arg1: i32, %arg2: i32) -> (i32, i32, i32, i32) {
    %c0_i32 = arith.constant 0 : i32
    %c0_i32_0 = arith.constant 0 : i32
    return %arg0, %arg1, %c0_i32, %arg2 : i32, i32, i32, i32
  }
}

module attributes {stable_mosaic.version = 11 : i64} {
  func.func @_conv_row_kernel(%arg0: i32, %arg1: i32, %arg2: i32, %arg3: i32, %arg4: memref<1x1x10x128xbf16, #tpu.memory_space<vmem>>, %arg5: memref<1x3x128x128xbf16, #tpu.memory_space<vmem>>, %arg6: memref<1x128xf32, #tpu.memory_space<vmem>>, %arg7: memref<1x1x8x128xbf16, #tpu.memory_space<vmem>>, %arg8: memref<1x1x8x128xbf16, #tpu.memory_space<vmem>>, %arg9: memref<1x1x2x128xf32, #tpu.memory_space<vmem>>, %arg10: memref<8x128xf32, #tpu.memory_space<vmem>>) attributes {dimension_semantics = [#tpu.dimension_semantics<parallel>, #tpu.dimension_semantics<parallel>, #tpu.dimension_semantics<parallel>, #tpu.dimension_semantics<arbitrary>], iteration_bounds = array<i64: 2, 8, 1, 3>, scalar_prefetch = 0 : i64, scratch_operands = 1 : i64, tpu.core_type = #tpu.core_type<tc>, window_params = [{transform_indices = @transform_0, window_bounds = array<i64: 1, 1, 10, 128>}, {transform_indices = @transform_1, window_bounds = array<i64: 1, 3, 128, 128>}, {transform_indices = @transform_2, window_bounds = array<i64: 1, 128>}, {transform_indices = @transform_3, window_bounds = array<i64: 1, 1, 8, 128>}, {transform_indices = @transform_4, window_bounds = array<i64: 1, 1, 8, 128>}, {transform_indices = @transform_5, window_bounds = array<i64: 1, 1, 2, 128>}]} {
    %c0_i32 = arith.constant 0 : i32
    %0 = arith.cmpi eq, %arg3, %c0_i32 : i32
    %1 = arith.extui %0 : i1 to i32
    %c0_i32_0 = arith.constant 0 : i32
    %2 = arith.cmpi ne, %1, %c0_i32_0 : i32
    scf.if %2 {
      %cst_29 = arith.constant 0.000000e+00 : f32
      %26 = vector.broadcast %cst_29 : f32 to vector<8x128xf32>
      %c0_30 = arith.constant 0 : index
      %c0_31 = arith.constant 0 : index
      %27 = vector.load %arg10[%c0_30, %c0_31] : memref<8x128xf32, #tpu.memory_space<vmem>>, vector<8x128xf32>
      tpu.vector_store %arg10[%c0_30, %c0_31], %26 {strides = array<i32>} : memref<8x128xf32, #tpu.memory_space<vmem>>, vector<8x128xf32>,
    } else {
    }
    %c0 = arith.constant 0 : index
    %c0_1 = arith.constant 0 : index
    %3 = vector.load %arg10[%c0, %c0_1] : memref<8x128xf32, #tpu.memory_space<vmem>>, vector<8x128xf32>
    %c0_2 = arith.constant 0 : index
    %c0_3 = arith.constant 0 : index
    %c0_4 = arith.constant 0 : index
    %c0_5 = arith.constant 0 : index
    %4 = vector.load %arg4[%c0_2, %c0_3, %c0_4, %c0_5] : memref<1x1x10x128xbf16, #tpu.memory_space<vmem>>, vector<1x1x8x128xbf16>
    %5 = vector.shape_cast %4 : vector<1x1x8x128xbf16> to vector<8x128xbf16>
    %c0_6 = arith.constant 0 : index
    %c0_7 = arith.constant 0 : index
    %c0_8 = arith.constant 0 : index
    %c0_9 = arith.constant 0 : index
    %6 = vector.load %arg5[%c0_6, %c0_7, %c0_8, %c0_9] : memref<1x3x128x128xbf16, #tpu.memory_space<vmem>>, vector<1x1x128x128xbf16>
    %7 = vector.shape_cast %6 : vector<1x1x128x128xbf16> to vector<128x128xbf16>
    %cst = arith.constant dense<0.000000e+00> : vector<8x128xf32>
    %8 = tpu.matmul %5, %7, %cst {dimension_numbers = #tpu.dot_dimension_numbers<[1], [0], [0], [1], [0, 0, 1, 1], [], []>} : vector<8x128xbf16>, vector<128x128xbf16>, vector<8x128xf32> -> vector<8x128xf32>
    %9 = arith.addf %3, %8 : vector<8x128xf32>
    %c0_10 = arith.constant 0 : index
    %c0_11 = arith.constant 0 : index
    %c1 = arith.constant 1 : index
    %c0_12 = arith.constant 0 : index
    %10 = vector.load %arg4[%c0_10, %c0_11, %c1, %c0_12] : memref<1x1x10x128xbf16, #tpu.memory_space<vmem>>, vector<1x1x8x128xbf16>
    %11 = vector.shape_cast %10 : vector<1x1x8x128xbf16> to vector<8x128xbf16>
    %c0_13 = arith.constant 0 : index
    %c1_14 = arith.constant 1 : index
    %c0_15 = arith.constant 0 : index
    %c0_16 = arith.constant 0 : index
    %12 = vector.load %arg5[%c0_13, %c1_14, %c0_15, %c0_16] : memref<1x3x128x128xbf16, #tpu.memory_space<vmem>>, vector<1x1x128x128xbf16>
    %13 = vector.shape_cast %12 : vector<1x1x128x128xbf16> to vector<128x128xbf16>
    %cst_17 = arith.constant dense<0.000000e+00> : vector<8x128xf32>
    %14 = tpu.matmul %11, %13, %cst_17 {dimension_numbers = #tpu.dot_dimension_numbers<[1], [0], [0], [1], [0, 0, 1, 1], [], []>} : vector<8x128xbf16>, vector<128x128xbf16>, vector<8x128xf32> -> vector<8x128xf32>
    %15 = arith.addf %9, %14 : vector<8x128xf32>
    %c0_18 = arith.constant 0 : index
    %c0_19 = arith.constant 0 : index
    %c2 = arith.constant 2 : index
    %c0_20 = arith.constant 0 : index
    %16 = vector.load %arg4[%c0_18, %c0_19, %c2, %c0_20] : memref<1x1x10x128xbf16, #tpu.memory_space<vmem>>, vector<1x1x8x128xbf16>
    %17 = vector.shape_cast %16 : vector<1x1x8x128xbf16> to vector<8x128xbf16>
    %c0_21 = arith.constant 0 : index
    %c2_22 = arith.constant 2 : index
    %c0_23 = arith.constant 0 : index
    %c0_24 = arith.constant 0 : index
    %18 = vector.load %arg5[%c0_21, %c2_22, %c0_23, %c0_24] : memref<1x3x128x128xbf16, #tpu.memory_space<vmem>>, vector<1x1x128x128xbf16>
    %19 = vector.shape_cast %18 : vector<1x1x128x128xbf16> to vector<128x128xbf16>
    %cst_25 = arith.constant dense<0.000000e+00> : vector<8x128xf32>
    %20 = tpu.matmul %17, %19, %cst_25 {dimension_numbers = #tpu.dot_dimension_numbers<[1], [0], [0], [1], [0, 0, 1, 1], [], []>} : vector<8x128xbf16>, vector<128x128xbf16>, vector<8x128xf32> -> vector<8x128xf32>
    %21 = arith.addf %15, %20 : vector<8x128xf32>
    %c0_26 = arith.constant 0 : index
    %c0_27 = arith.constant 0 : index
    %22 = vector.load %arg10[%c0_26, %c0_27] : memref<8x128xf32, #tpu.memory_space<vmem>>, vector<8x128xf32>
    tpu.vector_store %arg10[%c0_26, %c0_27], %21 {strides = array<i32>} : memref<8x128xf32, #tpu.memory_space<vmem>>, vector<8x128xf32>,
    %c2_i32 = arith.constant 2 : i32
    %23 = arith.cmpi eq, %arg3, %c2_i32 : i32
    %24 = arith.extui %23 : i1 to i32
    %c0_i32_28 = arith.constant 0 : i32
    %25 = arith.cmpi ne, %24, %c0_i32_28 : i32
    scf.if %25 {
      %c0_29 = arith.constant 0 : index
      %c0_30 = arith.constant 0 : index
      %26 = vector.load %arg10[%c0_29, %c0_30] : memref<8x128xf32, #tpu.memory_space<vmem>>, vector<8x128xf32>
      %c0_31 = arith.constant 0 : index
      %c0_32 = arith.constant 0 : index
      %27 = vector.load %arg6[%c0_31, %c0_32] : memref<1x128xf32, #tpu.memory_space<vmem>>, vector<1x128xf32>
      %28 = vector.broadcast %27 : vector<1x128xf32> to vector<8x128xf32>
      %29 = arith.addf %26, %28 : vector<8x128xf32>
      %c0_33 = arith.constant 0 : index
      %c0_34 = arith.constant 0 : index
      %c0_35 = arith.constant 0 : index
      %c0_36 = arith.constant 0 : index
      %30 = vector.load %arg7[%c0_33, %c0_34, %c0_35, %c0_36] : memref<1x1x8x128xbf16, #tpu.memory_space<vmem>>, vector<1x1x8x128xbf16>
      %31 = vector.shape_cast %30 : vector<1x1x8x128xbf16> to vector<8x128xbf16>
      %32 = arith.extf %31 : vector<8x128xbf16> to vector<8x128xf32>
      %33 = arith.addf %29, %32 : vector<8x128xf32>
      %34 = arith.truncf %33 : vector<8x128xf32> to vector<8x128xbf16>
      %c0_37 = arith.constant 0 : index
      %c0_38 = arith.constant 0 : index
      %c0_39 = arith.constant 0 : index
      %c0_40 = arith.constant 0 : index
      %35 = vector.load %arg8[%c0_37, %c0_38, %c0_39, %c0_40] : memref<1x1x8x128xbf16, #tpu.memory_space<vmem>>, vector<1x1x8x128xbf16>
      %36 = vector.shape_cast %35 : vector<1x1x8x128xbf16> to vector<8x128xbf16>
      %37 = vector.shape_cast %34 : vector<8x128xbf16> to vector<1x1x8x128xbf16>
      tpu.vector_store %arg8[%c0_37, %c0_38, %c0_39, %c0_40], %37 {strides = array<i32>} : memref<1x1x8x128xbf16, #tpu.memory_space<vmem>>, vector<1x1x8x128xbf16>,
      %cst_41 = arith.constant dense<0.000000e+00> : vector<128xf32>
      %38 = vector.multi_reduction <add>, %33, %cst_41 [0] : vector<8x128xf32> to vector<128xf32>
      %39 = vector.shape_cast %38 : vector<128xf32> to vector<1x128xf32>
      %40 = arith.mulf %33, %33 : vector<8x128xf32>
      %cst_42 = arith.constant dense<0.000000e+00> : vector<128xf32>
      %41 = vector.multi_reduction <add>, %40, %cst_42 [0] : vector<8x128xf32> to vector<128xf32>
      %42 = vector.shape_cast %41 : vector<128xf32> to vector<1x128xf32>
      %43 = tpu.concatenate %39, %42 in 0 : vector<1x128xf32>, vector<1x128xf32> -> vector<2x128xf32>
      %c0_43 = arith.constant 0 : index
      %c0_44 = arith.constant 0 : index
      %c0_45 = arith.constant 0 : index
      %c0_46 = arith.constant 0 : index
      %44 = vector.load %arg9[%c0_43, %c0_44, %c0_45, %c0_46] : memref<1x1x2x128xf32, #tpu.memory_space<vmem>>, vector<1x1x2x128xf32>
      %45 = vector.shape_cast %44 : vector<1x1x2x128xf32> to vector<2x128xf32>
      %46 = vector.shape_cast %43 : vector<2x128xf32> to vector<1x1x2x128xf32>
      tpu.vector_store %arg9[%c0_43, %c0_44, %c0_45, %c0_46], %46 {strides = array<i32>} : memref<1x1x2x128xf32, #tpu.memory_space<vmem>>, vector<1x1x2x128xf32>,
    } else {
    }
    return
  }
  func.func @transform_0(%arg0: i32, %arg1: i32, %arg2: i32, %arg3: i32) -> (i32, i32, i32, i32) {
    %0 = arith.addi %arg1, %arg3 : i32
    %c0_i32 = arith.constant 0 : i32
    %c0_i32_0 = arith.constant 0 : i32
    %c0_i32_1 = arith.constant 0 : i32
    return %arg0, %0, %c0_i32, %c0_i32_0 : i32, i32, i32, i32
  }
  func.func @transform_1(%arg0: i32, %arg1: i32, %arg2: i32, %arg3: i32) -> (i32, i32, i32, i32) {
    %c0_i32 = arith.constant 0 : i32
    %c0_i32_0 = arith.constant 0 : i32
    %c0_i32_1 = arith.constant 0 : i32
    return %arg3, %c0_i32, %c0_i32_0, %arg2 : i32, i32, i32, i32
  }
  func.func @transform_2(%arg0: i32, %arg1: i32, %arg2: i32, %arg3: i32) -> (i32, i32) {
    %c0_i32 = arith.constant 0 : i32
    %c0_i32_0 = arith.constant 0 : i32
    return %c0_i32, %arg2 : i32, i32
  }
  func.func @transform_3(%arg0: i32, %arg1: i32, %arg2: i32, %arg3: i32) -> (i32, i32, i32, i32) {
    %c0_i32 = arith.constant 0 : i32
    %c0_i32_0 = arith.constant 0 : i32
    return %arg0, %arg1, %c0_i32, %arg2 : i32, i32, i32, i32
  }
  func.func @transform_4(%arg0: i32, %arg1: i32, %arg2: i32, %arg3: i32) -> (i32, i32, i32, i32) {
    %c0_i32 = arith.constant 0 : i32
    %c0_i32_0 = arith.constant 0 : i32
    return %arg0, %arg1, %c0_i32, %arg2 : i32, i32, i32, i32
  }
  func.func @transform_5(%arg0: i32, %arg1: i32, %arg2: i32, %arg3: i32) -> (i32, i32, i32, i32) {
    %c0_i32 = arith.constant 0 : i32
    %c0_i32_0 = arith.constant 0 : i32
    return %arg0, %arg1, %c0_i32, %arg2 : i32, i32, i32, i32
  }
}

module attributes {stable_mosaic.version = 11 : i64} {
  func.func @_conv_row_kernel(%arg0: i32, %arg1: i32, %arg2: i32, %arg3: i32, %arg4: memref<1x1x10x128xbf16, #tpu.memory_space<vmem>>, %arg5: memref<1x3x128x128xbf16, #tpu.memory_space<vmem>>, %arg6: memref<1x128xf32, #tpu.memory_space<vmem>>, %arg7: memref<1x1x8x128xbf16, #tpu.memory_space<vmem>>, %arg8: memref<1x1x2x128xf32, #tpu.memory_space<vmem>>, %arg9: memref<8x128xf32, #tpu.memory_space<vmem>>) attributes {dimension_semantics = [#tpu.dimension_semantics<parallel>, #tpu.dimension_semantics<parallel>, #tpu.dimension_semantics<parallel>, #tpu.dimension_semantics<arbitrary>], iteration_bounds = array<i64: 2, 8, 1, 3>, scalar_prefetch = 0 : i64, scratch_operands = 1 : i64, tpu.core_type = #tpu.core_type<tc>, window_params = [{transform_indices = @transform_0, window_bounds = array<i64: 1, 1, 10, 128>}, {transform_indices = @transform_1, window_bounds = array<i64: 1, 3, 128, 128>}, {transform_indices = @transform_2, window_bounds = array<i64: 1, 128>}, {transform_indices = @transform_3, window_bounds = array<i64: 1, 1, 8, 128>}, {transform_indices = @transform_4, window_bounds = array<i64: 1, 1, 2, 128>}]} {
    %c0_i32 = arith.constant 0 : i32
    %0 = arith.cmpi eq, %arg3, %c0_i32 : i32
    %1 = arith.extui %0 : i1 to i32
    %c0_i32_0 = arith.constant 0 : i32
    %2 = arith.cmpi ne, %1, %c0_i32_0 : i32
    scf.if %2 {
      %cst_29 = arith.constant 0.000000e+00 : f32
      %26 = vector.broadcast %cst_29 : f32 to vector<8x128xf32>
      %c0_30 = arith.constant 0 : index
      %c0_31 = arith.constant 0 : index
      %27 = vector.load %arg9[%c0_30, %c0_31] : memref<8x128xf32, #tpu.memory_space<vmem>>, vector<8x128xf32>
      tpu.vector_store %arg9[%c0_30, %c0_31], %26 {strides = array<i32>} : memref<8x128xf32, #tpu.memory_space<vmem>>, vector<8x128xf32>,
    } else {
    }
    %c0 = arith.constant 0 : index
    %c0_1 = arith.constant 0 : index
    %3 = vector.load %arg9[%c0, %c0_1] : memref<8x128xf32, #tpu.memory_space<vmem>>, vector<8x128xf32>
    %c0_2 = arith.constant 0 : index
    %c0_3 = arith.constant 0 : index
    %c0_4 = arith.constant 0 : index
    %c0_5 = arith.constant 0 : index
    %4 = vector.load %arg4[%c0_2, %c0_3, %c0_4, %c0_5] : memref<1x1x10x128xbf16, #tpu.memory_space<vmem>>, vector<1x1x8x128xbf16>
    %5 = vector.shape_cast %4 : vector<1x1x8x128xbf16> to vector<8x128xbf16>
    %c0_6 = arith.constant 0 : index
    %c0_7 = arith.constant 0 : index
    %c0_8 = arith.constant 0 : index
    %c0_9 = arith.constant 0 : index
    %6 = vector.load %arg5[%c0_6, %c0_7, %c0_8, %c0_9] : memref<1x3x128x128xbf16, #tpu.memory_space<vmem>>, vector<1x1x128x128xbf16>
    %7 = vector.shape_cast %6 : vector<1x1x128x128xbf16> to vector<128x128xbf16>
    %cst = arith.constant dense<0.000000e+00> : vector<8x128xf32>
    %8 = tpu.matmul %5, %7, %cst {dimension_numbers = #tpu.dot_dimension_numbers<[1], [0], [0], [1], [0, 0, 1, 1], [], []>} : vector<8x128xbf16>, vector<128x128xbf16>, vector<8x128xf32> -> vector<8x128xf32>
    %9 = arith.addf %3, %8 : vector<8x128xf32>
    %c0_10 = arith.constant 0 : index
    %c0_11 = arith.constant 0 : index
    %c1 = arith.constant 1 : index
    %c0_12 = arith.constant 0 : index
    %10 = vector.load %arg4[%c0_10, %c0_11, %c1, %c0_12] : memref<1x1x10x128xbf16, #tpu.memory_space<vmem>>, vector<1x1x8x128xbf16>
    %11 = vector.shape_cast %10 : vector<1x1x8x128xbf16> to vector<8x128xbf16>
    %c0_13 = arith.constant 0 : index
    %c1_14 = arith.constant 1 : index
    %c0_15 = arith.constant 0 : index
    %c0_16 = arith.constant 0 : index
    %12 = vector.load %arg5[%c0_13, %c1_14, %c0_15, %c0_16] : memref<1x3x128x128xbf16, #tpu.memory_space<vmem>>, vector<1x1x128x128xbf16>
    %13 = vector.shape_cast %12 : vector<1x1x128x128xbf16> to vector<128x128xbf16>
    %cst_17 = arith.constant dense<0.000000e+00> : vector<8x128xf32>
    %14 = tpu.matmul %11, %13, %cst_17 {dimension_numbers = #tpu.dot_dimension_numbers<[1], [0], [0], [1], [0, 0, 1, 1], [], []>} : vector<8x128xbf16>, vector<128x128xbf16>, vector<8x128xf32> -> vector<8x128xf32>
    %15 = arith.addf %9, %14 : vector<8x128xf32>
    %c0_18 = arith.constant 0 : index
    %c0_19 = arith.constant 0 : index
    %c2 = arith.constant 2 : index
    %c0_20 = arith.constant 0 : index
    %16 = vector.load %arg4[%c0_18, %c0_19, %c2, %c0_20] : memref<1x1x10x128xbf16, #tpu.memory_space<vmem>>, vector<1x1x8x128xbf16>
    %17 = vector.shape_cast %16 : vector<1x1x8x128xbf16> to vector<8x128xbf16>
    %c0_21 = arith.constant 0 : index
    %c2_22 = arith.constant 2 : index
    %c0_23 = arith.constant 0 : index
    %c0_24 = arith.constant 0 : index
    %18 = vector.load %arg5[%c0_21, %c2_22, %c0_23, %c0_24] : memref<1x3x128x128xbf16, #tpu.memory_space<vmem>>, vector<1x1x128x128xbf16>
    %19 = vector.shape_cast %18 : vector<1x1x128x128xbf16> to vector<128x128xbf16>
    %cst_25 = arith.constant dense<0.000000e+00> : vector<8x128xf32>
    %20 = tpu.matmul %17, %19, %cst_25 {dimension_numbers = #tpu.dot_dimension_numbers<[1], [0], [0], [1], [0, 0, 1, 1], [], []>} : vector<8x128xbf16>, vector<128x128xbf16>, vector<8x128xf32> -> vector<8x128xf32>
    %21 = arith.addf %15, %20 : vector<8x128xf32>
    %c0_26 = arith.constant 0 : index
    %c0_27 = arith.constant 0 : index
    %22 = vector.load %arg9[%c0_26, %c0_27] : memref<8x128xf32, #tpu.memory_space<vmem>>, vector<8x128xf32>
    tpu.vector_store %arg9[%c0_26, %c0_27], %21 {strides = array<i32>} : memref<8x128xf32, #tpu.memory_space<vmem>>, vector<8x128xf32>,
    %c2_i32 = arith.constant 2 : i32
    %23 = arith.cmpi eq, %arg3, %c2_i32 : i32
    %24 = arith.extui %23 : i1 to i32
    %c0_i32_28 = arith.constant 0 : i32
    %25 = arith.cmpi ne, %24, %c0_i32_28 : i32
    scf.if %25 {
      %c0_29 = arith.constant 0 : index
      %c0_30 = arith.constant 0 : index
      %26 = vector.load %arg9[%c0_29, %c0_30] : memref<8x128xf32, #tpu.memory_space<vmem>>, vector<8x128xf32>
      %c0_31 = arith.constant 0 : index
      %c0_32 = arith.constant 0 : index
      %27 = vector.load %arg6[%c0_31, %c0_32] : memref<1x128xf32, #tpu.memory_space<vmem>>, vector<1x128xf32>
      %28 = vector.broadcast %27 : vector<1x128xf32> to vector<8x128xf32>
      %29 = arith.addf %26, %28 : vector<8x128xf32>
      %30 = arith.truncf %29 : vector<8x128xf32> to vector<8x128xbf16>
      %c0_33 = arith.constant 0 : index
      %c0_34 = arith.constant 0 : index
      %c0_35 = arith.constant 0 : index
      %c0_36 = arith.constant 0 : index
      %31 = vector.load %arg7[%c0_33, %c0_34, %c0_35, %c0_36] : memref<1x1x8x128xbf16, #tpu.memory_space<vmem>>, vector<1x1x8x128xbf16>
      %32 = vector.shape_cast %31 : vector<1x1x8x128xbf16> to vector<8x128xbf16>
      %33 = vector.shape_cast %30 : vector<8x128xbf16> to vector<1x1x8x128xbf16>
      tpu.vector_store %arg7[%c0_33, %c0_34, %c0_35, %c0_36], %33 {strides = array<i32>} : memref<1x1x8x128xbf16, #tpu.memory_space<vmem>>, vector<1x1x8x128xbf16>,
      %cst_37 = arith.constant dense<0.000000e+00> : vector<128xf32>
      %34 = vector.multi_reduction <add>, %29, %cst_37 [0] : vector<8x128xf32> to vector<128xf32>
      %35 = vector.shape_cast %34 : vector<128xf32> to vector<1x128xf32>
      %36 = arith.mulf %29, %29 : vector<8x128xf32>
      %cst_38 = arith.constant dense<0.000000e+00> : vector<128xf32>
      %37 = vector.multi_reduction <add>, %36, %cst_38 [0] : vector<8x128xf32> to vector<128xf32>
      %38 = vector.shape_cast %37 : vector<128xf32> to vector<1x128xf32>
      %39 = tpu.concatenate %35, %38 in 0 : vector<1x128xf32>, vector<1x128xf32> -> vector<2x128xf32>
      %c0_39 = arith.constant 0 : index
      %c0_40 = arith.constant 0 : index
      %c0_41 = arith.constant 0 : index
      %c0_42 = arith.constant 0 : index
      %40 = vector.load %arg8[%c0_39, %c0_40, %c0_41, %c0_42] : memref<1x1x2x128xf32, #tpu.memory_space<vmem>>, vector<1x1x2x128xf32>
      %41 = vector.shape_cast %40 : vector<1x1x2x128xf32> to vector<2x128xf32>
      %42 = vector.shape_cast %39 : vector<2x128xf32> to vector<1x1x2x128xf32>
      tpu.vector_store %arg8[%c0_39, %c0_40, %c0_41, %c0_42], %42 {strides = array<i32>} : memref<1x1x2x128xf32, #tpu.memory_space<vmem>>, vector<1x1x2x128xf32>,
    } else {
    }
    return
  }
  func.func @transform_0(%arg0: i32, %arg1: i32, %arg2: i32, %arg3: i32) -> (i32, i32, i32, i32) {
    %0 = arith.addi %arg1, %arg3 : i32
    %c0_i32 = arith.constant 0 : i32
    %c0_i32_0 = arith.constant 0 : i32
    %c0_i32_1 = arith.constant 0 : i32
    return %arg0, %0, %c0_i32, %c0_i32_0 : i32, i32, i32, i32
  }
  func.func @transform_1(%arg0: i32, %arg1: i32, %arg2: i32, %arg3: i32) -> (i32, i32, i32, i32) {
    %c0_i32 = arith.constant 0 : i32
    %c0_i32_0 = arith.constant 0 : i32
    %c0_i32_1 = arith.constant 0 : i32
    return %arg3, %c0_i32, %c0_i32_0, %arg2 : i32, i32, i32, i32
  }
  func.func @transform_2(%arg0: i32, %arg1: i32, %arg2: i32, %arg3: i32) -> (i32, i32) {
    %c0_i32 = arith.constant 0 : i32
    %c0_i32_0 = arith.constant 0 : i32
    return %c0_i32, %arg2 : i32, i32
  }
  func.func @transform_3(%arg0: i32, %arg1: i32, %arg2: i32, %arg3: i32) -> (i32, i32, i32, i32) {
    %c0_i32 = arith.constant 0 : i32
    %c0_i32_0 = arith.constant 0 : i32
    return %arg0, %arg1, %c0_i32, %arg2 : i32, i32, i32, i32
  }
  func.func @transform_4(%arg0: i32, %arg1: i32, %arg2: i32, %arg3: i32) -> (i32, i32, i32, i32) {
    %c0_i32 = arith.constant 0 : i32
    %c0_i32_0 = arith.constant 0 : i32
    return %arg0, %arg1, %c0_i32, %arg2 : i32, i32, i32, i32
  }
}

module attributes {stable_mosaic.version = 11 : i64} {
  func.func @_conv_row_kernel(%arg0: i32, %arg1: i32, %arg2: i32, %arg3: i32, %arg4: memref<1x1x18x128xbf16, #tpu.memory_space<vmem>>, %arg5: memref<1x3x128x128xbf16, #tpu.memory_space<vmem>>, %arg6: memref<1x128xf32, #tpu.memory_space<vmem>>, %arg7: memref<1x1x16x128xbf16, #tpu.memory_space<vmem>>, %arg8: memref<1x1x2x128xf32, #tpu.memory_space<vmem>>, %arg9: memref<16x128xf32, #tpu.memory_space<vmem>>) attributes {dimension_semantics = [#tpu.dimension_semantics<parallel>, #tpu.dimension_semantics<parallel>, #tpu.dimension_semantics<parallel>, #tpu.dimension_semantics<arbitrary>], iteration_bounds = array<i64: 2, 16, 1, 3>, scalar_prefetch = 0 : i64, scratch_operands = 1 : i64, tpu.core_type = #tpu.core_type<tc>, window_params = [{transform_indices = @transform_0, window_bounds = array<i64: 1, 1, 18, 128>}, {transform_indices = @transform_1, window_bounds = array<i64: 1, 3, 128, 128>}, {transform_indices = @transform_2, window_bounds = array<i64: 1, 128>}, {transform_indices = @transform_3, window_bounds = array<i64: 1, 1, 16, 128>}, {transform_indices = @transform_4, window_bounds = array<i64: 1, 1, 2, 128>}]} {
    %c0_i32 = arith.constant 0 : i32
    %0 = arith.cmpi eq, %arg3, %c0_i32 : i32
    %1 = arith.extui %0 : i1 to i32
    %c0_i32_0 = arith.constant 0 : i32
    %2 = arith.cmpi ne, %1, %c0_i32_0 : i32
    scf.if %2 {
      %cst_29 = arith.constant 0.000000e+00 : f32
      %26 = vector.broadcast %cst_29 : f32 to vector<16x128xf32>
      %c0_30 = arith.constant 0 : index
      %c0_31 = arith.constant 0 : index
      %27 = vector.load %arg9[%c0_30, %c0_31] : memref<16x128xf32, #tpu.memory_space<vmem>>, vector<16x128xf32>
      tpu.vector_store %arg9[%c0_30, %c0_31], %26 {strides = array<i32>} : memref<16x128xf32, #tpu.memory_space<vmem>>, vector<16x128xf32>,
    } else {
    }
    %c0 = arith.constant 0 : index
    %c0_1 = arith.constant 0 : index
    %3 = vector.load %arg9[%c0, %c0_1] : memref<16x128xf32, #tpu.memory_space<vmem>>, vector<16x128xf32>
    %c0_2 = arith.constant 0 : index
    %c0_3 = arith.constant 0 : index
    %c0_4 = arith.constant 0 : index
    %c0_5 = arith.constant 0 : index
    %4 = vector.load %arg4[%c0_2, %c0_3, %c0_4, %c0_5] : memref<1x1x18x128xbf16, #tpu.memory_space<vmem>>, vector<1x1x16x128xbf16>
    %5 = vector.shape_cast %4 : vector<1x1x16x128xbf16> to vector<16x128xbf16>
    %c0_6 = arith.constant 0 : index
    %c0_7 = arith.constant 0 : index
    %c0_8 = arith.constant 0 : index
    %c0_9 = arith.constant 0 : index
    %6 = vector.load %arg5[%c0_6, %c0_7, %c0_8, %c0_9] : memref<1x3x128x128xbf16, #tpu.memory_space<vmem>>, vector<1x1x128x128xbf16>
    %7 = vector.shape_cast %6 : vector<1x1x128x128xbf16> to vector<128x128xbf16>
    %cst = arith.constant dense<0.000000e+00> : vector<16x128xf32>
    %8 = tpu.matmul %5, %7, %cst {dimension_numbers = #tpu.dot_dimension_numbers<[1], [0], [0], [1], [0, 0, 1, 1], [], []>} : vector<16x128xbf16>, vector<128x128xbf16>, vector<16x128xf32> -> vector<16x128xf32>
    %9 = arith.addf %3, %8 : vector<16x128xf32>
    %c0_10 = arith.constant 0 : index
    %c0_11 = arith.constant 0 : index
    %c1 = arith.constant 1 : index
    %c0_12 = arith.constant 0 : index
    %10 = vector.load %arg4[%c0_10, %c0_11, %c1, %c0_12] : memref<1x1x18x128xbf16, #tpu.memory_space<vmem>>, vector<1x1x16x128xbf16>
    %11 = vector.shape_cast %10 : vector<1x1x16x128xbf16> to vector<16x128xbf16>
    %c0_13 = arith.constant 0 : index
    %c1_14 = arith.constant 1 : index
    %c0_15 = arith.constant 0 : index
    %c0_16 = arith.constant 0 : index
    %12 = vector.load %arg5[%c0_13, %c1_14, %c0_15, %c0_16] : memref<1x3x128x128xbf16, #tpu.memory_space<vmem>>, vector<1x1x128x128xbf16>
    %13 = vector.shape_cast %12 : vector<1x1x128x128xbf16> to vector<128x128xbf16>
    %cst_17 = arith.constant dense<0.000000e+00> : vector<16x128xf32>
    %14 = tpu.matmul %11, %13, %cst_17 {dimension_numbers = #tpu.dot_dimension_numbers<[1], [0], [0], [1], [0, 0, 1, 1], [], []>} : vector<16x128xbf16>, vector<128x128xbf16>, vector<16x128xf32> -> vector<16x128xf32>
    %15 = arith.addf %9, %14 : vector<16x128xf32>
    %c0_18 = arith.constant 0 : index
    %c0_19 = arith.constant 0 : index
    %c2 = arith.constant 2 : index
    %c0_20 = arith.constant 0 : index
    %16 = vector.load %arg4[%c0_18, %c0_19, %c2, %c0_20] : memref<1x1x18x128xbf16, #tpu.memory_space<vmem>>, vector<1x1x16x128xbf16>
    %17 = vector.shape_cast %16 : vector<1x1x16x128xbf16> to vector<16x128xbf16>
    %c0_21 = arith.constant 0 : index
    %c2_22 = arith.constant 2 : index
    %c0_23 = arith.constant 0 : index
    %c0_24 = arith.constant 0 : index
    %18 = vector.load %arg5[%c0_21, %c2_22, %c0_23, %c0_24] : memref<1x3x128x128xbf16, #tpu.memory_space<vmem>>, vector<1x1x128x128xbf16>
    %19 = vector.shape_cast %18 : vector<1x1x128x128xbf16> to vector<128x128xbf16>
    %cst_25 = arith.constant dense<0.000000e+00> : vector<16x128xf32>
    %20 = tpu.matmul %17, %19, %cst_25 {dimension_numbers = #tpu.dot_dimension_numbers<[1], [0], [0], [1], [0, 0, 1, 1], [], []>} : vector<16x128xbf16>, vector<128x128xbf16>, vector<16x128xf32> -> vector<16x128xf32>
    %21 = arith.addf %15, %20 : vector<16x128xf32>
    %c0_26 = arith.constant 0 : index
    %c0_27 = arith.constant 0 : index
    %22 = vector.load %arg9[%c0_26, %c0_27] : memref<16x128xf32, #tpu.memory_space<vmem>>, vector<16x128xf32>
    tpu.vector_store %arg9[%c0_26, %c0_27], %21 {strides = array<i32>} : memref<16x128xf32, #tpu.memory_space<vmem>>, vector<16x128xf32>,
    %c2_i32 = arith.constant 2 : i32
    %23 = arith.cmpi eq, %arg3, %c2_i32 : i32
    %24 = arith.extui %23 : i1 to i32
    %c0_i32_28 = arith.constant 0 : i32
    %25 = arith.cmpi ne, %24, %c0_i32_28 : i32
    scf.if %25 {
      %c0_29 = arith.constant 0 : index
      %c0_30 = arith.constant 0 : index
      %26 = vector.load %arg9[%c0_29, %c0_30] : memref<16x128xf32, #tpu.memory_space<vmem>>, vector<16x128xf32>
      %c0_31 = arith.constant 0 : index
      %c0_32 = arith.constant 0 : index
      %27 = vector.load %arg6[%c0_31, %c0_32] : memref<1x128xf32, #tpu.memory_space<vmem>>, vector<1x128xf32>
      %28 = vector.broadcast %27 : vector<1x128xf32> to vector<16x128xf32>
      %29 = arith.addf %26, %28 : vector<16x128xf32>
      %30 = arith.truncf %29 : vector<16x128xf32> to vector<16x128xbf16>
      %c0_33 = arith.constant 0 : index
      %c0_34 = arith.constant 0 : index
      %c0_35 = arith.constant 0 : index
      %c0_36 = arith.constant 0 : index
      %31 = vector.load %arg7[%c0_33, %c0_34, %c0_35, %c0_36] : memref<1x1x16x128xbf16, #tpu.memory_space<vmem>>, vector<1x1x16x128xbf16>
      %32 = vector.shape_cast %31 : vector<1x1x16x128xbf16> to vector<16x128xbf16>
      %33 = vector.shape_cast %30 : vector<16x128xbf16> to vector<1x1x16x128xbf16>
      tpu.vector_store %arg7[%c0_33, %c0_34, %c0_35, %c0_36], %33 {strides = array<i32>} : memref<1x1x16x128xbf16, #tpu.memory_space<vmem>>, vector<1x1x16x128xbf16>,
      %cst_37 = arith.constant dense<0.000000e+00> : vector<128xf32>
      %34 = vector.multi_reduction <add>, %29, %cst_37 [0] : vector<16x128xf32> to vector<128xf32>
      %35 = vector.shape_cast %34 : vector<128xf32> to vector<1x128xf32>
      %36 = arith.mulf %29, %29 : vector<16x128xf32>
      %cst_38 = arith.constant dense<0.000000e+00> : vector<128xf32>
      %37 = vector.multi_reduction <add>, %36, %cst_38 [0] : vector<16x128xf32> to vector<128xf32>
      %38 = vector.shape_cast %37 : vector<128xf32> to vector<1x128xf32>
      %39 = tpu.concatenate %35, %38 in 0 : vector<1x128xf32>, vector<1x128xf32> -> vector<2x128xf32>
      %c0_39 = arith.constant 0 : index
      %c0_40 = arith.constant 0 : index
      %c0_41 = arith.constant 0 : index
      %c0_42 = arith.constant 0 : index
      %40 = vector.load %arg8[%c0_39, %c0_40, %c0_41, %c0_42] : memref<1x1x2x128xf32, #tpu.memory_space<vmem>>, vector<1x1x2x128xf32>
      %41 = vector.shape_cast %40 : vector<1x1x2x128xf32> to vector<2x128xf32>
      %42 = vector.shape_cast %39 : vector<2x128xf32> to vector<1x1x2x128xf32>
      tpu.vector_store %arg8[%c0_39, %c0_40, %c0_41, %c0_42], %42 {strides = array<i32>} : memref<1x1x2x128xf32, #tpu.memory_space<vmem>>, vector<1x1x2x128xf32>,
    } else {
    }
    return
  }
  func.func @transform_0(%arg0: i32, %arg1: i32, %arg2: i32, %arg3: i32) -> (i32, i32, i32, i32) {
    %0 = arith.addi %arg1, %arg3 : i32
    %c0_i32 = arith.constant 0 : i32
    %c0_i32_0 = arith.constant 0 : i32
    %c0_i32_1 = arith.constant 0 : i32
    return %arg0, %0, %c0_i32, %c0_i32_0 : i32, i32, i32, i32
  }
  func.func @transform_1(%arg0: i32, %arg1: i32, %arg2: i32, %arg3: i32) -> (i32, i32, i32, i32) {
    %c0_i32 = arith.constant 0 : i32
    %c0_i32_0 = arith.constant 0 : i32
    %c0_i32_1 = arith.constant 0 : i32
    return %arg3, %c0_i32, %c0_i32_0, %arg2 : i32, i32, i32, i32
  }
  func.func @transform_2(%arg0: i32, %arg1: i32, %arg2: i32, %arg3: i32) -> (i32, i32) {
    %c0_i32 = arith.constant 0 : i32
    %c0_i32_0 = arith.constant 0 : i32
    return %c0_i32, %arg2 : i32, i32
  }
  func.func @transform_3(%arg0: i32, %arg1: i32, %arg2: i32, %arg3: i32) -> (i32, i32, i32, i32) {
    %c0_i32 = arith.constant 0 : i32
    %c0_i32_0 = arith.constant 0 : i32
    return %arg0, %arg1, %c0_i32, %arg2 : i32, i32, i32, i32
  }
  func.func @transform_4(%arg0: i32, %arg1: i32, %arg2: i32, %arg3: i32) -> (i32, i32, i32, i32) {
    %c0_i32 = arith.constant 0 : i32
    %c0_i32_0 = arith.constant 0 : i32
    return %arg0, %arg1, %c0_i32, %arg2 : i32, i32, i32, i32
  }
}

module attributes {stable_mosaic.version = 11 : i64} {
  func.func @_bn_lrelu_kernel(%arg0: i32, %arg1: i32, %arg2: i32, %arg3: memref<1x1x16x128xbf16, #tpu.memory_space<vmem>>, %arg4: memref<1x128xf32, #tpu.memory_space<vmem>>, %arg5: memref<1x128xf32, #tpu.memory_space<vmem>>, %arg6: memref<1x1x16x128xbf16, #tpu.memory_space<vmem>>) attributes {dimension_semantics = [#tpu.dimension_semantics<parallel>, #tpu.dimension_semantics<parallel>, #tpu.dimension_semantics<parallel>], iteration_bounds = array<i64: 2, 16, 1>, scalar_prefetch = 0 : i64, scratch_operands = 0 : i64, tpu.core_type = #tpu.core_type<tc>, window_params = [{transform_indices = @transform_0, window_bounds = array<i64: 1, 1, 16, 128>}, {transform_indices = @transform_1, window_bounds = array<i64: 1, 128>}, {transform_indices = @transform_2, window_bounds = array<i64: 1, 128>}, {transform_indices = @transform_3, window_bounds = array<i64: 1, 1, 16, 128>}]} {
    %c0 = arith.constant 0 : index
    %c0_0 = arith.constant 0 : index
    %c0_1 = arith.constant 0 : index
    %c0_2 = arith.constant 0 : index
    %0 = vector.load %arg3[%c0, %c0_0, %c0_1, %c0_2] : memref<1x1x16x128xbf16, #tpu.memory_space<vmem>>, vector<1x1x16x128xbf16>
    %1 = vector.shape_cast %0 : vector<1x1x16x128xbf16> to vector<16x128xbf16>
    %2 = arith.extf %1 : vector<16x128xbf16> to vector<16x128xf32>
    %c0_3 = arith.constant 0 : index
    %c0_4 = arith.constant 0 : index
    %3 = vector.load %arg4[%c0_3, %c0_4] : memref<1x128xf32, #tpu.memory_space<vmem>>, vector<1x128xf32>
    %4 = vector.broadcast %3 : vector<1x128xf32> to vector<16x128xf32>
    %5 = arith.mulf %2, %4 : vector<16x128xf32>
    %c0_5 = arith.constant 0 : index
    %c0_6 = arith.constant 0 : index
    %6 = vector.load %arg5[%c0_5, %c0_6] : memref<1x128xf32, #tpu.memory_space<vmem>>, vector<1x128xf32>
    %7 = vector.broadcast %6 : vector<1x128xf32> to vector<16x128xf32>
    %8 = arith.addf %5, %7 : vector<16x128xf32>
    %cst = arith.constant 0.000000e+00 : f32
    %9 = vector.broadcast %cst : f32 to vector<16x128xf32>
    %10 = arith.cmpf oge, %8, %9 : vector<16x128xf32>
    %cst_7 = arith.constant 2.000000e-01 : f32
    %11 = vector.broadcast %cst_7 : f32 to vector<16x128xf32>
    %12 = arith.mulf %11, %8 : vector<16x128xf32>
    %13 = arith.select %10, %8, %12 : vector<16x128xi1>, vector<16x128xf32>
    %14 = arith.truncf %13 : vector<16x128xf32> to vector<16x128xbf16>
    %c0_8 = arith.constant 0 : index
    %c0_9 = arith.constant 0 : index
    %c0_10 = arith.constant 0 : index
    %c0_11 = arith.constant 0 : index
    %15 = vector.load %arg6[%c0_8, %c0_9, %c0_10, %c0_11] : memref<1x1x16x128xbf16, #tpu.memory_space<vmem>>, vector<1x1x16x128xbf16>
    %16 = vector.shape_cast %15 : vector<1x1x16x128xbf16> to vector<16x128xbf16>
    %17 = vector.shape_cast %14 : vector<16x128xbf16> to vector<1x1x16x128xbf16>
    tpu.vector_store %arg6[%c0_8, %c0_9, %c0_10, %c0_11], %17 {strides = array<i32>} : memref<1x1x16x128xbf16, #tpu.memory_space<vmem>>, vector<1x1x16x128xbf16>,
    return
  }
  func.func @transform_0(%arg0: i32, %arg1: i32, %arg2: i32) -> (i32, i32, i32, i32) {
    %c0_i32 = arith.constant 0 : i32
    %c0_i32_0 = arith.constant 0 : i32
    return %arg0, %arg1, %c0_i32, %arg2 : i32, i32, i32, i32
  }
  func.func @transform_1(%arg0: i32, %arg1: i32, %arg2: i32) -> (i32, i32) {
    %c0_i32 = arith.constant 0 : i32
    %c0_i32_0 = arith.constant 0 : i32
    return %c0_i32, %arg2 : i32, i32
  }
  func.func @transform_2(%arg0: i32, %arg1: i32, %arg2: i32) -> (i32, i32) {
    %c0_i32 = arith.constant 0 : i32
    %c0_i32_0 = arith.constant 0 : i32
    return %c0_i32, %arg2 : i32, i32
  }
  func.func @transform_3(%arg0: i32, %arg1: i32, %arg2: i32) -> (i32, i32, i32, i32) {
    %c0_i32 = arith.constant 0 : i32
    %c0_i32_0 = arith.constant 0 : i32
    return %arg0, %arg1, %c0_i32, %arg2 : i32, i32, i32, i32
  }
}

module attributes {stable_mosaic.version = 11 : i64} {
  func.func @_conv_row_kernel(%arg0: i32, %arg1: i32, %arg2: i32, %arg3: i32, %arg4: memref<1x1x18x128xbf16, #tpu.memory_space<vmem>>, %arg5: memref<1x3x128x128xbf16, #tpu.memory_space<vmem>>, %arg6: memref<1x128xf32, #tpu.memory_space<vmem>>, %arg7: memref<1x1x16x128xbf16, #tpu.memory_space<vmem>>, %arg8: memref<1x1x16x128xbf16, #tpu.memory_space<vmem>>, %arg9: memref<1x1x2x128xf32, #tpu.memory_space<vmem>>, %arg10: memref<16x128xf32, #tpu.memory_space<vmem>>) attributes {dimension_semantics = [#tpu.dimension_semantics<parallel>, #tpu.dimension_semantics<parallel>, #tpu.dimension_semantics<parallel>, #tpu.dimension_semantics<arbitrary>], iteration_bounds = array<i64: 2, 16, 1, 3>, scalar_prefetch = 0 : i64, scratch_operands = 1 : i64, tpu.core_type = #tpu.core_type<tc>, window_params = [{transform_indices = @transform_0, window_bounds = array<i64: 1, 1, 18, 128>}, {transform_indices = @transform_1, window_bounds = array<i64: 1, 3, 128, 128>}, {transform_indices = @transform_2, window_bounds = array<i64: 1, 128>}, {transform_indices = @transform_3, window_bounds = array<i64: 1, 1, 16, 128>}, {transform_indices = @transform_4, window_bounds = array<i64: 1, 1, 16, 128>}, {transform_indices = @transform_5, window_bounds = array<i64: 1, 1, 2, 128>}]} {
    %c0_i32 = arith.constant 0 : i32
    %0 = arith.cmpi eq, %arg3, %c0_i32 : i32
    %1 = arith.extui %0 : i1 to i32
    %c0_i32_0 = arith.constant 0 : i32
    %2 = arith.cmpi ne, %1, %c0_i32_0 : i32
    scf.if %2 {
      %cst_29 = arith.constant 0.000000e+00 : f32
      %26 = vector.broadcast %cst_29 : f32 to vector<16x128xf32>
      %c0_30 = arith.constant 0 : index
      %c0_31 = arith.constant 0 : index
      %27 = vector.load %arg10[%c0_30, %c0_31] : memref<16x128xf32, #tpu.memory_space<vmem>>, vector<16x128xf32>
      tpu.vector_store %arg10[%c0_30, %c0_31], %26 {strides = array<i32>} : memref<16x128xf32, #tpu.memory_space<vmem>>, vector<16x128xf32>,
    } else {
    }
    %c0 = arith.constant 0 : index
    %c0_1 = arith.constant 0 : index
    %3 = vector.load %arg10[%c0, %c0_1] : memref<16x128xf32, #tpu.memory_space<vmem>>, vector<16x128xf32>
    %c0_2 = arith.constant 0 : index
    %c0_3 = arith.constant 0 : index
    %c0_4 = arith.constant 0 : index
    %c0_5 = arith.constant 0 : index
    %4 = vector.load %arg4[%c0_2, %c0_3, %c0_4, %c0_5] : memref<1x1x18x128xbf16, #tpu.memory_space<vmem>>, vector<1x1x16x128xbf16>
    %5 = vector.shape_cast %4 : vector<1x1x16x128xbf16> to vector<16x128xbf16>
    %c0_6 = arith.constant 0 : index
    %c0_7 = arith.constant 0 : index
    %c0_8 = arith.constant 0 : index
    %c0_9 = arith.constant 0 : index
    %6 = vector.load %arg5[%c0_6, %c0_7, %c0_8, %c0_9] : memref<1x3x128x128xbf16, #tpu.memory_space<vmem>>, vector<1x1x128x128xbf16>
    %7 = vector.shape_cast %6 : vector<1x1x128x128xbf16> to vector<128x128xbf16>
    %cst = arith.constant dense<0.000000e+00> : vector<16x128xf32>
    %8 = tpu.matmul %5, %7, %cst {dimension_numbers = #tpu.dot_dimension_numbers<[1], [0], [0], [1], [0, 0, 1, 1], [], []>} : vector<16x128xbf16>, vector<128x128xbf16>, vector<16x128xf32> -> vector<16x128xf32>
    %9 = arith.addf %3, %8 : vector<16x128xf32>
    %c0_10 = arith.constant 0 : index
    %c0_11 = arith.constant 0 : index
    %c1 = arith.constant 1 : index
    %c0_12 = arith.constant 0 : index
    %10 = vector.load %arg4[%c0_10, %c0_11, %c1, %c0_12] : memref<1x1x18x128xbf16, #tpu.memory_space<vmem>>, vector<1x1x16x128xbf16>
    %11 = vector.shape_cast %10 : vector<1x1x16x128xbf16> to vector<16x128xbf16>
    %c0_13 = arith.constant 0 : index
    %c1_14 = arith.constant 1 : index
    %c0_15 = arith.constant 0 : index
    %c0_16 = arith.constant 0 : index
    %12 = vector.load %arg5[%c0_13, %c1_14, %c0_15, %c0_16] : memref<1x3x128x128xbf16, #tpu.memory_space<vmem>>, vector<1x1x128x128xbf16>
    %13 = vector.shape_cast %12 : vector<1x1x128x128xbf16> to vector<128x128xbf16>
    %cst_17 = arith.constant dense<0.000000e+00> : vector<16x128xf32>
    %14 = tpu.matmul %11, %13, %cst_17 {dimension_numbers = #tpu.dot_dimension_numbers<[1], [0], [0], [1], [0, 0, 1, 1], [], []>} : vector<16x128xbf16>, vector<128x128xbf16>, vector<16x128xf32> -> vector<16x128xf32>
    %15 = arith.addf %9, %14 : vector<16x128xf32>
    %c0_18 = arith.constant 0 : index
    %c0_19 = arith.constant 0 : index
    %c2 = arith.constant 2 : index
    %c0_20 = arith.constant 0 : index
    %16 = vector.load %arg4[%c0_18, %c0_19, %c2, %c0_20] : memref<1x1x18x128xbf16, #tpu.memory_space<vmem>>, vector<1x1x16x128xbf16>
    %17 = vector.shape_cast %16 : vector<1x1x16x128xbf16> to vector<16x128xbf16>
    %c0_21 = arith.constant 0 : index
    %c2_22 = arith.constant 2 : index
    %c0_23 = arith.constant 0 : index
    %c0_24 = arith.constant 0 : index
    %18 = vector.load %arg5[%c0_21, %c2_22, %c0_23, %c0_24] : memref<1x3x128x128xbf16, #tpu.memory_space<vmem>>, vector<1x1x128x128xbf16>
    %19 = vector.shape_cast %18 : vector<1x1x128x128xbf16> to vector<128x128xbf16>
    %cst_25 = arith.constant dense<0.000000e+00> : vector<16x128xf32>
    %20 = tpu.matmul %17, %19, %cst_25 {dimension_numbers = #tpu.dot_dimension_numbers<[1], [0], [0], [1], [0, 0, 1, 1], [], []>} : vector<16x128xbf16>, vector<128x128xbf16>, vector<16x128xf32> -> vector<16x128xf32>
    %21 = arith.addf %15, %20 : vector<16x128xf32>
    %c0_26 = arith.constant 0 : index
    %c0_27 = arith.constant 0 : index
    %22 = vector.load %arg10[%c0_26, %c0_27] : memref<16x128xf32, #tpu.memory_space<vmem>>, vector<16x128xf32>
    tpu.vector_store %arg10[%c0_26, %c0_27], %21 {strides = array<i32>} : memref<16x128xf32, #tpu.memory_space<vmem>>, vector<16x128xf32>,
    %c2_i32 = arith.constant 2 : i32
    %23 = arith.cmpi eq, %arg3, %c2_i32 : i32
    %24 = arith.extui %23 : i1 to i32
    %c0_i32_28 = arith.constant 0 : i32
    %25 = arith.cmpi ne, %24, %c0_i32_28 : i32
    scf.if %25 {
      %c0_29 = arith.constant 0 : index
      %c0_30 = arith.constant 0 : index
      %26 = vector.load %arg10[%c0_29, %c0_30] : memref<16x128xf32, #tpu.memory_space<vmem>>, vector<16x128xf32>
      %c0_31 = arith.constant 0 : index
      %c0_32 = arith.constant 0 : index
      %27 = vector.load %arg6[%c0_31, %c0_32] : memref<1x128xf32, #tpu.memory_space<vmem>>, vector<1x128xf32>
      %28 = vector.broadcast %27 : vector<1x128xf32> to vector<16x128xf32>
      %29 = arith.addf %26, %28 : vector<16x128xf32>
      %c0_33 = arith.constant 0 : index
      %c0_34 = arith.constant 0 : index
      %c0_35 = arith.constant 0 : index
      %c0_36 = arith.constant 0 : index
      %30 = vector.load %arg7[%c0_33, %c0_34, %c0_35, %c0_36] : memref<1x1x16x128xbf16, #tpu.memory_space<vmem>>, vector<1x1x16x128xbf16>
      %31 = vector.shape_cast %30 : vector<1x1x16x128xbf16> to vector<16x128xbf16>
      %32 = arith.extf %31 : vector<16x128xbf16> to vector<16x128xf32>
      %33 = arith.addf %29, %32 : vector<16x128xf32>
      %34 = arith.truncf %33 : vector<16x128xf32> to vector<16x128xbf16>
      %c0_37 = arith.constant 0 : index
      %c0_38 = arith.constant 0 : index
      %c0_39 = arith.constant 0 : index
      %c0_40 = arith.constant 0 : index
      %35 = vector.load %arg8[%c0_37, %c0_38, %c0_39, %c0_40] : memref<1x1x16x128xbf16, #tpu.memory_space<vmem>>, vector<1x1x16x128xbf16>
      %36 = vector.shape_cast %35 : vector<1x1x16x128xbf16> to vector<16x128xbf16>
      %37 = vector.shape_cast %34 : vector<16x128xbf16> to vector<1x1x16x128xbf16>
      tpu.vector_store %arg8[%c0_37, %c0_38, %c0_39, %c0_40], %37 {strides = array<i32>} : memref<1x1x16x128xbf16, #tpu.memory_space<vmem>>, vector<1x1x16x128xbf16>,
      %cst_41 = arith.constant dense<0.000000e+00> : vector<128xf32>
      %38 = vector.multi_reduction <add>, %33, %cst_41 [0] : vector<16x128xf32> to vector<128xf32>
      %39 = vector.shape_cast %38 : vector<128xf32> to vector<1x128xf32>
      %40 = arith.mulf %33, %33 : vector<16x128xf32>
      %cst_42 = arith.constant dense<0.000000e+00> : vector<128xf32>
      %41 = vector.multi_reduction <add>, %40, %cst_42 [0] : vector<16x128xf32> to vector<128xf32>
      %42 = vector.shape_cast %41 : vector<128xf32> to vector<1x128xf32>
      %43 = tpu.concatenate %39, %42 in 0 : vector<1x128xf32>, vector<1x128xf32> -> vector<2x128xf32>
      %c0_43 = arith.constant 0 : index
      %c0_44 = arith.constant 0 : index
      %c0_45 = arith.constant 0 : index
      %c0_46 = arith.constant 0 : index
      %44 = vector.load %arg9[%c0_43, %c0_44, %c0_45, %c0_46] : memref<1x1x2x128xf32, #tpu.memory_space<vmem>>, vector<1x1x2x128xf32>
      %45 = vector.shape_cast %44 : vector<1x1x2x128xf32> to vector<2x128xf32>
      %46 = vector.shape_cast %43 : vector<2x128xf32> to vector<1x1x2x128xf32>
      tpu.vector_store %arg9[%c0_43, %c0_44, %c0_45, %c0_46], %46 {strides = array<i32>} : memref<1x1x2x128xf32, #tpu.memory_space<vmem>>, vector<1x1x2x128xf32>,
    } else {
    }
    return
  }
  func.func @transform_0(%arg0: i32, %arg1: i32, %arg2: i32, %arg3: i32) -> (i32, i32, i32, i32) {
    %0 = arith.addi %arg1, %arg3 : i32
    %c0_i32 = arith.constant 0 : i32
    %c0_i32_0 = arith.constant 0 : i32
    %c0_i32_1 = arith.constant 0 : i32
    return %arg0, %0, %c0_i32, %c0_i32_0 : i32, i32, i32, i32
  }
  func.func @transform_1(%arg0: i32, %arg1: i32, %arg2: i32, %arg3: i32) -> (i32, i32, i32, i32) {
    %c0_i32 = arith.constant 0 : i32
    %c0_i32_0 = arith.constant 0 : i32
    %c0_i32_1 = arith.constant 0 : i32
    return %arg3, %c0_i32, %c0_i32_0, %arg2 : i32, i32, i32, i32
  }
  func.func @transform_2(%arg0: i32, %arg1: i32, %arg2: i32, %arg3: i32) -> (i32, i32) {
    %c0_i32 = arith.constant 0 : i32
    %c0_i32_0 = arith.constant 0 : i32
    return %c0_i32, %arg2 : i32, i32
  }
  func.func @transform_3(%arg0: i32, %arg1: i32, %arg2: i32, %arg3: i32) -> (i32, i32, i32, i32) {
    %c0_i32 = arith.constant 0 : i32
    %c0_i32_0 = arith.constant 0 : i32
    return %arg0, %arg1, %c0_i32, %arg2 : i32, i32, i32, i32
  }
  func.func @transform_4(%arg0: i32, %arg1: i32, %arg2: i32, %arg3: i32) -> (i32, i32, i32, i32) {
    %c0_i32 = arith.constant 0 : i32
    %c0_i32_0 = arith.constant 0 : i32
    return %arg0, %arg1, %c0_i32, %arg2 : i32, i32, i32, i32
  }
  func.func @transform_5(%arg0: i32, %arg1: i32, %arg2: i32, %arg3: i32) -> (i32, i32, i32, i32) {
    %c0_i32 = arith.constant 0 : i32
    %c0_i32_0 = arith.constant 0 : i32
    return %arg0, %arg1, %c0_i32, %arg2 : i32, i32, i32, i32
  }
}

module attributes {stable_mosaic.version = 11 : i64} {
  func.func @_conv_row_kernel(%arg0: i32, %arg1: i32, %arg2: i32, %arg3: i32, %arg4: memref<1x1x20x128xbf16, #tpu.memory_space<vmem>>, %arg5: memref<1x5x128x128xbf16, #tpu.memory_space<vmem>>, %arg6: memref<1x128xf32, #tpu.memory_space<vmem>>, %arg7: memref<1x1x16x128xf32, #tpu.memory_space<vmem>>, %arg8: memref<1x1x2x128xf32, #tpu.memory_space<vmem>>, %arg9: memref<16x128xf32, #tpu.memory_space<vmem>>) attributes {dimension_semantics = [#tpu.dimension_semantics<parallel>, #tpu.dimension_semantics<parallel>, #tpu.dimension_semantics<parallel>, #tpu.dimension_semantics<arbitrary>], iteration_bounds = array<i64: 2, 16, 1, 5>, scalar_prefetch = 0 : i64, scratch_operands = 1 : i64, tpu.core_type = #tpu.core_type<tc>, window_params = [{transform_indices = @transform_0, window_bounds = array<i64: 1, 1, 20, 128>}, {transform_indices = @transform_1, window_bounds = array<i64: 1, 5, 128, 128>}, {transform_indices = @transform_2, window_bounds = array<i64: 1, 128>}, {transform_indices = @transform_3, window_bounds = array<i64: 1, 1, 16, 128>}, {transform_indices = @transform_4, window_bounds = array<i64: 1, 1, 2, 128>}]} {
    %c0_i32 = arith.constant 0 : i32
    %0 = arith.cmpi eq, %arg3, %c0_i32 : i32
    %1 = arith.extui %0 : i1 to i32
    %c0_i32_0 = arith.constant 0 : i32
    %2 = arith.cmpi ne, %1, %c0_i32_0 : i32
    scf.if %2 {
      %cst_45 = arith.constant 0.000000e+00 : f32
      %38 = vector.broadcast %cst_45 : f32 to vector<16x128xf32>
      %c0_46 = arith.constant 0 : index
      %c0_47 = arith.constant 0 : index
      %39 = vector.load %arg9[%c0_46, %c0_47] : memref<16x128xf32, #tpu.memory_space<vmem>>, vector<16x128xf32>
      tpu.vector_store %arg9[%c0_46, %c0_47], %38 {strides = array<i32>} : memref<16x128xf32, #tpu.memory_space<vmem>>, vector<16x128xf32>,
    } else {
    }
    %c0 = arith.constant 0 : index
    %c0_1 = arith.constant 0 : index
    %3 = vector.load %arg9[%c0, %c0_1] : memref<16x128xf32, #tpu.memory_space<vmem>>, vector<16x128xf32>
    %c0_2 = arith.constant 0 : index
    %c0_3 = arith.constant 0 : index
    %c0_4 = arith.constant 0 : index
    %c0_5 = arith.constant 0 : index
    %4 = vector.load %arg4[%c0_2, %c0_3, %c0_4, %c0_5] : memref<1x1x20x128xbf16, #tpu.memory_space<vmem>>, vector<1x1x16x128xbf16>
    %5 = vector.shape_cast %4 : vector<1x1x16x128xbf16> to vector<16x128xbf16>
    %c0_6 = arith.constant 0 : index
    %c0_7 = arith.constant 0 : index
    %c0_8 = arith.constant 0 : index
    %c0_9 = arith.constant 0 : index
    %6 = vector.load %arg5[%c0_6, %c0_7, %c0_8, %c0_9] : memref<1x5x128x128xbf16, #tpu.memory_space<vmem>>, vector<1x1x128x128xbf16>
    %7 = vector.shape_cast %6 : vector<1x1x128x128xbf16> to vector<128x128xbf16>
    %cst = arith.constant dense<0.000000e+00> : vector<16x128xf32>
    %8 = tpu.matmul %5, %7, %cst {dimension_numbers = #tpu.dot_dimension_numbers<[1], [0], [0], [1], [0, 0, 1, 1], [], []>} : vector<16x128xbf16>, vector<128x128xbf16>, vector<16x128xf32> -> vector<16x128xf32>
    %9 = arith.addf %3, %8 : vector<16x128xf32>
    %c0_10 = arith.constant 0 : index
    %c0_11 = arith.constant 0 : index
    %c1 = arith.constant 1 : index
    %c0_12 = arith.constant 0 : index
    %10 = vector.load %arg4[%c0_10, %c0_11, %c1, %c0_12] : memref<1x1x20x128xbf16, #tpu.memory_space<vmem>>, vector<1x1x16x128xbf16>
    %11 = vector.shape_cast %10 : vector<1x1x16x128xbf16> to vector<16x128xbf16>
    %c0_13 = arith.constant 0 : index
    %c1_14 = arith.constant 1 : index
    %c0_15 = arith.constant 0 : index
    %c0_16 = arith.constant 0 : index
    %12 = vector.load %arg5[%c0_13, %c1_14, %c0_15, %c0_16] : memref<1x5x128x128xbf16, #tpu.memory_space<vmem>>, vector<1x1x128x128xbf16>
    %13 = vector.shape_cast %12 : vector<1x1x128x128xbf16> to vector<128x128xbf16>
    %cst_17 = arith.constant dense<0.000000e+00> : vector<16x128xf32>
    %14 = tpu.matmul %11, %13, %cst_17 {dimension_numbers = #tpu.dot_dimension_numbers<[1], [0], [0], [1], [0, 0, 1, 1], [], []>} : vector<16x128xbf16>, vector<128x128xbf16>, vector<16x128xf32> -> vector<16x128xf32>
    %15 = arith.addf %9, %14 : vector<16x128xf32>
    %c0_18 = arith.constant 0 : index
    %c0_19 = arith.constant 0 : index
    %c2 = arith.constant 2 : index
    %c0_20 = arith.constant 0 : index
    %16 = vector.load %arg4[%c0_18, %c0_19, %c2, %c0_20] : memref<1x1x20x128xbf16, #tpu.memory_space<vmem>>, vector<1x1x16x128xbf16>
    %17 = vector.shape_cast %16 : vector<1x1x16x128xbf16> to vector<16x128xbf16>
    %c0_21 = arith.constant 0 : index
    %c2_22 = arith.constant 2 : index
    %c0_23 = arith.constant 0 : index
    %c0_24 = arith.constant 0 : index
    %18 = vector.load %arg5[%c0_21, %c2_22, %c0_23, %c0_24] : memref<1x5x128x128xbf16, #tpu.memory_space<vmem>>, vector<1x1x128x128xbf16>
    %19 = vector.shape_cast %18 : vector<1x1x128x128xbf16> to vector<128x128xbf16>
    %cst_25 = arith.constant dense<0.000000e+00> : vector<16x128xf32>
    %20 = tpu.matmul %17, %19, %cst_25 {dimension_numbers = #tpu.dot_dimension_numbers<[1], [0], [0], [1], [0, 0, 1, 1], [], []>} : vector<16x128xbf16>, vector<128x128xbf16>, vector<16x128xf32> -> vector<16x128xf32>
    %21 = arith.addf %15, %20 : vector<16x128xf32>
    %c0_26 = arith.constant 0 : index
    %c0_27 = arith.constant 0 : index
    %c3 = arith.constant 3 : index
    %c0_28 = arith.constant 0 : index
    %22 = vector.load %arg4[%c0_26, %c0_27, %c3, %c0_28] : memref<1x1x20x128xbf16, #tpu.memory_space<vmem>>, vector<1x1x16x128xbf16>
    %23 = vector.shape_cast %22 : vector<1x1x16x128xbf16> to vector<16x128xbf16>
    %c0_29 = arith.constant 0 : index
    %c3_30 = arith.constant 3 : index
    %c0_31 = arith.constant 0 : index
    %c0_32 = arith.constant 0 : index
    %24 = vector.load %arg5[%c0_29, %c3_30, %c0_31, %c0_32] : memref<1x5x128x128xbf16, #tpu.memory_space<vmem>>, vector<1x1x128x128xbf16>
    %25 = vector.shape_cast %24 : vector<1x1x128x128xbf16> to vector<128x128xbf16>
    %cst_33 = arith.constant dense<0.000000e+00> : vector<16x128xf32>
    %26 = tpu.matmul %23, %25, %cst_33 {dimension_numbers = #tpu.dot_dimension_numbers<[1], [0], [0], [1], [0, 0, 1, 1], [], []>} : vector<16x128xbf16>, vector<128x128xbf16>, vector<16x128xf32> -> vector<16x128xf32>
    %27 = arith.addf %21, %26 : vector<16x128xf32>
    %c0_34 = arith.constant 0 : index
    %c0_35 = arith.constant 0 : index
    %c4 = arith.constant 4 : index
    %c0_36 = arith.constant 0 : index
    %28 = vector.load %arg4[%c0_34, %c0_35, %c4, %c0_36] : memref<1x1x20x128xbf16, #tpu.memory_space<vmem>>, vector<1x1x16x128xbf16>
    %29 = vector.shape_cast %28 : vector<1x1x16x128xbf16> to vector<16x128xbf16>
    %c0_37 = arith.constant 0 : index
    %c4_38 = arith.constant 4 : index
    %c0_39 = arith.constant 0 : index
    %c0_40 = arith.constant 0 : index
    %30 = vector.load %arg5[%c0_37, %c4_38, %c0_39, %c0_40] : memref<1x5x128x128xbf16, #tpu.memory_space<vmem>>, vector<1x1x128x128xbf16>
    %31 = vector.shape_cast %30 : vector<1x1x128x128xbf16> to vector<128x128xbf16>
    %cst_41 = arith.constant dense<0.000000e+00> : vector<16x128xf32>
    %32 = tpu.matmul %29, %31, %cst_41 {dimension_numbers = #tpu.dot_dimension_numbers<[1], [0], [0], [1], [0, 0, 1, 1], [], []>} : vector<16x128xbf16>, vector<128x128xbf16>, vector<16x128xf32> -> vector<16x128xf32>
    %33 = arith.addf %27, %32 : vector<16x128xf32>
    %c0_42 = arith.constant 0 : index
    %c0_43 = arith.constant 0 : index
    %34 = vector.load %arg9[%c0_42, %c0_43] : memref<16x128xf32, #tpu.memory_space<vmem>>, vector<16x128xf32>
    tpu.vector_store %arg9[%c0_42, %c0_43], %33 {strides = array<i32>} : memref<16x128xf32, #tpu.memory_space<vmem>>, vector<16x128xf32>,
    %c4_i32 = arith.constant 4 : i32
    %35 = arith.cmpi eq, %arg3, %c4_i32 : i32
    %36 = arith.extui %35 : i1 to i32
    %c0_i32_44 = arith.constant 0 : i32
    %37 = arith.cmpi ne, %36, %c0_i32_44 : i32
    scf.if %37 {
      %c0_45 = arith.constant 0 : index
      %c0_46 = arith.constant 0 : index
      %38 = vector.load %arg9[%c0_45, %c0_46] : memref<16x128xf32, #tpu.memory_space<vmem>>, vector<16x128xf32>
      %c0_47 = arith.constant 0 : index
      %c0_48 = arith.constant 0 : index
      %39 = vector.load %arg6[%c0_47, %c0_48] : memref<1x128xf32, #tpu.memory_space<vmem>>, vector<1x128xf32>
      %40 = vector.broadcast %39 : vector<1x128xf32> to vector<16x128xf32>
      %41 = arith.addf %38, %40 : vector<16x128xf32>
      %c0_49 = arith.constant 0 : index
      %c0_50 = arith.constant 0 : index
      %c0_51 = arith.constant 0 : index
      %c0_52 = arith.constant 0 : index
      %42 = vector.load %arg7[%c0_49, %c0_50, %c0_51, %c0_52] : memref<1x1x16x128xf32, #tpu.memory_space<vmem>>, vector<1x1x16x128xf32>
      %43 = vector.shape_cast %42 : vector<1x1x16x128xf32> to vector<16x128xf32>
      %44 = vector.shape_cast %41 : vector<16x128xf32> to vector<1x1x16x128xf32>
      tpu.vector_store %arg7[%c0_49, %c0_50, %c0_51, %c0_52], %44 {strides = array<i32>} : memref<1x1x16x128xf32, #tpu.memory_space<vmem>>, vector<1x1x16x128xf32>,
      %cst_53 = arith.constant dense<0.000000e+00> : vector<128xf32>
      %45 = vector.multi_reduction <add>, %41, %cst_53 [0] : vector<16x128xf32> to vector<128xf32>
      %46 = vector.shape_cast %45 : vector<128xf32> to vector<1x128xf32>
      %47 = arith.mulf %41, %41 : vector<16x128xf32>
      %cst_54 = arith.constant dense<0.000000e+00> : vector<128xf32>
      %48 = vector.multi_reduction <add>, %47, %cst_54 [0] : vector<16x128xf32> to vector<128xf32>
      %49 = vector.shape_cast %48 : vector<128xf32> to vector<1x128xf32>
      %50 = tpu.concatenate %46, %49 in 0 : vector<1x128xf32>, vector<1x128xf32> -> vector<2x128xf32>
      %c0_55 = arith.constant 0 : index
      %c0_56 = arith.constant 0 : index
      %c0_57 = arith.constant 0 : index
      %c0_58 = arith.constant 0 : index
      %51 = vector.load %arg8[%c0_55, %c0_56, %c0_57, %c0_58] : memref<1x1x2x128xf32, #tpu.memory_space<vmem>>, vector<1x1x2x128xf32>
      %52 = vector.shape_cast %51 : vector<1x1x2x128xf32> to vector<2x128xf32>
      %53 = vector.shape_cast %50 : vector<2x128xf32> to vector<1x1x2x128xf32>
      tpu.vector_store %arg8[%c0_55, %c0_56, %c0_57, %c0_58], %53 {strides = array<i32>} : memref<1x1x2x128xf32, #tpu.memory_space<vmem>>, vector<1x1x2x128xf32>,
    } else {
    }
    return
  }
  func.func @transform_0(%arg0: i32, %arg1: i32, %arg2: i32, %arg3: i32) -> (i32, i32, i32, i32) {
    %0 = arith.addi %arg1, %arg3 : i32
    %c0_i32 = arith.constant 0 : i32
    %c0_i32_0 = arith.constant 0 : i32
    %c0_i32_1 = arith.constant 0 : i32
    return %arg0, %0, %c0_i32, %c0_i32_0 : i32, i32, i32, i32
  }
  func.func @transform_1(%arg0: i32, %arg1: i32, %arg2: i32, %arg3: i32) -> (i32, i32, i32, i32) {
    %c0_i32 = arith.constant 0 : i32
    %c0_i32_0 = arith.constant 0 : i32
    %c0_i32_1 = arith.constant 0 : i32
    return %arg3, %c0_i32, %c0_i32_0, %arg2 : i32, i32, i32, i32
  }
  func.func @transform_2(%arg0: i32, %arg1: i32, %arg2: i32, %arg3: i32) -> (i32, i32) {
    %c0_i32 = arith.constant 0 : i32
    %c0_i32_0 = arith.constant 0 : i32
    return %c0_i32, %arg2 : i32, i32
  }
  func.func @transform_3(%arg0: i32, %arg1: i32, %arg2: i32, %arg3: i32) -> (i32, i32, i32, i32) {
    %c0_i32 = arith.constant 0 : i32
    %c0_i32_0 = arith.constant 0 : i32
    return %arg0, %arg1, %c0_i32, %arg2 : i32, i32, i32, i32
  }
  func.func @transform_4(%arg0: i32, %arg1: i32, %arg2: i32, %arg3: i32) -> (i32, i32, i32, i32) {
    %c0_i32 = arith.constant 0 : i32
    %c0_i32_0 = arith.constant 0 : i32
    return %arg0, %arg1, %c0_i32, %arg2 : i32, i32, i32, i32
  }
}

</mosaic_0001>

<bundles_post_ra>
// kernel: introvae_generator_forward.15
= control target key start
LH: loop header
LB: loop body
LE: loop exit
PB: predicated region body
PF: predicated region fallthrough
CT: control target
= control target key end

     0   :  { %8 = vsyncpa [#allocation3], 0  ;;  %s276_s12 = smov [#allocation2]   ;;  %s313_s0 = inlined_call_operand.vmem [shape: bf16[2,128], index: 0, kind: input, shape index: {}]   ;;  %s314_s1 = inlined_call_operand.hbm [shape: bf16[128,256], index: 1, kind: input, shape index: {}]   ;;  %s315_s2 = inlined_call_operand.vmem [shape: f32[1,256], index: 2, kind: input, shape index: {}]   ;;  %s316_s3 = inlined_call_operand.vmem [shape: bf16[2,256], index: 3, kind: output, shape index: {}]  }
   0x1   :  { %s16_s13 = sshll.u32 %s276_s12, 4  ;;  %s17_s13 = int_to_ptr.vmem [resolvable:$true] %s16_s13 }
   0x2   :  { %s262_s14 = scalar_lea.vmem %s17_s13, 2048  ;;  %p267_p1 = scmp.lt.s32.totalorder %s17_s13, %s17_s13 }
   0x3   :  { %p263_p0 = scmp.ne.s32.totalorder %s17_s13, %s262_s14  ;;  %p268_p2 = scmp.lt.s32.totalorder %s262_s14, %s262_s14 }
   0x5   :  { %p269_p3 = por %p268_p2, %p267_p1 }
   0x7   :  { %p270_p4 = pnand %p269_p3, %p263_p0 }
   0x9   :  { %273 = shalt.err (!%p270_p4)
}
   0xa   :  { %s277_s15 = smov 128   ;;  %s278_s16 = smov 8  }
   0xb   :  { %22 = dma.hbm_to_vmem [thread:$0]  %s314_s1, 2048, %s17_s13, [#allocation3], %s277_s15, %s277_s15, %s278_s16  }
   0xc   :  { %274 = dma.done.wait [#allocation3], 2048  }
   0xd   :  { %275 = vsyncadd [#allocation3], 4294965248  ;;  %v279_v0 = vmov 0   ;;  %v230_v1 = vld [vmem:[#allocation2 + $0x74] ss:$8 sps:$4 sm:$0xff]   ;;  %v48_v18 = vlaneseq }
   0xe   :  { %170 = vmatprep.mubr.bf16.mxu0 %v279_v0  ;;  %v232_v2 = vld [vmem:[#allocation2 + $0x70] ss:$8 sps:$4 sm:$0xff]   ;;  %138 = vmatprep.subr.bf16.mxu0 %v230_v1  ;;  %v233_v3 = vld [vmem:[#allocation2 + $0x64] ss:$8 sps:$4 sm:$0xff]   ;;  %v235_v4 = vld [vmem:[#allocation2 + $0x60] ss:$8 sps:$4 sm:$0xff]  }
   0xf   :  { %139 = vmatpush1.bf16.msra.mxu0 %v232_v2  ;;  %v236_v5 = vld [vmem:[#allocation2 + $0x54] ss:$8 sps:$4 sm:$0xff]   ;;  %v238_v6 = vld [vmem:[#allocation2 + $0x50] ss:$8 sps:$4 sm:$0xff]   ;;  %v239_v7 = vld [vmem:[#allocation2 + $0x44] ss:$8 sps:$4 sm:$0xff]  }
  0x10   :  { %140 = vmatprep.subr.bf16.mxu0 %v233_v3  ;;  %v241_v8 = vld [vmem:[#allocation2 + $0x40] ss:$8 sps:$4 sm:$0xff]   ;;  %v242_v9 = vld [vmem:[#allocation2 + $0x34] ss:$8 sps:$4 sm:$0xff]   ;;  %v244_v10 = vld [vmem:[#allocation2 + $0x30] ss:$8 sps:$4 sm:$0xff]  }
  0x11   :  { %v245_v11 = vld [vmem:[#allocation2 + $0x24] ss:$8 sps:$4 sm:$0xff]   ;;  %v247_v12 = vld [vmem:[#allocation2 + $0x20] ss:$8 sps:$4 sm:$0xff]   ;;  %v248_v13 = vld [vmem:[#allocation2 + $0x14] ss:$8 sps:$4 sm:$0xff]  }
  0x12   :  { %v250_v14 = vld [vmem:[#allocation2 + $0x10] ss:$8 sps:$4 sm:$0xff]   ;;  %v251_v15 = vld [vmem:[#allocation2 + $0x4] ss:$8 sps:$4 sm:$0xff]   ;;  %v253_v16 = vld [vmem:[#allocation2] ss:$8 sps:$4 sm:$0xff]  }
  0x13   :  { %141 = vmatpush1.bf16.msra.mxu0 %v235_v4  ;;  %v29_v17 = vld [vmem:[%s313_s0] sm:$0x1]  ;;  %v49_v19 = vshrl.u32 %v48_v18, 7  ;;  %v280_v24 = vmov 1966171168  }
  0x14   :  { %142 = vmatprep.subr.bf16.mxu0 %v236_v5  ;;  %v46_v21 = vld [vmem:[%s315_s2] sm:$0x3]  ;;  %v187_v25 = vunpack.c.l.s4 %v280_v24 }
  0x15   :  { %v50_v20 = vsub.s32 0, %v49_v19  ;;  %v54_v22 = vsub.s32 1, %v49_v19 }
  0x16   :  { %v188_v29 = vunpack.c.0.s8 %v187_v25 }
  0x17   :  { %143 = vmatpush1.bf16.msra.mxu0 %v238_v6  ;;  %v51_v23 = vrot.slane %v46_v21, %v50_v20  ;;  %v55_v26 = vrot.slane %v46_v21, %v54_v22 }
  0x18   :  { %144 = vmatprep.subr.bf16.mxu0 %v239_v7  ;;  %v191_v35 = vsub.s32 %v188_v29, %v49_v19 }
  0x1b   :  { %145 = vmatpush1.bf16.msra.mxu0 %v241_v8 }
  0x1c   :  { %146 = vmatprep.subr.bf16.mxu0 %v242_v9 }
  0x1f   :  { %147 = vmatpush1.bf16.msra.mxu0 %v244_v10 }
  0x20   :  { %148 = vmatprep.subr.bf16.mxu0 %v245_v11 }
  0x23   :  { %149 = vmatpush1.bf16.msra.mxu0 %v247_v12 }
  0x24   :  { %150 = vmatprep.subr.bf16.mxu0 %v248_v13 }
  0x27   :  { %151 = vmatpush1.bf16.msra.mxu0 %v250_v14 }
  0x28   :  { %152 = vmatprep.subr.bf16.mxu0 %v251_v15 }
  0x2b   :  { %153 = vmatpush1.bf16.msra.mxu0 %v253_v16 }
  0x2e   :  { %171 = vmatmul.mubr.bf16.vlgmr.msra.gmra.mxu0 %v29_v17 }
  0xee   :  { %v172_v27 = vpop.f32.mrf.mxu0 }
  0xef   :  { %v173_v28 = vadd.f32 %v172_v27, %v51_v23 }
  0xf0   :  { %v174_v30 = vpop.f32.mrf.mxu0 }
  0xf1   :  { %v175_v31 = vadd.f32 %v174_v30, %v55_v26  ;;  %v179_v33 = vmax.f32 %v173_v28, 0.0 }
  0xf2   :  { %v176_v32 = vpop.f32.mrf.mxu0 }
  0xf3   :  { %v180_v34 = vmax.f32 %v175_v31, 0.0 }
  0xf4   :  { %v177_v36 = vpop.f32.mrf.mxu0 }
  0xf5   :  { %v223_v37 = vpack.c.bf16 %v180_v34, %v179_v33 }
  0xf7   :  { %v192_v38 = vrot.slane %v223_v37, %v191_v35 }
  0xf9   :  { %224 = vst.sshfl [vmem:[%s316_s3] sm:$0x5 pattern:$0x73625140] %v192_v38 }
  0xfa   :  { %206 = vsyncpa [#allocation3], 1 }

// kernel: introvae_generator_forward.17
= control target key start
LH: loop header
LB: loop body
LE: loop exit
PB: predicated region body
PF: predicated region fallthrough
CT: control target
= control target key end

     0   :  { %s521_s12 = smov 0   ;;  %s523_s13 = smov 0   ;;  %s575_s0 = inlined_call_operand.vmem [shape: bf16[2,4,4,128], index: 0, kind: input, shape index: {}]   ;;  %s576_s1 = inlined_call_operand.vmem [shape: f32[1,128], index: 1, kind: input, shape index: {}]   ;;  %s577_s2 = inlined_call_operand.vmem [shape: f32[1,128], index: 2, kind: input, shape index: {}]   ;;  %s578_s3 = inlined_call_operand.vmem [shape: bf16[2,4,4,128], index: 3, kind: output, shape index: {}]  }
   0x1   :  { %s525_s14 = smov 0   ;;  %s527_s15 = smov 0  }
   0x2   :  { %s529_s16 = smov 0  }
   0x3 LB: > { %s28_s17 = sadd.s32 1, %s491_s14  ;;  %s32_s18 = sadd.s32 1, %s495_s15  ;;  %s499_s16 = sphi %s529_s16, %s13_s16   ;;  %s495_s15 = sphi %s527_s15, %s582_s15   ;;  %s491_s14 = sphi %s525_s14, %s581_s14   ;;  %s487_s13 = sphi %s523_s13, %s580_s13   ;;  %s483_s12 = sphi %s521_s12, %s579_s12  }
   0x4   : > { %p30_p0 = scmp.ge.s32.totalorder %s28_s17, 4  ;;  %p412_p1 = scmp.ge.s32.totalorder %s499_s16, 1 }
   0x5   : > { %p186_p2 = scmp.lt.s32.totalorder %s499_s16, 9 }
   0x6   : > { %s584_s17 = smov (%p30_p0, %s28_s17), 0  ;;  %s586_s18 = smov (!%p30_p0, %s32_s18), %s495_s15 }
   0x7   : > { %p187_p3 = pnand %p412_p1, %p186_p2  ;;  %p34_p4 = scmp.ge.s32.totalorder %s586_s18, 2 }
   0x8   : > { %p228_p5 = scmp.lt.s32.totalorder (!%p187_p3), %s487_s13, 1  ;;  %p230_p6 = scmp.lt.s32.totalorder (!%p187_p3), %s483_s12, 3 }
   0x9   : > { %s588_s18 = smov (%p34_p4, %s586_s18), 0  ;;  %190 = sbr.rel (%p187_p3) target bundleno = 32 (0x20), region = 32 }
   0xe   : > { %s590_s13 = smov (!%p228_p5, %s487_s13), 1  ;;  %s592_s12 = smov (!%p230_p6, %s483_s12), 3  ;;  %v417_v1 = vld [vmem:[%s576_s1] ss:$0 sm:$0xff] }
   0xf   : > { %s413_s19 = sshll.u32 %s590_s13, 2  ;;  %v418_v3 = vld [vmem:[%s577_s2] ss:$0 sm:$0xff] }
  0x10   : > { %s236_s20 = sadd.s32 %s413_s19, %s592_s12 }
  0x11   : > { %s414_s21 = sshll.u32 %s236_s20, 1 }
  0x12   : > { %s238_s24 = scalar_lea.vmem %s575_s0, %s414_s21  ;;  %s255_s4 = scalar_lea.vmem %s578_s3, %s414_s21 }
  0x13   : > { %v256_v0 = vld [vmem:[%s238_s24] sm:$0x3] }
  0x14   : > { %v257_v2 = vunpack.c.l.bf16 %v256_v0 }
  0x16   : > { %v265_v4 = vmul.f32 %v417_v1, %v257_v2 }
  0x18   : > { %v273_v5 = vadd.f32 %v418_v3, %v265_v4 }
  0x1a   : > { %vm274_vm0 = vcmp.ge.f32.partialorder %v273_v5, 0.0  ;;  %v275_v6 = vmul.f32 0.2, %v273_v5 }
  0x1c   : > { %v276_v7 = vsel %vm274_vm0, %v273_v5, %v275_v6 }
  0x1d   : > { %v277_v8 = vpack.c.bf16 %v276_v7, %v276_v7 }
  0x1f   : > { %278 = vst [vmem:[%s255_s4] sm:$0x3] %v277_v8 }
  0x20 PF: > { %s13_s16 = sadd.s32 1, %s499_s16   ;;  %s579_s12 = smov %s491_s14 }
  0x21   : > { %p10_p7 = scmp.ge.s32.totalorder %s13_s16, 10   ;;  %s580_s13 = smov %s495_s15 }
  0x22   : > { %s581_s14 = smov %s584_s17  ;;  %s582_s15 = smov %s588_s18 }
  0x23   :  { %12 = sbr.rel (!%p10_p7) target bundleno = 3 (0x3), region = 68 }

// kernel: introvae_generator_forward.16
= control target key start
LH: loop header
LB: loop body
LE: loop exit
PB: predicated region body
PF: predicated region fallthrough
CT: control target
= control target key end

     0   :  { %s1564_s0 = inlined_call_operand.vmem [shape: bf16[2,6,6,128], index: 0, kind: input, shape index: {}]   ;;  %s1565_s1 = inlined_call_operand.hbm [shape: bf16[3,3,128,128], index: 1, kind: input, shape index: {}]   ;;  %s1566_s2 = inlined_call_operand.vmem [shape: f32[1,128], index: 2, kind: input, shape index: {}]   ;;  %s1567_s3 = inlined_call_operand.vmem [shape: bf16[2,4,4,128], index: 3, kind: output, shape index: {0}]   ;;  %s1568_s4 = inlined_call_operand.vmem [shape: f32[2,4,2,128], index: 4, kind: output, shape index: {1}]  }
   0x1   :  { %1570 = sst [smem:[#allocation9_spill]] %s1565_s1 }
   0x2   :  { %10 = vsyncpa [#allocation4], 0 }
   0x3   :  { %12 = vsyncpa [#allocation4 + $0x1], 0  ;;  %s1349_s15 = smov 0   ;;  %s1351_s16 = smov 0  }
   0x4   :  { %s1353_s17 = smov 0   ;;  %s1355_s18 = smov 0  }
   0x5   :  { %s1357_s19 = smov 0   ;;  %s1359_s20 = smov 0  }
   0x6   :  { %s1361_s21 = smov 0   ;;  %s1363_s22 = smov 0  }
   0x7   :  { %s1365_s23 = smov 0   ;;  %s1367_s24 = smov 0  }
   0x8 LB: > { %s922_s25 = sadd.s32 4294967295, %s1316_s24   ;;  %s33_s26 = sadd.s32 1, %s1304_s21  ;;  %s1316_s24 = sphi %s1367_s24, %s18_s24   ;;  %s1312_s23 = sphi %s1365_s23, %s1588_s23   ;;  %s1308_s22 = sphi %s1363_s22, %s1587_s22   ;;  %s1304_s21 = sphi %s1361_s21, %s1586_s21   ;;  %s1300_s20 = sphi %s1359_s20, %s1585_s20   ;;  %s1296_s19 = sphi %s1357_s19, %s1584_s19   ;;  %s1292_s18 = sphi %s1355_s18, %s1583_s18   ;;  %s1288_s17 = sphi %s1353_s17, %s1582_s17   ;;  %s1284_s16 = sphi %s1351_s16, %s1581_s16   ;;  %s1280_s15 = sphi %s1349_s15, %s1580_s15  }
   0x9   : > { %p34_p0 = scmp.ge.s32.totalorder %s33_s26, 3  ;;  %s40_s27 = sadd.s32 1, %s1308_s22 }
   0xa   : > { %s44_s28 = sadd.s32 1, %s1312_s23  ;;  %s83_s29 = sadd.s32 1, %s1288_s17 }
   0xb   : > { %s1590_s26 = smov (%p34_p0, %s33_s26), 0  ;;  %s1592_s27 = smov (!%p34_p0, %s40_s27), %s1308_s22 }
   0xc   : > { %1571 = sst [smem:[#allocation6_spill]] %s1590_s26  ;;  %s78_s30 = ssub.s32 %s1304_s21, %s1590_s26 }
   0xd   : > { %p90_p1 = scmp.ne.s32.totalorder %s1288_s17, %s1284_s16  ;;  %p42_p2 = scmp.ge.s32.totalorder %s1592_s27, 4 }
   0xe   : > { %p81_p3 = scmp.eq.s32.totalorder %s78_s30, 0  ;;  %p91_p4 = scmp.eq.s32.totalorder %s1316_s24, 0 }
   0xf   : > { %p96_p5 = scmp.ne.s32.totalorder %s1284_s16, %s1280_s15  ;;  %s1594_s27 = smov (%p42_p2, %s1592_s27), 0 }
  0x10   : > { %1572 = sst [smem:[#allocation7_spill]] %s1594_s27  ;;  %s1596_s28 = smov (!%p42_p2, %s44_s28), %s1312_s23 }
  0x11   : > { %s1418_s5 = scalar_select %p81_p3, %s1288_s17, %s83_s29  }
  0x12   : > { %p46_p6 = scmp.ge.s32.totalorder %s1596_s28, 2  ;;  %p92_p7 = por %p91_p4, %p90_p1 }
  0x13   : > { %p97_p8 = scmp.eq.s32.totalorder %s922_s25, 0  ;;  %p1094_p10 = scmp.lt.s32.totalorder %s1316_s24, 24 }
  0x14   : > { %s1598_s28 = smov (%p46_p6, %s1596_s28), 0  ;;  %s225_s7 = sand.u32 1, %s1288_s17  }
  0x15   : > { %1573 = sst [smem:[#allocation8_spill]] %s1598_s28  ;;  %p1422_p9 = por %p97_p8, %p96_p5 }
  0x16   : > { %s1085_s8 = smul.u32 3072, %s1304_s21  ;;  %s1575_s1 = sld [smem:[#allocation9_spill]] }
  0x17   : > { %s1084_s9 = smul.u32 192, %s225_s7  ;;  %p1432_p11 = pnand %p1094_p10, %p92_p7 }
  0x18   : > { %s226_s25 = scalar_lea.sflag [#allocation4], %s225_s7  ;;  %s1318_s30 = smov [#allocation3]  }
  0x19   : > { %s229_s14 = scalar_lea.vmem [#allocation3], %s1084_s9  ;;  %p1208_p12 = pneg %p1432_p11 }
  0x1a   : > { %s237_s15 = sshll.u32 %s229_s14, 4  ;;  %s1224_s28 = sshll.u32 %s1318_s30, 4  ;;  %s238_s15 = int_to_ptr.vmem [resolvable:$true] %s237_s15  ;;  %s1225_s28 = int_to_ptr.vmem [resolvable:$false] %s1224_s28 }
  0x1b   : > { %s1219_s29 = scalar_lea.vmem %s238_s15, 3072  ;;  %s1226_s10 = scalar_lea.vmem %s1225_s28, 6144 }
  0x1c   : > { %s236_s12 = scalar_lea.hbm %s1575_s1, %s1085_s8  ;;  %p1220_p13 = scmp.ne.s32.totalorder %s238_s15, %s1219_s29 }
  0x1d   : > { %p1227_p2 = scmp.lt.s32.totalorder %s238_s15, %s1225_s28  ;;  %p1228_p3 = scmp.lt.s32.totalorder %s1226_s10, %s1219_s29 }
  0x1e   : > { %p1222_p0 = pnand %p1220_p13, %p1208_p12 }
  0x1f   : > { %p1229_p4 = por %p1228_p3, %p1227_p2 }
  0x20   : > { %p1223_p1 = pneg %p1222_p0 }
  0x22   : > { %p1230_p5 = pnand %p1229_p4, %p1223_p1 }
  0x24   : > { %1233 = shalt.err (!%p1230_p5)
}
  0x25   : > { %s1319_s8 = smov 64   ;;  %s1320_s7 = smov 4  }
  0x26   : > { %1093 = dma.hbm_to_vmem [thread:$0]  (!%p1432_p11), %s236_s12, 3072, %s238_s15, %s226_s25, %s1319_s8, %s1319_s8, %s1320_s7  }
  0x27   : > { %p928_p6 = scmp.ge.s32.totalorder %s1316_s24, 1  ;;  %p245_p7 = scmp.lt.s32.totalorder %s1316_s24, 25 }
  0x29   : > { %p246_p8 = pnand %p928_p6, %p245_p7 }
  0x2a   : > { %s251_s9 = sand.u32 (!%p246_p8), 1, %s1284_s16  }
  0x2b   : > { %249 = sbr.rel (%p246_p8) target bundleno = 351 (0x15f), region = 32  ;;  %s252_s28 = scalar_lea.sflag (!%p246_p8), [#allocation4], %s251_s9 }
  0x2c   : > { %s1086_s11 = smul.u32 (!%p246_p8), 192, %s251_s9 }
  0x2e   : > { %s1443_s14 = scalar_lea.vmem (!%p246_p8), [#allocation3], %s1086_s11 }
  0x30   : > { %1275 = dma.done.wait (%p1422_p9), %s252_s28, 3072  }
  0x31   : > { %1277 = vsyncadd (%p1422_p9), %s252_s28, 4294964224  ;;  %s309_s12 = sadd.s32 %s1292_s18, %s1296_s19  ;;  %p310_p10 = scmp.lt.s32.totalorder %s1300_s20, 1 }
  0x32   : > { %p312_p11 = scmp.lt.s32.totalorder %s309_s12, 5  ;;  %p324_p12 = scmp.lt.s32.totalorder %s1296_s19, 3 }
  0x33   : > { %s1600_s20 = smov (!%p310_p10, %s1300_s20), 1  ;;  %p934_p9 = scmp.ne.s32.totalorder %s1292_s18, 0 }
  0x34   : > { %s1602_s12 = smov (!%p312_p11, %s309_s12), 5  ;;  %s1087_s13 = smul.u32 6, %s1600_s20 }
  0x35   : > { %s930_s15 = sshll.u32 %s1600_s20, 2  ;;  %s1604_s19 = smov (!%p324_p12, %s1296_s19), 3 }
  0x36   : > { %s315_s25 = sadd.s32 %s1087_s13, %s1602_s12  ;;  %s330_s30 = sadd.s32 %s930_s15, %s1604_s19 }
  0x37   : > { %s929_s29 = sshll.u32 %s315_s25, 2  ;;  %s931_s7 = sshll.u32 %s330_s30, 1 }
  0x38   : > { %s1458_s8 = scalar_lea.vmem %s1564_s0, %s929_s29  ;;  %s1463_s28 = scalar_lea.vmem %s1567_s3, %s931_s7 }
  0x39   : > { %s1468_s26 = scalar_lea.vmem %s1568_s4, %s931_s7  ;;  %348 = sbr.rel (%p934_p9) target bundleno = 64 (0x40), region = 40 }
  0x3e   : > { %v1321_v0 = vmov 0.0  }
  0x3f   : > { %349 = vst [vmem:[#allocation2] sm:$0xf] %v1321_v0 }
  0x40 PF: > { %v1180_v1 = vld [vmem:[%s1443_s14 + $0x38] sm:$0xff]   ;;  %v1322_v2 = vmov 0.0   ;;  %v1182_v4 = vld [vmem:[%s1443_s14 + $0x30] sm:$0xff]   ;;  %vm1323_vm0 = vmmov 0   ;;  %v1184_v6 = vld [vmem:[%s1443_s14 + $0x28] sm:$0xff]   ;;  %p993_p13 = scmp.ne.s32.totalorder %s1292_s18, 2 }
  0x41   : > { %1024 = vmatprep.subr.bf16.mxu0 %v1322_v2  ;;  %1044 = vmatprep.subr.bf16.mxu1 %v1322_v2  ;;  %v1181_v3 = vld [vmem:[%s1443_s14 + $0x78] sm:$0xff]   ;;  %v1183_v5 = vld [vmem:[%s1443_s14 + $0x70] sm:$0xff]   ;;  %v1185_v7 = vld [vmem:[%s1443_s14 + $0x68] sm:$0xff]  }
  0x42   : > { %1025 = vmatpush3.bf16.msra.mxu0 %v1180_v1  ;;  %1040 = vmatprep.mubr.msk.bf16.mxu0 %vm1323_vm0, %v1322_v2  ;;  %v1186_v8 = vld [vmem:[%s1443_s14 + $0x20] sm:$0xff]   ;;  %v1188_v10 = vld [vmem:[%s1443_s14 + $0x18] sm:$0xff]   ;;  %v1190_v13 = vld [vmem:[%s1443_s14 + $0x10] sm:$0xff]  }
  0x43   : > { %1026 = vmatprep.subr.bf16.mxu0 %v1322_v2  ;;  %1045 = vmatpush3.bf16.msra.mxu1 %v1181_v3  ;;  %v1187_v9 = vld [vmem:[%s1443_s14 + $0x60] sm:$0xff]   ;;  %v1189_v11 = vld [vmem:[%s1443_s14 + $0x58] sm:$0xff]   ;;  %v1191_v14 = vld [vmem:[%s1443_s14 + $0x50] sm:$0xff]  }
  0x44   : > { %1046 = vmatprep.subr.bf16.mxu1 %v1322_v2  ;;  %1060 = vmatprep.mubr.msk.bf16.mxu1 %vm1323_vm0, %v1322_v2  ;;  %v1197_v12 = vld [vmem:[%s1458_s8] ss:$0 sps:$4 sm:$0x77]   ;;  %v1192_v15 = vld [vmem:[%s1443_s14 + $0x8] sm:$0xff]   ;;  %v1194_v18 = vld [vmem:[%s1443_s14] sm:$0xff]  }
  0x45   : > { %v481_v16 = vshll.u32 %v1197_v12, 16  ;;  %v1193_v17 = vld [vmem:[%s1443_s14 + $0x48] sm:$0xff]   ;;  %v479_v19 = vshrl.u32 %v1197_v12, 16  ;;  %v1195_v21 = vld [vmem:[%s1443_s14 + $0x40] sm:$0xff]   ;;  %v351_v22 = vld [vmem:[%s1458_s8] sm:$0x3] }
  0x46   : > { %1027 = vmatpush3.bf16.msra.mxu0 %v1182_v4  ;;  %v1196_v23 = vld [vmem:[%s1443_s14 + $0xb8] sm:$0xff]   ;;  %v1198_v25 = vld [vmem:[%s1443_s14 + $0xb0] sm:$0xff]   ;;  %v1199_v26 = vld [vmem:[%s1443_s14 + $0xa8] sm:$0xff]  }
  0x47   : > { %1028 = vmatprep.subr.bf16.mxu0 %v1322_v2  ;;  %1047 = vmatpush3.bf16.msra.mxu1 %v1183_v5  ;;  %v483_v20 = vrot.slane %v481_v16, 1  ;;  %v1200_v27 = vld [vmem:[%s1443_s14 + $0xa0] sm:$0xff]   ;;  %v1201_v28 = vld [vmem:[%s1443_s14 + $0x98] sm:$0xff]   ;;  %v1202_v29 = vld [vmem:[%s1443_s14 + $0x90] sm:$0xff]  }
  0x48   : > { %1048 = vmatprep.subr.bf16.mxu1 %v1322_v2  ;;  %v1203_v30 = vld [vmem:[%s1443_s14 + $0x88] sm:$0xff]   ;;  %v1205_v31 = vld [vmem:[%s1458_s8] ss:$0 sps:$4 sm:$0x66]   ;;  %v1204_v32 = vld [vmem:[%s1443_s14 + $0x80] sm:$0xff]  }
  0x49   : > { %v484_v24 = vor.u32 %v483_v20, %v479_v19  ;;  %v596_v33 = vrot.slane %v1205_v31, 1  ;;  %v350_v42 = vld [vmem:[#allocation2] sm:$0xf] }
  0x4a   : > { %1029 = vmatpush3.bf16.msra.mxu0 %v1184_v6 }
  0x4b   : > { %1030 = vmatprep.subr.bf16.mxu0 %v1322_v2  ;;  %1049 = vmatpush3.bf16.msra.mxu1 %v1185_v7 }
  0x4c   : > { %1050 = vmatprep.subr.bf16.mxu1 %v1322_v2 }
  0x4e   : > { %1031 = vmatpush3.bf16.msra.mxu0 %v1186_v8 }
  0x4f   : > { %1032 = vmatprep.subr.bf16.mxu0 %v1322_v2  ;;  %1051 = vmatpush3.bf16.msra.mxu1 %v1187_v9 }
  0x50   : > { %1052 = vmatprep.subr.bf16.mxu1 %v1322_v2 }
  0x52   : > { %1033 = vmatpush3.bf16.msra.mxu0 %v1188_v10 }
  0x53   : > { %1034 = vmatprep.subr.bf16.mxu0 %v1322_v2  ;;  %1053 = vmatpush3.bf16.msra.mxu1 %v1189_v11 }
  0x54   : > { %1054 = vmatprep.subr.bf16.mxu1 %v1322_v2 }
  0x56   : > { %1035 = vmatpush3.bf16.msra.mxu0 %v1190_v13 }
  0x57   : > { %1036 = vmatprep.subr.bf16.mxu0 %v1322_v2  ;;  %1055 = vmatpush3.bf16.msra.mxu1 %v1191_v14 }
  0x58   : > { %1056 = vmatprep.subr.bf16.mxu1 %v1322_v2 }
  0x5a   : > { %1037 = vmatpush3.bf16.msra.mxu0 %v1192_v15 }
  0x5b   : > { %1038 = vmatprep.subr.bf16.mxu0 %v1322_v2  ;;  %1057 = vmatpush3.bf16.msra.mxu1 %v1193_v17 }
  0x5c   : > { %1058 = vmatprep.subr.bf16.mxu1 %v1322_v2 }
  0x5e   : > { %1039 = vmatpush3.bf16.msra.mxu0 %v1194_v18 }
  0x5f   : > { %1059 = vmatpush3.bf16.msra.mxu1 %v1195_v21  ;;  %1064 = vmatprep.subr.bf16.mxu0 %v1322_v2 }
  0x61   : > { %1041 = vmatmul.mubr.bf16.vlgmr.msra.gmra.mxu0 %v351_v22 }
  0x62   : > { %1065 = vmatpush3.bf16.msra.mxu0 %v1196_v23  ;;  %1061 = vmatmul.mubr.bf16.vlgmr.msra.gmra.mxu1 %v484_v24 }
  0x63   : > { %1066 = vmatprep.subr.bf16.mxu0 %v1322_v2  ;;  %1080 = vmatprep.mubr.msk.bf16.mxu0 %vm1323_vm0, %v1322_v2 }
  0x66   : > { %1067 = vmatpush3.bf16.msra.mxu0 %v1198_v25 }
  0x67   : > { %1068 = vmatprep.subr.bf16.mxu0 %v1322_v2 }
  0x6a   : > { %1069 = vmatpush3.bf16.msra.mxu0 %v1199_v26 }
  0x6b   : > { %1070 = vmatprep.subr.bf16.mxu0 %v1322_v2 }
  0x6e   : > { %1071 = vmatpush3.bf16.msra.mxu0 %v1200_v27 }
  0x6f   : > { %1072 = vmatprep.subr.bf16.mxu0 %v1322_v2 }
  0x72   : > { %1073 = vmatpush3.bf16.msra.mxu0 %v1201_v28 }
  0x73   : > { %1074 = vmatprep.subr.bf16.mxu0 %v1322_v2 }
  0x76   : > { %1075 = vmatpush3.bf16.msra.mxu0 %v1202_v29 }
  0x77   : > { %1076 = vmatprep.subr.bf16.mxu0 %v1322_v2 }
  0x7a   : > { %1077 = vmatpush3.bf16.msra.mxu0 %v1203_v30 }
  0x7b   : > { %1078 = vmatprep.subr.bf16.mxu0 %v1322_v2 }
  0x7e   : > { %1079 = vmatpush3.bf16.msra.mxu0 %v1204_v32 }
  0x81   : > { %1081 = vmatmul.mubr.bf16.vlgmr.msra.gmra.mxu0 %v596_v33 }
 0x121   : > { %v450_v34 = vpop.f32.mrf.mxu0 }
 0x122   : > { %v568_v35 = vpop.f32.mrf.mxu1  ;;  %v456_v43 = vadd.f32 %v450_v34, %v350_v42 }
 0x123   : > { %v1042_v36 = vpop.f32.mrf.mxu0 }
 0x124   : > { %v1062_v37 = vpop.f32.mrf.mxu1  ;;  %v574_v44 = vadd.f32 %v568_v35, %v456_v43 }
 0x125   : > { %v453_v38 = vpop.f32.mrf.mxu0 }
 0x126   : > { %v571_v39 = vpop.f32.mrf.mxu1 }
 0x127   : > { %v1043_v40 = vpop.f32.mrf.mxu0 }
 0x128   : > { %v1063_v41 = vpop.f32.mrf.mxu1 }
 0x141   : > { %v680_v45 = vpop.f32.mrf.mxu0 }
 0x142   : > { %v686_v46 = vadd.f32 %v680_v45, %v574_v44 }
 0x143   : > { %v1082_v47 = vpop.f32.mrf.mxu0  ;;  %691 = sbr.rel (%p993_p13) target bundleno = 351 (0x15f), region = 44 }
 0x144   : > { %687 = vst [vmem:[#allocation2] sm:$0xf] %v686_v46 }
 0x145   : > { %v683_v48 = vpop.f32.mrf.mxu0 }
 0x147   : > { %v1083_v49 = vpop.f32.mrf.mxu0 }
 0x148   : > { %v994_v51 = vld [vmem:[%s1566_s2] ss:$0 sm:$0xff]  ;;  %vm703_vm1 = vcmask 1043456   ;;  %vm719_vm2 = vcmask 1040384  }
 0x14b   : > { %v692_v50 = vld [vmem:[#allocation2] sm:$0xf] }
 0x14c   : > { %v700_v52 = vadd.f32 %v994_v51, %v692_v50 }
 0x14e   : > { %v701_v53 = vpack.c.bf16 %v700_v52, %v700_v52  ;;  %v704_v54 = vsel %vm703_vm1, %v700_v52, 0.0  ;;  %v711_v55 = vmul.f32 %v700_v52, %v700_v52 }
 0x14f   : > { %v705_v56 = vrot.slane %v704_v54, 4 }
 0x150   : > { %702 = vst [vmem:[%s1463_s28] sm:$0x3] %v701_v53  ;;  %v712_v57 = vsel %vm703_vm1, %v711_v55, 0.0 }
 0x151   : > { %v706_v58 = vadd.f32 %v705_v56, %v704_v54  ;;  %v713_v59 = vrot.slane %v712_v57, 4 }
 0x153   : > { %v707_v60 = vrot.slane %v706_v58, 2  ;;  %v714_v61 = vadd.f32 %v713_v59, %v712_v57 }
 0x155   : > { %v708_v62 = vadd.f32 %v707_v60, %v706_v58  ;;  %v715_v63 = vrot.slane %v714_v61, 2 }
 0x157   : > { %v709_v0 = vrot.slane %v708_v62, 1  ;;  %v716_v1 = vadd.f32 %v715_v63, %v714_v61 }
 0x159   : > { %v710_v2 = vadd.f32 %v709_v0, %v708_v62  ;;  %v717_v3 = vrot.slane %v716_v1, 1 }
 0x15b   : > { %v718_v4 = vadd.f32 %v717_v3, %v716_v1 }
 0x15d   : > { %v720_v5 = vsel %vm719_vm2, %v710_v2, %v718_v4 }
 0x15e   : > { %721 = vst [vmem:[%s1468_s26] sm:$0x3] %v720_v5 }
 0x15f PF: > { %s18_s24 = sadd.s32 1, %s1316_s24   ;;  %s1577_s27 = sld [smem:[#allocation6_spill]] }
 0x160   : > { %p15_p0 = scmp.ge.s32.totalorder %s18_s24, 26   ;;  %s1578_s14 = sld [smem:[#allocation7_spill]] }
 0x161   : > { %s1579_s12 = sld [smem:[#allocation8_spill]]  ;;  %s1580_s15 = smov %s1284_s16 }
 0x162   : > { %s1581_s16 = smov %s1288_s17  ;;  %s1582_s17 = smov %s1418_s5 }
 0x163   : > { %s1583_s18 = smov %s1304_s21  ;;  %s1584_s19 = smov %s1308_s22 }
 0x164   : > { %s1585_s20 = smov %s1312_s23  ;;  %17 = sbr.rel (!%p15_p0) target bundleno = 8 (0x8), region = 100 }
 0x165   : > { %s1586_s21 = smov %s1577_s27 }
 0x166   : > { %s1587_s22 = smov %s1578_s14 }
 0x167   : > { %s1588_s23 = smov %s1579_s12 }
 0x169   :  { %783 = vsyncpa [#allocation4], 1 }
 0x16a   :  { %785 = vsyncpa [#allocation4 + $0x1], 1 }

// kernel: introvae_generator_forward.18
= control target key start
LH: loop header
LB: loop body
LE: loop exit
PB: predicated region body
PF: predicated region fallthrough
CT: control target
= control target key end

     0   :  { %s1336_s18 = smov 0   ;;  %s1338_s19 = smov 0   ;;  %s1510_s0 = inlined_call_operand.vmem [shape: bf16[2,6,6,128], index: 0, kind: input, shape index: {}]   ;;  %s1511_s1 = inlined_call_operand.vmem [shape: bf16[3,3,128,128], index: 1, kind: input, shape index: {}]   ;;  %s1512_s2 = inlined_call_operand.vmem [shape: f32[1,128], index: 2, kind: input, shape index: {}]   ;;  %s1513_s3 = inlined_call_operand.vmem [shape: bf16[2,4,4,128], index: 3, kind: input, shape index: {}]   ;;  %s1514_s4 = inlined_call_operand.vmem [shape: bf16[2,4,4,128], index: 4, kind: output, shape index: {0}]   ;;  %s1515_s5 = inlined_call_operand.vmem [shape: f32[2,4,2,128], index: 5, kind: output, shape index: {1}]  }
   0x1   :  { %s1340_s20 = smov 0   ;;  %s1342_s21 = smov 0  }
   0x2   :  { %s1344_s22 = smov 0   ;;  %s1346_s23 = smov 0  }
   0x3   :  { %s1348_s24 = smov 0  }
   0x4 LB: > { %s31_s25 = sadd.s32 1, %s1289_s21  ;;  %s38_s26 = sadd.s32 1, %s1293_s22  ;;  %s1301_s24 = sphi %s1348_s24, %s16_s24   ;;  %s1297_s23 = sphi %s1346_s23, %s1521_s23   ;;  %s1293_s22 = sphi %s1344_s22, %s1520_s22   ;;  %s1289_s21 = sphi %s1342_s21, %s1519_s21   ;;  %s1285_s20 = sphi %s1340_s20, %s1518_s20   ;;  %s1281_s19 = sphi %s1338_s19, %s1517_s19   ;;  %s1277_s18 = sphi %s1336_s18, %s1516_s18  }
   0x5   : > { %p32_p0 = scmp.ge.s32.totalorder %s31_s25, 3  ;;  %p1001_p1 = scmp.ge.s32.totalorder %s1301_s24, 1 }
   0x6   : > { %p276_p2 = scmp.lt.s32.totalorder %s1301_s24, 25  ;;  %s42_s27 = sadd.s32 1, %s1297_s23 }
   0x7   : > { %s1523_s25 = smov (%p32_p0, %s31_s25), 0  ;;  %s1525_s26 = smov (!%p32_p0, %s38_s26), %s1293_s22 }
   0x8   : > { %p277_p3 = pnand %p1001_p1, %p276_p2  ;;  %p40_p4 = scmp.ge.s32.totalorder %s1525_s26, 4 }
   0x9   : > { %s347_s28 = sadd.s32 (!%p277_p3), %s1277_s18, %s1281_s19  ;;  %p348_p6 = scmp.lt.s32.totalorder (!%p277_p3), %s1285_s20, 1 }
   0xa   : > { %s1527_s26 = smov (%p40_p4, %s1525_s26), 0  ;;  %s1529_s27 = smov (!%p40_p4, %s42_s27), %s1297_s23 }
   0xb   : > { %p44_p5 = scmp.ge.s32.totalorder %s1529_s27, 2  ;;  %280 = sbr.rel (%p277_p3) target bundleno = 320 (0x140), region = 36 }
   0xc   : > { %p350_p7 = scmp.lt.s32.totalorder (!%p277_p3), %s347_s28, 5  ;;  %p357_p8 = scmp.lt.s32.totalorder (!%p277_p3), %s1277_s18, 2 }
   0xd   : > { %s1531_s27 = smov (%p44_p5, %s1529_s27), 0  ;;  %p370_p9 = scmp.lt.s32.totalorder (!%p277_p3), %s1281_s19, 3 }
   0xe   : > { %p1010_p10 = scmp.ne.s32.totalorder (!%p277_p3), %s1277_s18, 0 }
  0x10   : > { %s1533_s20 = smov (!%p348_p6, %s1285_s20), 1  ;;  %s1535_s28 = smov (!%p350_p7, %s347_s28), 5 }
  0x11   : > { %s1160_s29 = smul.u32 6, %s1533_s20  ;;  %s1004_s15 = sshll.u32 %s1533_s20, 2 }
  0x12   : > { %s358_s30 = scalar_select %p357_p8, %s1277_s18, 2 }
  0x13   : > { %s353_s6 = sadd.s32 %s1160_s29, %s1535_s28  ;;  %s1537_s19 = smov (!%p370_p9, %s1281_s19), 3 }
  0x14   : > { %s1002_s7 = sshll.u32 %s353_s6, 2  ;;  %s1161_s8 = smul.u32 192, %s358_s30 }
  0x15   : > { %s1390_s11 = scalar_lea.vmem %s1510_s0, %s1002_s7  ;;  %s376_s16 = sadd.s32 %s1004_s15, %s1537_s19 }
  0x16   : > { %s1395_s14 = scalar_lea.vmem %s1511_s1, %s1161_s8  ;;  %s1398_s17 = sshll.u32 %s376_s16, 1 }
  0x17   : > { %s378_s30 = scalar_lea.vmem %s1513_s3, %s1398_s17  ;;  %s389_s9 = scalar_lea.vmem %s1514_s4, %s1398_s17 }
  0x18   : > { %s400_s8 = scalar_lea.vmem %s1515_s5, %s1398_s17  ;;  %405 = sbr.rel (%p1010_p10) target bundleno = 31 (0x1f), region = 40 }
  0x1d   : > { %v1303_v0 = vmov 0.0  }
  0x1e   : > { %406 = vst [vmem:[#allocation2] sm:$0xf] %v1303_v0 }
  0x1f PF: > { %v1221_v1 = vld [vmem:[%s1395_s14 + $0x38] sm:$0xff]   ;;  %v1304_v2 = vmov 0.0   ;;  %v1223_v4 = vld [vmem:[%s1395_s14 + $0x30] sm:$0xff]   ;;  %vm1305_vm0 = vmmov 0   ;;  %v1225_v6 = vld [vmem:[%s1395_s14 + $0x28] sm:$0xff]   ;;  %p1069_p11 = scmp.ne.s32.totalorder %s1277_s18, 2 }
  0x20   : > { %1100 = vmatprep.subr.bf16.mxu0 %v1304_v2  ;;  %1120 = vmatprep.subr.bf16.mxu1 %v1304_v2  ;;  %v1222_v3 = vld [vmem:[%s1395_s14 + $0x78] sm:$0xff]   ;;  %v1224_v5 = vld [vmem:[%s1395_s14 + $0x70] sm:$0xff]   ;;  %v1226_v7 = vld [vmem:[%s1395_s14 + $0x68] sm:$0xff]  }
  0x21   : > { %1101 = vmatpush3.bf16.msra.mxu0 %v1221_v1  ;;  %1116 = vmatprep.mubr.msk.bf16.mxu0 %vm1305_vm0, %v1304_v2  ;;  %v1227_v8 = vld [vmem:[%s1395_s14 + $0x20] sm:$0xff]   ;;  %v1229_v10 = vld [vmem:[%s1395_s14 + $0x18] sm:$0xff]   ;;  %v1231_v13 = vld [vmem:[%s1395_s14 + $0x10] sm:$0xff]  }
  0x22   : > { %1102 = vmatprep.subr.bf16.mxu0 %v1304_v2  ;;  %1121 = vmatpush3.bf16.msra.mxu1 %v1222_v3  ;;  %v1228_v9 = vld [vmem:[%s1395_s14 + $0x60] sm:$0xff]   ;;  %v1230_v11 = vld [vmem:[%s1395_s14 + $0x58] sm:$0xff]   ;;  %v1232_v14 = vld [vmem:[%s1395_s14 + $0x50] sm:$0xff]  }
  0x23   : > { %1122 = vmatprep.subr.bf16.mxu1 %v1304_v2  ;;  %1136 = vmatprep.mubr.msk.bf16.mxu1 %vm1305_vm0, %v1304_v2  ;;  %v1238_v12 = vld [vmem:[%s1390_s11] ss:$0 sps:$4 sm:$0x77]   ;;  %v1233_v15 = vld [vmem:[%s1395_s14 + $0x8] sm:$0xff]   ;;  %v1237_v23 = vld [vmem:[%s1395_s14 + $0xb8] sm:$0xff]  }
  0x24   : > { %v538_v16 = vshll.u32 %v1238_v12, 16  ;;  %v1234_v17 = vld [vmem:[%s1395_s14 + $0x48] sm:$0xff]   ;;  %v1235_v18 = vld [vmem:[%s1395_s14] sm:$0xff]   ;;  %v536_v19 = vshrl.u32 %v1238_v12, 16  ;;  %v1239_v25 = vld [vmem:[%s1395_s14 + $0xb0] sm:$0xff]  }
  0x25   : > { %1103 = vmatpush3.bf16.msra.mxu0 %v1223_v4  ;;  %v1236_v21 = vld [vmem:[%s1395_s14 + $0x40] sm:$0xff]   ;;  %v1240_v26 = vld [vmem:[%s1395_s14 + $0xa8] sm:$0xff]   ;;  %v1242_v28 = vld [vmem:[%s1395_s14 + $0x98] sm:$0xff]  }
  0x26   : > { %1104 = vmatprep.subr.bf16.mxu0 %v1304_v2  ;;  %1123 = vmatpush3.bf16.msra.mxu1 %v1224_v5  ;;  %v540_v20 = vrot.slane %v538_v16, 1  ;;  %v408_v22 = vld [vmem:[%s1390_s11] sm:$0x3]  ;;  %v1243_v29 = vld [vmem:[%s1395_s14 + $0x90] sm:$0xff]   ;;  %v1244_v30 = vld [vmem:[%s1395_s14 + $0x88] sm:$0xff]  }
  0x27   : > { %1124 = vmatprep.subr.bf16.mxu1 %v1304_v2  ;;  %v1241_v27 = vld [vmem:[%s1395_s14 + $0xa0] sm:$0xff]  }
  0x28   : > { %v541_v24 = vor.u32 %v540_v20, %v536_v19  ;;  %v1246_v31 = vld [vmem:[%s1390_s11] ss:$0 sps:$4 sm:$0x66]  }
  0x29   : > { %1105 = vmatpush3.bf16.msra.mxu0 %v1225_v6  ;;  %v1245_v32 = vld [vmem:[%s1395_s14 + $0x80] sm:$0xff]   ;;  %v653_v33 = vrot.slane %v1246_v31, 1 }
  0x2a   : > { %1106 = vmatprep.subr.bf16.mxu0 %v1304_v2  ;;  %1125 = vmatpush3.bf16.msra.mxu1 %v1226_v7  ;;  %v407_v42 = vld [vmem:[#allocation2] sm:$0xf] }
  0x2b   : > { %1126 = vmatprep.subr.bf16.mxu1 %v1304_v2 }
  0x2d   : > { %1107 = vmatpush3.bf16.msra.mxu0 %v1227_v8 }
  0x2e   : > { %1108 = vmatprep.subr.bf16.mxu0 %v1304_v2  ;;  %1127 = vmatpush3.bf16.msra.mxu1 %v1228_v9 }
  0x2f   : > { %1128 = vmatprep.subr.bf16.mxu1 %v1304_v2 }
  0x31   : > { %1109 = vmatpush3.bf16.msra.mxu0 %v1229_v10 }
  0x32   : > { %1110 = vmatprep.subr.bf16.mxu0 %v1304_v2  ;;  %1129 = vmatpush3.bf16.msra.mxu1 %v1230_v11 }
  0x33   : > { %1130 = vmatprep.subr.bf16.mxu1 %v1304_v2 }
  0x35   : > { %1111 = vmatpush3.bf16.msra.mxu0 %v1231_v13 }
  0x36   : > { %1112 = vmatprep.subr.bf16.mxu0 %v1304_v2  ;;  %1131 = vmatpush3.bf16.msra.mxu1 %v1232_v14 }
  0x37   : > { %1132 = vmatprep.subr.bf16.mxu1 %v1304_v2 }
  0x39   : > { %1113 = vmatpush3.bf16.msra.mxu0 %v1233_v15 }
  0x3a   : > { %1114 = vmatprep.subr.bf16.mxu0 %v1304_v2  ;;  %1133 = vmatpush3.bf16.msra.mxu1 %v1234_v17 }
  0x3b   : > { %1134 = vmatprep.subr.bf16.mxu1 %v1304_v2 }
  0x3d   : > { %1115 = vmatpush3.bf16.msra.mxu0 %v1235_v18 }
  0x3e   : > { %1135 = vmatpush3.bf16.msra.mxu1 %v1236_v21  ;;  %1140 = vmatprep.subr.bf16.mxu0 %v1304_v2 }
  0x40   : > { %1117 = vmatmul.mubr.bf16.vlgmr.msra.gmra.mxu0 %v408_v22 }
  0x41   : > { %1141 = vmatpush3.bf16.msra.mxu0 %v1237_v23  ;;  %1137 = vmatmul.mubr.bf16.vlgmr.msra.gmra.mxu1 %v541_v24 }
  0x42   : > { %1142 = vmatprep.subr.bf16.mxu0 %v1304_v2  ;;  %1156 = vmatprep.mubr.msk.bf16.mxu0 %vm1305_vm0, %v1304_v2 }
  0x45   : > { %1143 = vmatpush3.bf16.msra.mxu0 %v1239_v25 }
  0x46   : > { %1144 = vmatprep.subr.bf16.mxu0 %v1304_v2 }
  0x49   : > { %1145 = vmatpush3.bf16.msra.mxu0 %v1240_v26 }
  0x4a   : > { %1146 = vmatprep.subr.bf16.mxu0 %v1304_v2 }
  0x4d   : > { %1147 = vmatpush3.bf16.msra.mxu0 %v1241_v27 }
  0x4e   : > { %1148 = vmatprep.subr.bf16.mxu0 %v1304_v2 }
  0x51   : > { %1149 = vmatpush3.bf16.msra.mxu0 %v1242_v28 }
  0x52   : > { %1150 = vmatprep.subr.bf16.mxu0 %v1304_v2 }
  0x55   : > { %1151 = vmatpush3.bf16.msra.mxu0 %v1243_v29 }
  0x56   : > { %1152 = vmatprep.subr.bf16.mxu0 %v1304_v2 }
  0x59   : > { %1153 = vmatpush3.bf16.msra.mxu0 %v1244_v30 }
  0x5a   : > { %1154 = vmatprep.subr.bf16.mxu0 %v1304_v2 }
  0x5d   : > { %1155 = vmatpush3.bf16.msra.mxu0 %v1245_v32 }
  0x60   : > { %1157 = vmatmul.mubr.bf16.vlgmr.msra.gmra.mxu0 %v653_v33 }
 0x100   : > { %v507_v34 = vpop.f32.mrf.mxu0 }
 0x101   : > { %v625_v35 = vpop.f32.mrf.mxu1  ;;  %v513_v43 = vadd.f32 %v507_v34, %v407_v42 }
 0x102   : > { %v1118_v36 = vpop.f32.mrf.mxu0 }
 0x103   : > { %v1138_v37 = vpop.f32.mrf.mxu1  ;;  %v631_v44 = vadd.f32 %v625_v35, %v513_v43 }
 0x104   : > { %v510_v38 = vpop.f32.mrf.mxu0 }
 0x105   : > { %v628_v39 = vpop.f32.mrf.mxu1 }
 0x106   : > { %v1119_v40 = vpop.f32.mrf.mxu0 }
 0x107   : > { %v1139_v41 = vpop.f32.mrf.mxu1 }
 0x120   : > { %v737_v45 = vpop.f32.mrf.mxu0 }
 0x121   : > { %v743_v46 = vadd.f32 %v737_v45, %v631_v44 }
 0x122   : > { %v1158_v47 = vpop.f32.mrf.mxu0  ;;  %748 = sbr.rel (%p1069_p11) target bundleno = 320 (0x140), region = 44 }
 0x123   : > { %744 = vst [vmem:[#allocation2] sm:$0xf] %v743_v46 }
 0x124   : > { %v740_v48 = vpop.f32.mrf.mxu0 }
 0x126   : > { %v1159_v49 = vpop.f32.mrf.mxu0 }
 0x127   : > { %v1070_v51 = vld [vmem:[%s1512_s2] ss:$0 sm:$0xff]  ;;  %vm763_vm1 = vcmask 1043456   ;;  %vm779_vm2 = vcmask 1040384  }
 0x128   : > { %v758_v52 = vld [vmem:[%s378_s30] sm:$0x3] }
 0x129   : > { %v759_v54 = vunpack.c.l.bf16 %v758_v52 }
 0x12a   : > { %v749_v50 = vld [vmem:[#allocation2] sm:$0xf] }
 0x12b   : > { %v757_v53 = vadd.f32 %v1070_v51, %v749_v50 }
 0x12d   : > { %v760_v55 = vadd.f32 %v759_v54, %v757_v53 }
 0x12f   : > { %v761_v56 = vpack.c.bf16 %v760_v55, %v760_v55  ;;  %v764_v57 = vsel %vm763_vm1, %v760_v55, 0.0  ;;  %v771_v58 = vmul.f32 %v760_v55, %v760_v55 }
 0x130   : > { %v765_v59 = vrot.slane %v764_v57, 4 }
 0x131   : > { %762 = vst [vmem:[%s389_s9] sm:$0x3] %v761_v56  ;;  %v772_v60 = vsel %vm763_vm1, %v771_v58, 0.0 }
 0x132   : > { %v766_v61 = vadd.f32 %v765_v59, %v764_v57  ;;  %v773_v62 = vrot.slane %v772_v60, 4 }
 0x134   : > { %v767_v63 = vrot.slane %v766_v61, 2  ;;  %v774_v0 = vadd.f32 %v773_v62, %v772_v60 }
 0x136   : > { %v768_v1 = vadd.f32 %v767_v63, %v766_v61  ;;  %v775_v2 = vrot.slane %v774_v0, 2 }
 0x138   : > { %v769_v3 = vrot.slane %v768_v1, 1  ;;  %v776_v4 = vadd.f32 %v775_v2, %v774_v0 }
 0x13a   : > { %v770_v5 = vadd.f32 %v769_v3, %v768_v1  ;;  %v777_v6 = vrot.slane %v776_v4, 1 }
 0x13c   : > { %v778_v7 = vadd.f32 %v777_v6, %v776_v4 }
 0x13e   : > { %v780_v8 = vsel %vm779_vm2, %v770_v5, %v778_v7 }
 0x13f   : > { %781 = vst [vmem:[%s400_s8] sm:$0x3] %v780_v8 }
 0x140 PF: > { %s16_s24 = sadd.s32 1, %s1301_s24   ;;  %s1516_s18 = smov %s1289_s21 }
 0x141   : > { %p13_p12 = scmp.ge.s32.totalorder %s16_s24, 26   ;;  %s1517_s19 = smov %s1293_s22 }
 0x142   : > { %s1518_s20 = smov %s1297_s23  ;;  %s1519_s21 = smov %s1523_s25 }
 0x143   : > { %s1520_s22 = smov %s1527_s26  ;;  %s1521_s23 = smov %s1531_s27 }
 0x144   :  { %15 = sbr.rel (!%p13_p12) target bundleno = 4 (0x4), region = 97 }

// kernel: introvae_generator_forward.20
= control target key start
LH: loop header
LB: loop body
LE: loop exit
PB: predicated region body
PF: predicated region fallthrough
CT: control target
= control target key end

     0   :  { %10 = vsyncpa [#allocation4], 0  ;;  %s1072_s0 = inlined_call_operand.vmem [shape: bf16[2,8,8,128], index: 0, kind: input, shape index: {}]   ;;  %s1073_s1 = inlined_call_operand.vmem [shape: bf16[1,1,128,128], index: 1, kind: input, shape index: {}]   ;;  %s1074_s2 = inlined_call_operand.vmem [shape: f32[1,128], index: 2, kind: input, shape index: {}]   ;;  %s1075_s3 = inlined_call_operand.vmem [shape: bf16[2,8,8,128], index: 3, kind: output, shape index: {0}]   ;;  %s1076_s4 = inlined_call_operand.hbm [shape: f32[2,8,2,128], index: 4, kind: output, shape index: {1}]  }
   0x1   :  { %12 = vsyncpa [#allocation4 + $0x1], 0  ;;  %s912_s15 = smov 0   ;;  %s914_s16 = smov 0  }
   0x2   :  { %s916_s17 = smov 0   ;;  %s918_s18 = smov 0  }
   0x3   :  { %s920_s19 = smov 0   ;;  %s922_s20 = smov 0  }
   0x4   :  { %s924_s21 = smov 0   ;;  %s926_s22 = smov 0  }
   0x5 LB: > { %s654_s23 = sadd.s32 4294967295, %s882_s22   ;;  %s655_s24 = sadd.s32 4294967294, %s882_s22   ;;  %s882_s22 = sphi %s926_s22, %s18_s22   ;;  %s878_s21 = sphi %s924_s21, %s1085_s21   ;;  %s874_s20 = sphi %s922_s20, %s1084_s20   ;;  %s870_s19 = sphi %s920_s19, %s1083_s19   ;;  %s866_s18 = sphi %s918_s18, %s1082_s18   ;;  %s862_s17 = sphi %s916_s17, %s1081_s17   ;;  %s858_s16 = sphi %s914_s16, %s1080_s16   ;;  %s854_s15 = sphi %s912_s15, %s1079_s15  }
   0x6   : > { %s40_s25 = sadd.s32 1, %s874_s20  ;;  %s44_s26 = sadd.s32 1, %s878_s21 }
   0x7   : > { %p42_p0 = scmp.ge.s32.totalorder %s40_s25, 8  ;;  %p179_p1 = scmp.ne.s32.totalorder %s862_s17, %s858_s16 }
   0x8   : > { %p180_p2 = scmp.eq.s32.totalorder %s654_s23, 15  ;;  %p185_p5 = scmp.ne.s32.totalorder %s858_s16, %s854_s15 }
   0x9   : > { %s1087_s25 = smov (%p42_p0, %s40_s25), 0  ;;  %s1089_s26 = smov (!%p42_p0, %s44_s26), %s878_s21 }
   0xa   : > { %s163_s27 = ssub.s32 %s874_s20, %s1087_s25  ;;  %p963_p3 = por %p180_p2, %p179_p1 }
   0xb   : > { %p46_p4 = scmp.ge.s32.totalorder %s1089_s26, 2  ;;  %p186_p6 = scmp.eq.s32.totalorder %s655_s24, 15 }
   0xc   : > { %p660_p7 = scmp.ge.s32.totalorder %s882_s22, 1  ;;  %p234_p9 = scmp.lt.s32.totalorder %s882_s22, 17 }
   0xd   : > { %s1091_s26 = smov (%p46_p4, %s1089_s26), 0  ;;  %p972_p8 = por %p186_p6, %p185_p5 }
   0xe   : > { %s162_s30 = ssub.s32 %s878_s21, %s1091_s26  ;;  %s169_s5 = sadd.s32 1, %s862_s17 }
   0xf   : > { %s164_s6 = sor.u32 %s163_s27, %s162_s30  ;;  %p235_p10 = pnand %p660_p7, %p234_p9 }
  0x10   : > { %p167_p11 = scmp.eq.s32.totalorder %s164_s6, 0  ;;  %p287_p12 = scmp.lt.s32.totalorder (!%p235_p10), %s870_s19, 1 }
  0x11   : > { %238 = sbr.rel (%p235_p10) target bundleno = 278 (0x116), region = 32  ;;  %p289_p13 = scmp.lt.s32.totalorder (!%p235_p10), %s866_s18, 7 }
  0x12   : > { %s981_s7 = scalar_select %p167_p11, %s862_s17, %s169_s5  }
  0x13   : > { %s283_s11 = sand.u32 (!%p235_p10), 1, %s858_s16   ;;  %s676_s14 = sshll.u32 (!%p235_p10), %s870_s19, 3 }
  0x14   : > { %s661_s12 = sshll.u32 (!%p235_p10), %s283_s11, 1  ;;  %s489_s23 = sadd.s32 (!%p235_p10), %s866_s18, %s676_s14 }
  0x15   : > { %s285_s24 = scalar_lea.vmem (!%p235_p10), [#allocation3], %s661_s12  ;;  %s886_s8 = smov (!%p235_p10), [#allocation3]  }
  0x16   : > { %v782_v0 = vld [vmem:[%s1073_s1 + $0x38] sm:$0xff]   ;;  %v884_v1 = vmov 0.0   ;;  %v783_v2 = vld [vmem:[%s1073_s1 + $0x30] sm:$0xff]   ;;  %vm885_vm0 = vmmov 0   ;;  %v784_v3 = vld [vmem:[%s1073_s1 + $0x28] sm:$0xff]   ;;  %s288_s30 = scalar_select %p287_p12, %s870_s19, 1 }
  0x17   : > { %689 = vmatprep.subr.bf16.mxu0 %v884_v1  ;;  %705 = vmatprep.mubr.msk.bf16.mxu0 %vm885_vm0, %v884_v1  ;;  %v785_v4 = vld [vmem:[%s1073_s1 + $0x20] sm:$0xff]   ;;  %v786_v5 = vld [vmem:[%s1073_s1 + $0x18] sm:$0xff]   ;;  %s290_s5 = scalar_select %p289_p13, %s866_s18, 7  ;;  %v787_v6 = vld [vmem:[%s1073_s1 + $0x10] sm:$0xff]   ;;  %vm459_vm1 = vcmask 1040384  }
  0x18   : > { %690 = vmatpush3.bf16.msra.mxu0 %v782_v0  ;;  %s662_s9 = sshll.u32 %s288_s30, 3  ;;  %v788_v7 = vld [vmem:[%s1073_s1 + $0x8] sm:$0xff]   ;;  %v789_v8 = vld [vmem:[%s1073_s1] sm:$0xff]   ;;  %s493_s27 = sshll.u32 %s285_s24, 4  ;;  %s494_s27 = int_to_ptr.vmem [resolvable:$true] %s493_s27 }
  0x19   : > { %691 = vmatprep.subr.bf16.mxu0 %v884_v1  ;;  %s292_s10 = sadd.s32 %s662_s9, %s290_s5  ;;  %v674_v10 = vld [vmem:[%s1074_s2] ss:$0 sm:$0xff]  ;;  %s474_s19 = scalar_lea.sflag [#allocation4], %s283_s11 }
  0x1a   : > { %s663_s13 = sshll.u32 %s292_s10, 2  ;;  %s790_s18 = scalar_lea.vmem %s494_s27, 32 }
  0x1b   : > { %s294_s30 = scalar_lea.vmem %s1072_s0, %s663_s13  ;;  %s317_s10 = scalar_lea.vmem %s1075_s3, %s663_s13 }
  0x1c   : > { %692 = vmatpush3.bf16.msra.mxu0 %v783_v2  ;;  %v325_v9 = vld [vmem:[%s294_s30] sm:$0xf]  ;;  %s677_s13 = sshll.u32 %s489_s23, 5  ;;  %p791_p0 = scmp.ne.s32.totalorder %s494_s27, %s790_s18 }
  0x1d   : > { %693 = vmatprep.subr.bf16.mxu0 %v884_v1  ;;  %s1026_s6 = scalar_lea.hbm %s1076_s4, %s677_s13  ;;  %s794_s9 = sshll.u32 %s886_s8, 4  ;;  %s795_s9 = int_to_ptr.vmem [resolvable:$false] %s794_s9 }
  0x1e   : > { %p792_p1 = pnand %p791_p0, %p963_p3  ;;  %p797_p4 = scmp.lt.s32.totalorder %s494_s27, %s795_s9 }
  0x20   : > { %694 = vmatpush3.bf16.msra.mxu0 %v784_v3  ;;  %p793_p2 = pneg %p792_p1 }
  0x21   : > { %695 = vmatprep.subr.bf16.mxu0 %v884_v1 }
  0x24   : > { %696 = vmatpush3.bf16.msra.mxu0 %v785_v4 }
  0x25   : > { %697 = vmatprep.subr.bf16.mxu0 %v884_v1 }
  0x28   : > { %698 = vmatpush3.bf16.msra.mxu0 %v786_v5 }
  0x29   : > { %699 = vmatprep.subr.bf16.mxu0 %v884_v1 }
  0x2c   : > { %700 = vmatpush3.bf16.msra.mxu0 %v787_v6 }
  0x2d   : > { %701 = vmatprep.subr.bf16.mxu0 %v884_v1 }
  0x30   : > { %702 = vmatpush3.bf16.msra.mxu0 %v788_v7 }
  0x31   : > { %703 = vmatprep.subr.bf16.mxu0 %v884_v1 }
  0x34   : > { %704 = vmatpush3.bf16.msra.mxu0 %v789_v8 }
  0x37   : > { %706 = vmatmul.mubr.bf16.vlgmr.msra.gmra.mxu0 %v325_v9 }
  0xf7   : > { %v424_v11 = vpop.f32.mrf.mxu0 }
  0xf8   : > { %v443_v12 = vadd.f32 %v674_v10, %v424_v11 }
  0xf9   : > { %v707_v13 = vpop.f32.mrf.mxu0 }
  0xfa   : > { %v444_v14 = vpack.c.bf16 %v443_v12, %v443_v12  ;;  %v446_v15 = vrot.slane %v443_v12, 4  ;;  %v452_v16 = vmul.f32 %v443_v12, %v443_v12 }
  0xfb   : > { %v427_v17 = vpop.f32.mrf.mxu0 }
  0xfc   : > { %445 = vst [vmem:[%s317_s10] sm:$0xf] %v444_v14  ;;  %v447_v18 = vadd.f32 %v446_v15, %v443_v12  ;;  %v453_v19 = vrot.slane %v452_v16, 4  ;;  %s796_s10 = scalar_lea.vmem %s795_s9, 64 }
  0xfd   : > { %v708_v20 = vpop.f32.mrf.mxu0  ;;  %p798_p5 = scmp.lt.s32.totalorder %s796_s10, %s790_s18 }
  0xfe   : > { %v448_v21 = vrot.slane %v447_v18, 2  ;;  %v454_v22 = vadd.f32 %v453_v19, %v452_v16 }
  0xff   : > { %p799_p6 = por %p798_p5, %p797_p4 }
 0x100   : > { %v449_v23 = vadd.f32 %v448_v21, %v447_v18  ;;  %v455_v24 = vrot.slane %v454_v22, 2 }
 0x101   : > { %p800_p7 = pnand %p799_p6, %p793_p2 }
 0x102   : > { %v450_v25 = vrot.slane %v449_v23, 1  ;;  %v456_v26 = vadd.f32 %v455_v24, %v454_v22 }
 0x104   : > { %v457_v27 = vrot.slane %v456_v26, 1  ;;  %v451_v28 = vadd.f32 %v450_v25, %v449_v23 }
 0x106   : > { %v458_v29 = vadd.f32 %v457_v27, %v456_v26 }
 0x108   : > { %v460_v30 = vsel %vm459_vm1, %v451_v28, %v458_v29 }
 0x109   : > { %461 = vst [vmem:[%s285_s24] sm:$0x3] %v460_v30 }
 0x10a   : > { %803 = shalt.err (!%p800_p7)
}
 0x10b   : > { %s804_s12 = scalar_lea.hbm %s1026_s6, 32  ;;  %s808_s23 = scalar_lea.hbm %s1076_s4, 512 }
 0x10c   : > { %p805_p9 = scmp.ne.s32.totalorder %s1026_s6, %s804_s12  ;;  %p809_p12 = scmp.lt.s32.totalorder %s1026_s6, %s1076_s4 }
 0x10d   : > { %p810_p13 = scmp.lt.s32.totalorder %s808_s23, %s804_s12 }
 0x10e   : > { %p806_p10 = pnand %p805_p9, %p963_p3 }
 0x10f   : > { %p811_p0 = por %p810_p13, %p809_p12 }
 0x110   : > { %p807_p11 = pneg %p806_p10 }
 0x112   : > { %p812_p1 = pnand %p811_p0, %p807_p11 }
 0x114   : > { %815 = shalt.err (!%p812_p1)
}
 0x115   : > { %709 = dma.vmem_to_hbm [thread:$0]  (%p963_p3), %s494_s27, 32, %s1026_s6, %s474_s19  }
 0x116 PF: > { %p715_p2 = scmp.ge.s32.totalorder %s882_s22, 2  ;;  %s519_s30 = sand.u32 1, %s854_s15  }
 0x117   : > { %s520_s5 = scalar_lea.sflag [#allocation4], %s519_s30 }
 0x118   : > { %p712_p4 = pnand %p715_p2, %p972_p8 }
 0x11a   : > { %p713_p5 = pneg %p712_p4 }
 0x11c   : > { %849 = dma.done.wait (%p713_p5), %s520_s5, 32  }
 0x11d   : > { %851 = vsyncadd (%p713_p5), %s520_s5, 4294967264  ;;  %s18_s22 = sadd.s32 1, %s882_s22   ;;  %s1079_s15 = smov %s858_s16 }
 0x11e   : > { %p15_p6 = scmp.ge.s32.totalorder %s18_s22, 18   ;;  %s1080_s16 = smov %s862_s17 }
 0x11f   : > { %s1081_s17 = smov %s981_s7  ;;  %s1082_s18 = smov %s874_s20 }
 0x120   : > { %s1083_s19 = smov %s878_s21  ;;  %s1084_s20 = smov %s1087_s25 }
 0x121   : > { %s1085_s21 = smov %s1091_s26  ;;  %17 = sbr.rel (!%p15_p6) target bundleno = 5 (0x5), region = 93 }
 0x126   :  { %525 = vsyncpa [#allocation4], 1 }
 0x127   :  { %527 = vsyncpa [#allocation4 + $0x1], 1 }

// kernel: introvae_generator_forward.22
= control target key start
LH: loop header
LB: loop body
LE: loop exit
PB: predicated region body
PF: predicated region fallthrough
CT: control target
= control target key end

     0   :  { %s521_s12 = smov 0   ;;  %s523_s13 = smov 0   ;;  %s575_s0 = inlined_call_operand.vmem [shape: bf16[2,8,8,128], index: 0, kind: input, shape index: {}]   ;;  %s576_s1 = inlined_call_operand.vmem [shape: f32[1,128], index: 1, kind: input, shape index: {}]   ;;  %s577_s2 = inlined_call_operand.vmem [shape: f32[1,128], index: 2, kind: input, shape index: {}]   ;;  %s578_s3 = inlined_call_operand.vmem [shape: bf16[2,8,8,128], index: 3, kind: output, shape index: {}]  }
   0x1   :  { %s525_s14 = smov 0   ;;  %s527_s15 = smov 0  }
   0x2   :  { %s529_s16 = smov 0  }
   0x3 LB: > { %s28_s17 = sadd.s32 1, %s491_s14  ;;  %s32_s18 = sadd.s32 1, %s495_s15  ;;  %s499_s16 = sphi %s529_s16, %s13_s16   ;;  %s495_s15 = sphi %s527_s15, %s582_s15   ;;  %s491_s14 = sphi %s525_s14, %s581_s14   ;;  %s487_s13 = sphi %s523_s13, %s580_s13   ;;  %s483_s12 = sphi %s521_s12, %s579_s12  }
   0x4   : > { %p30_p0 = scmp.ge.s32.totalorder %s28_s17, 8  ;;  %p412_p1 = scmp.ge.s32.totalorder %s499_s16, 1 }
   0x5   : > { %p186_p2 = scmp.lt.s32.totalorder %s499_s16, 17 }
   0x6   : > { %s584_s17 = smov (%p30_p0, %s28_s17), 0  ;;  %s586_s18 = smov (!%p30_p0, %s32_s18), %s495_s15 }
   0x7   : > { %p187_p3 = pnand %p412_p1, %p186_p2  ;;  %p34_p4 = scmp.ge.s32.totalorder %s586_s18, 2 }
   0x8   : > { %p228_p5 = scmp.lt.s32.totalorder (!%p187_p3), %s487_s13, 1  ;;  %p230_p6 = scmp.lt.s32.totalorder (!%p187_p3), %s483_s12, 7 }
   0x9   : > { %s588_s18 = smov (%p34_p4, %s586_s18), 0  ;;  %190 = sbr.rel (%p187_p3) target bundleno = 32 (0x20), region = 32 }
   0xe   : > { %s590_s13 = smov (!%p228_p5, %s487_s13), 1  ;;  %s592_s12 = smov (!%p230_p6, %s483_s12), 7  ;;  %v417_v1 = vld [vmem:[%s576_s1] ss:$0 sm:$0xff] }
   0xf   : > { %s413_s19 = sshll.u32 %s590_s13, 3  ;;  %v418_v3 = vld [vmem:[%s577_s2] ss:$0 sm:$0xff] }
  0x10   : > { %s236_s20 = sadd.s32 %s413_s19, %s592_s12 }
  0x11   : > { %s414_s21 = sshll.u32 %s236_s20, 2 }
  0x12   : > { %s238_s24 = scalar_lea.vmem %s575_s0, %s414_s21  ;;  %s255_s4 = scalar_lea.vmem %s578_s3, %s414_s21 }
  0x13   : > { %v256_v0 = vld [vmem:[%s238_s24] sm:$0xf] }
  0x14   : > { %v257_v2 = vunpack.c.l.bf16 %v256_v0 }
  0x16   : > { %v265_v4 = vmul.f32 %v417_v1, %v257_v2 }
  0x18   : > { %v273_v5 = vadd.f32 %v418_v3, %v265_v4 }
  0x1a   : > { %vm274_vm0 = vcmp.ge.f32.partialorder %v273_v5, 0.0  ;;  %v275_v6 = vmul.f32 0.2, %v273_v5 }
  0x1c   : > { %v276_v7 = vsel %vm274_vm0, %v273_v5, %v275_v6 }
  0x1d   : > { %v277_v8 = vpack.c.bf16 %v276_v7, %v276_v7 }
  0x1f   : > { %278 = vst [vmem:[%s255_s4] sm:$0xf] %v277_v8 }
  0x20 PF: > { %s13_s16 = sadd.s32 1, %s499_s16   ;;  %s579_s12 = smov %s491_s14 }
  0x21   : > { %p10_p7 = scmp.ge.s32.totalorder %s13_s16, 18   ;;  %s580_s13 = smov %s495_s15 }
  0x22   : > { %s581_s14 = smov %s584_s17  ;;  %s582_s15 = smov %s588_s18 }
  0x23   :  { %12 = sbr.rel (!%p10_p7) target bundleno = 3 (0x3), region = 68 }

// kernel: introvae_generator_forward.21
= control target key start
LH: loop header
LB: loop body
LE: loop exit
PB: predicated region body
PF: predicated region fallthrough
CT: control target
= control target key end

     0   :  { %s1243_s15 = smov 0   ;;  %s1245_s16 = smov 0   ;;  %s1401_s0 = inlined_call_operand.vmem [shape: bf16[2,10,10,128], index: 0, kind: input, shape index: {}]   ;;  %s1402_s1 = inlined_call_operand.vmem [shape: bf16[3,3,128,128], index: 1, kind: input, shape index: {}]   ;;  %s1403_s2 = inlined_call_operand.vmem [shape: f32[1,128], index: 2, kind: input, shape index: {}]   ;;  %s1404_s3 = inlined_call_operand.vmem [shape: bf16[2,8,8,128], index: 3, kind: output, shape index: {0}]   ;;  %s1405_s4 = inlined_call_operand.vmem [shape: f32[2,8,2,128], index: 4, kind: output, shape index: {1}]  }
   0x1   :  { %s1247_s17 = smov 0   ;;  %s1249_s18 = smov 0  }
   0x2   :  { %s1251_s19 = smov 0   ;;  %s1253_s20 = smov 0  }
   0x3   :  { %s1255_s21 = smov 0  }
   0x4 LB: > { %s30_s22 = sadd.s32 1, %s1201_s18  ;;  %s37_s23 = sadd.s32 1, %s1205_s19  ;;  %s1213_s21 = sphi %s1255_s21, %s15_s21   ;;  %s1209_s20 = sphi %s1253_s20, %s1411_s20   ;;  %s1205_s19 = sphi %s1251_s19, %s1410_s19   ;;  %s1201_s18 = sphi %s1249_s18, %s1409_s18   ;;  %s1197_s17 = sphi %s1247_s17, %s1408_s17   ;;  %s1193_s16 = sphi %s1245_s16, %s1407_s16   ;;  %s1189_s15 = sphi %s1243_s15, %s1406_s15  }
   0x5   : > { %p31_p0 = scmp.ge.s32.totalorder %s30_s22, 3  ;;  %p914_p1 = scmp.ge.s32.totalorder %s1213_s21, 1 }
   0x6   : > { %p232_p2 = scmp.lt.s32.totalorder %s1213_s21, 49  ;;  %s41_s24 = sadd.s32 1, %s1209_s20 }
   0x7   : > { %s1413_s22 = smov (%p31_p0, %s30_s22), 0  ;;  %s1415_s23 = smov (!%p31_p0, %s37_s23), %s1205_s19 }
   0x8   : > { %p233_p3 = pnand %p914_p1, %p232_p2  ;;  %p39_p4 = scmp.ge.s32.totalorder %s1415_s23, 8 }
   0x9   : > { %s291_s25 = sadd.s32 (!%p233_p3), %s1189_s15, %s1193_s16  ;;  %p292_p6 = scmp.lt.s32.totalorder (!%p233_p3), %s1197_s17, 1 }
   0xa   : > { %s1417_s23 = smov (%p39_p4, %s1415_s23), 0  ;;  %s1419_s24 = smov (!%p39_p4, %s41_s24), %s1209_s20 }
   0xb   : > { %p43_p5 = scmp.ge.s32.totalorder %s1419_s24, 2  ;;  %236 = sbr.rel (%p233_p3) target bundleno = 316 (0x13c), region = 32 }
   0xc   : > { %p294_p7 = scmp.lt.s32.totalorder (!%p233_p3), %s291_s25, 9  ;;  %p302_p8 = scmp.lt.s32.totalorder (!%p233_p3), %s1189_s15, 2 }
   0xd   : > { %s1421_s24 = smov (%p43_p5, %s1419_s24), 0  ;;  %p315_p9 = scmp.lt.s32.totalorder (!%p233_p3), %s1193_s16, 7 }
   0xe   : > { %p922_p10 = scmp.ne.s32.totalorder (!%p233_p3), %s1189_s15, 0 }
  0x10   : > { %s1423_s17 = smov (!%p292_p6, %s1197_s17), 1  ;;  %s1425_s25 = smov (!%p294_p7, %s291_s25), 9 }
  0x11   : > { %s1072_s26 = smul.u32 20, %s1423_s17  ;;  %s915_s27 = sshll.u32 %s1425_s25, 1 }
  0x12   : > { %s918_s7 = sshll.u32 %s1423_s17, 3  ;;  %s1427_s16 = smov (!%p315_p9, %s1193_s16), 7 }
  0x13   : > { %s298_s28 = sadd.s32 %s1072_s26, %s915_s27  ;;  %s321_s10 = sadd.s32 %s918_s7, %s1427_s16 }
  0x14   : > { %s916_s29 = sshll.u32 %s298_s28, 2  ;;  %s919_s14 = sshll.u32 %s321_s10, 2 }
  0x15   : > { %s1296_s6 = scalar_lea.vmem %s1401_s0, %s916_s29  ;;  %s1308_s27 = scalar_lea.vmem %s1404_s3, %s919_s14 }
  0x16   : > { %s303_s8 = scalar_select %p302_p8, %s1189_s15, 2 }
  0x17   : > { %s921_s28 = sshll.u32 %s321_s10, 1  ;;  %339 = sbr.rel (%p922_p10) target bundleno = 30 (0x1e), region = 36 }
  0x18   : > { %s1073_s9 = smul.u32 192, %s303_s8  ;;  %s1313_s17 = scalar_lea.vmem %s1405_s4, %s921_s28 }
  0x1a   : > { %s1303_s13 = scalar_lea.vmem %s1402_s1, %s1073_s9 }
  0x1c   : > { %v1215_v0 = vmov 0.0  }
  0x1d   : > { %340 = vst [vmem:[#allocation2] sm:$0xff] %v1215_v0 }
  0x1e PF: > { %v1133_v1 = vld [vmem:[%s1303_s13 + $0x38] sm:$0xff]   ;;  %v1216_v2 = vmov 0.0   ;;  %v1135_v4 = vld [vmem:[%s1303_s13 + $0x30] sm:$0xff]   ;;  %vm1217_vm0 = vmmov 0   ;;  %v1137_v6 = vld [vmem:[%s1303_s13 + $0x28] sm:$0xff]   ;;  %p981_p11 = scmp.ne.s32.totalorder %s1189_s15, 2 }
  0x1f   : > { %1012 = vmatprep.subr.bf16.mxu0 %v1216_v2  ;;  %1032 = vmatprep.subr.bf16.mxu1 %v1216_v2  ;;  %v1134_v3 = vld [vmem:[%s1303_s13 + $0x78] sm:$0xff]   ;;  %v1136_v5 = vld [vmem:[%s1303_s13 + $0x70] sm:$0xff]   ;;  %v1138_v7 = vld [vmem:[%s1303_s13 + $0x68] sm:$0xff]  }
  0x20   : > { %1013 = vmatpush3.bf16.msra.mxu0 %v1133_v1  ;;  %1028 = vmatprep.mubr.msk.bf16.mxu0 %vm1217_vm0, %v1216_v2  ;;  %v1139_v8 = vld [vmem:[%s1303_s13 + $0x20] sm:$0xff]   ;;  %v1141_v10 = vld [vmem:[%s1303_s13 + $0x18] sm:$0xff]   ;;  %v1143_v14 = vld [vmem:[%s1303_s13 + $0x10] sm:$0xff]  }
  0x21   : > { %1014 = vmatprep.subr.bf16.mxu0 %v1216_v2  ;;  %1033 = vmatpush3.bf16.msra.mxu1 %v1134_v3  ;;  %v1140_v9 = vld [vmem:[%s1303_s13 + $0x60] sm:$0xff]   ;;  %v1142_v11 = vld [vmem:[%s1303_s13 + $0x58] sm:$0xff]   ;;  %v1144_v16 = vld [vmem:[%s1303_s13 + $0x50] sm:$0xff]  }
  0x22   : > { %1034 = vmatprep.subr.bf16.mxu1 %v1216_v2  ;;  %1048 = vmatprep.mubr.msk.bf16.mxu1 %vm1217_vm0, %v1216_v2  ;;  %v448_v12 = vld [vmem:[%s1296_s6] sm:$0xf]  ;;  %v449_v13 = vld [vmem:[%s1296_s6 + $0x4] sm:$0x1]  ;;  %v1145_v17 = vld [vmem:[%s1303_s13 + $0x8] sm:$0xff]  }
  0x23   : > { %v947_v15 = vcombine.low %v448_v12, %v449_v13  ;;  %v1146_v19 = vld [vmem:[%s1303_s13 + $0x48] sm:$0xff]   ;;  %v1147_v20 = vld [vmem:[%s1303_s13] sm:$0xff]   ;;  %v1149_v25 = vld [vmem:[%s1303_s13 + $0xb8] sm:$0xff]  }
  0x24   : > { %1015 = vmatpush3.bf16.msra.mxu0 %v1135_v4  ;;  %v1148_v23 = vld [vmem:[%s1303_s13 + $0x40] sm:$0xff]   ;;  %v1151_v27 = vld [vmem:[%s1303_s13 + $0xb0] sm:$0xff]   ;;  %v1152_v28 = vld [vmem:[%s1303_s13 + $0xa8] sm:$0xff]  }
  0x25   : > { %1016 = vmatprep.subr.bf16.mxu0 %v1216_v2  ;;  %1035 = vmatpush3.bf16.msra.mxu1 %v1136_v5  ;;  %v475_v18 = vshll.u32 %v947_v15, 16  ;;  %v473_v21 = vshrl.u32 %v947_v15, 16  ;;  %v342_v24 = vld [vmem:[%s1296_s6] sm:$0xf]  ;;  %v1154_v30 = vld [vmem:[%s1303_s13 + $0x98] sm:$0xff]   ;;  %v1155_v31 = vld [vmem:[%s1303_s13 + $0x90] sm:$0xff]  }
  0x26   : > { %1036 = vmatprep.subr.bf16.mxu1 %v1216_v2  ;;  %v1153_v29 = vld [vmem:[%s1303_s13 + $0xa0] sm:$0xff]   ;;  %v1156_v32 = vld [vmem:[%s1303_s13 + $0x88] sm:$0xff]  }
  0x27   : > { %v477_v22 = vrot.slane %v475_v18, 1  ;;  %v569_v33 = vld [vmem:[%s1296_s6] sm:$0xe] }
  0x28   : > { %1017 = vmatpush3.bf16.msra.mxu0 %v1137_v6  ;;  %v972_v34 = vcombine.low %v569_v33, %v449_v13  ;;  %v1157_v35 = vld [vmem:[%s1303_s13 + $0x80] sm:$0xff]  }
  0x29   : > { %1018 = vmatprep.subr.bf16.mxu0 %v1216_v2  ;;  %1037 = vmatpush3.bf16.msra.mxu1 %v1138_v7  ;;  %v478_v26 = vor.u32 %v477_v22, %v473_v21  ;;  %v341_v45 = vld [vmem:[#allocation2] sm:$0xff] }
  0x2a   : > { %1038 = vmatprep.subr.bf16.mxu1 %v1216_v2  ;;  %v590_v36 = vrot.slane %v972_v34, 1 }
  0x2c   : > { %1019 = vmatpush3.bf16.msra.mxu0 %v1139_v8 }
  0x2d   : > { %1020 = vmatprep.subr.bf16.mxu0 %v1216_v2  ;;  %1039 = vmatpush3.bf16.msra.mxu1 %v1140_v9 }
  0x2e   : > { %1040 = vmatprep.subr.bf16.mxu1 %v1216_v2 }
  0x30   : > { %1021 = vmatpush3.bf16.msra.mxu0 %v1141_v10 }
  0x31   : > { %1022 = vmatprep.subr.bf16.mxu0 %v1216_v2  ;;  %1041 = vmatpush3.bf16.msra.mxu1 %v1142_v11 }
  0x32   : > { %1042 = vmatprep.subr.bf16.mxu1 %v1216_v2 }
  0x34   : > { %1023 = vmatpush3.bf16.msra.mxu0 %v1143_v14 }
  0x35   : > { %1024 = vmatprep.subr.bf16.mxu0 %v1216_v2  ;;  %1043 = vmatpush3.bf16.msra.mxu1 %v1144_v16 }
  0x36   : > { %1044 = vmatprep.subr.bf16.mxu1 %v1216_v2 }
  0x38   : > { %1025 = vmatpush3.bf16.msra.mxu0 %v1145_v17 }
  0x39   : > { %1026 = vmatprep.subr.bf16.mxu0 %v1216_v2  ;;  %1045 = vmatpush3.bf16.msra.mxu1 %v1146_v19 }
  0x3a   : > { %1046 = vmatprep.subr.bf16.mxu1 %v1216_v2 }
  0x3c   : > { %1027 = vmatpush3.bf16.msra.mxu0 %v1147_v20 }
  0x3d   : > { %1047 = vmatpush3.bf16.msra.mxu1 %v1148_v23  ;;  %1052 = vmatprep.subr.bf16.mxu0 %v1216_v2 }
  0x3f   : > { %1029 = vmatmul.mubr.bf16.vlgmr.msra.gmra.mxu0 %v342_v24 }
  0x40   : > { %1053 = vmatpush3.bf16.msra.mxu0 %v1149_v25  ;;  %1049 = vmatmul.mubr.bf16.vlgmr.msra.gmra.mxu1 %v478_v26 }
  0x41   : > { %1054 = vmatprep.subr.bf16.mxu0 %v1216_v2  ;;  %1068 = vmatprep.mubr.msk.bf16.mxu0 %vm1217_vm0, %v1216_v2 }
  0x44   : > { %1055 = vmatpush3.bf16.msra.mxu0 %v1151_v27 }
  0x45   : > { %1056 = vmatprep.subr.bf16.mxu0 %v1216_v2 }
  0x48   : > { %1057 = vmatpush3.bf16.msra.mxu0 %v1152_v28 }
  0x49   : > { %1058 = vmatprep.subr.bf16.mxu0 %v1216_v2 }
  0x4c   : > { %1059 = vmatpush3.bf16.msra.mxu0 %v1153_v29 }
  0x4d   : > { %1060 = vmatprep.subr.bf16.mxu0 %v1216_v2 }
  0x50   : > { %1061 = vmatpush3.bf16.msra.mxu0 %v1154_v30 }
  0x51   : > { %1062 = vmatprep.subr.bf16.mxu0 %v1216_v2 }
  0x54   : > { %1063 = vmatpush3.bf16.msra.mxu0 %v1155_v31 }
  0x55   : > { %1064 = vmatprep.subr.bf16.mxu0 %v1216_v2 }
  0x58   : > { %1065 = vmatpush3.bf16.msra.mxu0 %v1156_v32 }
  0x59   : > { %1066 = vmatprep.subr.bf16.mxu0 %v1216_v2 }
  0x5c   : > { %1067 = vmatpush3.bf16.msra.mxu0 %v1157_v35 }
  0x5f   : > { %1069 = vmatmul.mubr.bf16.vlgmr.msra.gmra.mxu0 %v590_v36 }
  0xff   : > { %v441_v37 = vpop.f32.mrf.mxu0 }
 0x100   : > { %v562_v38 = vpop.f32.mrf.mxu1  ;;  %v447_v46 = vadd.f32 %v441_v37, %v341_v45 }
 0x101   : > { %v1030_v39 = vpop.f32.mrf.mxu0 }
 0x102   : > { %v1050_v40 = vpop.f32.mrf.mxu1  ;;  %v568_v47 = vadd.f32 %v562_v38, %v447_v46 }
 0x103   : > { %v444_v41 = vpop.f32.mrf.mxu0 }
 0x104   : > { %v565_v42 = vpop.f32.mrf.mxu1 }
 0x105   : > { %v1031_v43 = vpop.f32.mrf.mxu0 }
 0x106   : > { %v1051_v44 = vpop.f32.mrf.mxu1 }
 0x11f   : > { %v674_v48 = vpop.f32.mrf.mxu0 }
 0x120   : > { %v680_v49 = vadd.f32 %v674_v48, %v568_v47 }
 0x121   : > { %v1070_v50 = vpop.f32.mrf.mxu0  ;;  %685 = sbr.rel (%p981_p11) target bundleno = 316 (0x13c), region = 40 }
 0x122   : > { %681 = vst [vmem:[#allocation2] sm:$0xff] %v680_v49 }
 0x123   : > { %v677_v51 = vpop.f32.mrf.mxu0 }
 0x125   : > { %v1071_v52 = vpop.f32.mrf.mxu0 }
 0x126   : > { %v982_v54 = vld [vmem:[%s1403_s2] ss:$0 sm:$0xff]  ;;  %vm710_vm1 = vcmask 1040384  }
 0x129   : > { %v686_v53 = vld [vmem:[#allocation2] sm:$0xff] }
 0x12a   : > { %v694_v55 = vadd.f32 %v982_v54, %v686_v53 }
 0x12c   : > { %v695_v56 = vpack.c.bf16 %v694_v55, %v694_v55  ;;  %v697_v57 = vrot.slane %v694_v55, 4  ;;  %v703_v58 = vmul.f32 %v694_v55, %v694_v55 }
 0x12e   : > { %696 = vst [vmem:[%s1308_s27] sm:$0xf] %v695_v56  ;;  %v698_v59 = vadd.f32 %v697_v57, %v694_v55  ;;  %v704_v60 = vrot.slane %v703_v58, 4 }
 0x130   : > { %v699_v61 = vrot.slane %v698_v59, 2  ;;  %v705_v62 = vadd.f32 %v704_v60, %v703_v58 }
 0x132   : > { %v700_v63 = vadd.f32 %v699_v61, %v698_v59  ;;  %v706_v0 = vrot.slane %v705_v62, 2 }
 0x134   : > { %v701_v1 = vrot.slane %v700_v63, 1  ;;  %v707_v2 = vadd.f32 %v706_v0, %v705_v62 }
 0x136   : > { %v702_v3 = vadd.f32 %v701_v1, %v700_v63  ;;  %v708_v4 = vrot.slane %v707_v2, 1 }
 0x138   : > { %v709_v5 = vadd.f32 %v708_v4, %v707_v2 }
 0x13a   : > { %v711_v6 = vsel %vm710_vm1, %v702_v3, %v709_v5 }
 0x13b   : > { %712 = vst [vmem:[%s1313_s17] sm:$0x3] %v711_v6 }
 0x13c PF: > { %s15_s21 = sadd.s32 1, %s1213_s21   ;;  %s1406_s15 = smov %s1201_s18 }
 0x13d   : > { %p12_p12 = scmp.ge.s32.totalorder %s15_s21, 50   ;;  %s1407_s16 = smov %s1205_s19 }
 0x13e   : > { %s1408_s17 = smov %s1209_s20  ;;  %s1409_s18 = smov %s1413_s22 }
 0x13f   : > { %s1410_s19 = smov %s1417_s23  ;;  %s1411_s20 = smov %s1421_s24 }
 0x140   :  { %14 = sbr.rel (!%p12_p12) target bundleno = 4 (0x4), region = 90 }

// kernel: introvae_generator_forward.23
= control target key start
LH: loop header
LB: loop body
LE: loop exit
PB: predicated region body
PF: predicated region fallthrough
CT: control target
= control target key end

     0   :  { %s1343_s18 = smov 0   ;;  %s1345_s19 = smov 0   ;;  %s1507_s0 = inlined_call_operand.vmem [shape: bf16[2,10,10,128], index: 0, kind: input, shape index: {}]   ;;  %s1508_s1 = inlined_call_operand.vmem [shape: bf16[3,3,128,128], index: 1, kind: input, shape index: {}]   ;;  %s1509_s2 = inlined_call_operand.vmem [shape: f32[1,128], index: 2, kind: input, shape index: {}]   ;;  %s1510_s3 = inlined_call_operand.vmem [shape: bf16[2,8,8,128], index: 3, kind: input, shape index: {}]   ;;  %s1511_s4 = inlined_call_operand.vmem [shape: bf16[2,8,8,128], index: 4, kind: output, shape index: {0}]   ;;  %s1512_s5 = inlined_call_operand.vmem [shape: f32[2,8,2,128], index: 5, kind: output, shape index: {1}]  }
   0x1   :  { %s1347_s20 = smov 0   ;;  %s1349_s21 = smov 0  }
   0x2   :  { %s1351_s22 = smov 0   ;;  %s1353_s23 = smov 0  }
   0x3   :  { %s1355_s24 = smov 0  }
   0x4 LB: > { %s31_s25 = sadd.s32 1, %s1296_s21  ;;  %s38_s26 = sadd.s32 1, %s1300_s22  ;;  %s1308_s24 = sphi %s1355_s24, %s16_s24   ;;  %s1304_s23 = sphi %s1353_s23, %s1520_s23   ;;  %s1300_s22 = sphi %s1351_s22, %s1519_s22   ;;  %s1296_s21 = sphi %s1349_s21, %s1518_s21   ;;  %s1292_s20 = sphi %s1347_s20, %s1517_s20   ;;  %s1288_s19 = sphi %s1345_s19, %s1516_s19   ;;  %s1284_s18 = sphi %s1343_s18, %s1515_s18  }
   0x5   : > { %p32_p0 = scmp.ge.s32.totalorder %s31_s25, 3  ;;  %p1007_p1 = scmp.ge.s32.totalorder %s1308_s24, 1 }
   0x6   : > { %p277_p2 = scmp.lt.s32.totalorder %s1308_s24, 49  ;;  %s42_s27 = sadd.s32 1, %s1304_s23 }
   0x7   : > { %s1522_s25 = smov (%p32_p0, %s31_s25), 0  ;;  %s1524_s26 = smov (!%p32_p0, %s38_s26), %s1300_s22 }
   0x8   : > { %p278_p3 = pnand %p1007_p1, %p277_p2  ;;  %p40_p4 = scmp.ge.s32.totalorder %s1524_s26, 8 }
   0x9   : > { %s349_s28 = sadd.s32 (!%p278_p3), %s1284_s18, %s1288_s19  ;;  %p350_p6 = scmp.lt.s32.totalorder (!%p278_p3), %s1292_s20, 1 }
   0xa   : > { %s1526_s26 = smov (%p40_p4, %s1524_s26), 0  ;;  %s1528_s27 = smov (!%p40_p4, %s42_s27), %s1304_s23 }
   0xb   : > { %p44_p5 = scmp.ge.s32.totalorder %s1528_s27, 2  ;;  %281 = sbr.rel (%p278_p3) target bundleno = 320 (0x140), region = 36 }
   0xc   : > { %p352_p7 = scmp.lt.s32.totalorder (!%p278_p3), %s349_s28, 9  ;;  %p360_p8 = scmp.lt.s32.totalorder (!%p278_p3), %s1284_s18, 2 }
   0xd   : > { %s1530_s27 = smov (%p44_p5, %s1528_s27), 0  ;;  %p373_p9 = scmp.lt.s32.totalorder (!%p278_p3), %s1288_s19, 7 }
   0xe   : > { %1513 = sst [smem:[#allocation3_spill]] %s1530_s27  ;;  %p1017_p10 = scmp.ne.s32.totalorder (!%p278_p3), %s1284_s18, 0 }
  0x10   : > { %s1532_s20 = smov (!%p350_p6, %s1292_s20), 1  ;;  %s1534_s28 = smov (!%p352_p7, %s349_s28), 9 }
  0x11   : > { %s1167_s29 = smul.u32 20, %s1532_s20  ;;  %s1008_s30 = sshll.u32 %s1534_s28, 1 }
  0x12   : > { %s1011_s11 = sshll.u32 %s1532_s20, 3  ;;  %s1536_s19 = smov (!%p373_p9, %s1288_s19), 7 }
  0x13   : > { %s356_s6 = sadd.s32 %s1167_s29, %s1008_s30  ;;  %s379_s14 = sadd.s32 %s1011_s11, %s1536_s19 }
  0x14   : > { %s1009_s7 = sshll.u32 %s356_s6, 2  ;;  %s1012_s28 = sshll.u32 %s379_s14, 2 }
  0x15   : > { %s1396_s10 = scalar_lea.vmem %s1507_s0, %s1009_s7  ;;  %s1408_s30 = scalar_lea.vmem %s1510_s3, %s1012_s28 }
  0x16   : > { %s361_s12 = scalar_select %p360_p8, %s1284_s18, 2 }
  0x17   : > { %s1413_s7 = scalar_lea.vmem %s1511_s4, %s1012_s28  ;;  %s1016_s20 = sshll.u32 %s379_s14, 1 }
  0x18   : > { %s1168_s13 = smul.u32 192, %s361_s12  ;;  %s1418_s19 = scalar_lea.vmem %s1512_s5, %s1016_s20 }
  0x19   : > { %408 = sbr.rel (%p1017_p10) target bundleno = 32 (0x20), region = 40 }
  0x1a   : > { %s1403_s17 = scalar_lea.vmem %s1508_s1, %s1168_s13 }
  0x1e   : > { %v1310_v0 = vmov 0.0  }
  0x1f   : > { %409 = vst [vmem:[#allocation2] sm:$0xff] %v1310_v0 }
  0x20 PF: > { %v1228_v1 = vld [vmem:[%s1403_s17 + $0x38] sm:$0xff]   ;;  %v1311_v2 = vmov 0.0   ;;  %v1230_v4 = vld [vmem:[%s1403_s17 + $0x30] sm:$0xff]   ;;  %vm1312_vm0 = vmmov 0   ;;  %v1232_v6 = vld [vmem:[%s1403_s17 + $0x28] sm:$0xff]   ;;  %p1076_p11 = scmp.ne.s32.totalorder %s1284_s18, 2 }
  0x21   : > { %1107 = vmatprep.subr.bf16.mxu0 %v1311_v2  ;;  %1127 = vmatprep.subr.bf16.mxu1 %v1311_v2  ;;  %v1229_v3 = vld [vmem:[%s1403_s17 + $0x78] sm:$0xff]   ;;  %v1231_v5 = vld [vmem:[%s1403_s17 + $0x70] sm:$0xff]   ;;  %v1233_v7 = vld [vmem:[%s1403_s17 + $0x68] sm:$0xff]  }
  0x22   : > { %1108 = vmatpush3.bf16.msra.mxu0 %v1228_v1  ;;  %1123 = vmatprep.mubr.msk.bf16.mxu0 %vm1312_vm0, %v1311_v2  ;;  %v1234_v8 = vld [vmem:[%s1403_s17 + $0x20] sm:$0xff]   ;;  %v1236_v10 = vld [vmem:[%s1403_s17 + $0x18] sm:$0xff]   ;;  %v1238_v14 = vld [vmem:[%s1403_s17 + $0x10] sm:$0xff]  }
  0x23   : > { %1109 = vmatprep.subr.bf16.mxu0 %v1311_v2  ;;  %1128 = vmatpush3.bf16.msra.mxu1 %v1229_v3  ;;  %v1235_v9 = vld [vmem:[%s1403_s17 + $0x60] sm:$0xff]   ;;  %v1237_v11 = vld [vmem:[%s1403_s17 + $0x58] sm:$0xff]   ;;  %v1239_v16 = vld [vmem:[%s1403_s17 + $0x50] sm:$0xff]  }
  0x24   : > { %1129 = vmatprep.subr.bf16.mxu1 %v1311_v2  ;;  %1143 = vmatprep.mubr.msk.bf16.mxu1 %vm1312_vm0, %v1311_v2  ;;  %v517_v12 = vld [vmem:[%s1396_s10] sm:$0xf]  ;;  %v518_v13 = vld [vmem:[%s1396_s10 + $0x4] sm:$0x1]  ;;  %v1240_v17 = vld [vmem:[%s1403_s17 + $0x8] sm:$0xff]  }
  0x25   : > { %v1042_v15 = vcombine.low %v517_v12, %v518_v13  ;;  %v1241_v19 = vld [vmem:[%s1403_s17 + $0x48] sm:$0xff]   ;;  %v1242_v20 = vld [vmem:[%s1403_s17] sm:$0xff]   ;;  %v1244_v25 = vld [vmem:[%s1403_s17 + $0xb8] sm:$0xff]  }
  0x26   : > { %1110 = vmatpush3.bf16.msra.mxu0 %v1230_v4  ;;  %v1243_v23 = vld [vmem:[%s1403_s17 + $0x40] sm:$0xff]   ;;  %v1246_v27 = vld [vmem:[%s1403_s17 + $0xb0] sm:$0xff]   ;;  %v1247_v28 = vld [vmem:[%s1403_s17 + $0xa8] sm:$0xff]  }
  0x27   : > { %1111 = vmatprep.subr.bf16.mxu0 %v1311_v2  ;;  %1130 = vmatpush3.bf16.msra.mxu1 %v1231_v5  ;;  %v544_v18 = vshll.u32 %v1042_v15, 16  ;;  %v542_v21 = vshrl.u32 %v1042_v15, 16  ;;  %v411_v24 = vld [vmem:[%s1396_s10] sm:$0xf]  ;;  %v1249_v30 = vld [vmem:[%s1403_s17 + $0x98] sm:$0xff]   ;;  %v1250_v31 = vld [vmem:[%s1403_s17 + $0x90] sm:$0xff]  }
  0x28   : > { %1131 = vmatprep.subr.bf16.mxu1 %v1311_v2  ;;  %v1248_v29 = vld [vmem:[%s1403_s17 + $0xa0] sm:$0xff]   ;;  %v1251_v32 = vld [vmem:[%s1403_s17 + $0x88] sm:$0xff]  }
  0x29   : > { %v546_v22 = vrot.slane %v544_v18, 1  ;;  %v638_v33 = vld [vmem:[%s1396_s10] sm:$0xe] }
  0x2a   : > { %1112 = vmatpush3.bf16.msra.mxu0 %v1232_v6  ;;  %v1067_v34 = vcombine.low %v638_v33, %v518_v13  ;;  %v1252_v35 = vld [vmem:[%s1403_s17 + $0x80] sm:$0xff]  }
  0x2b   : > { %1113 = vmatprep.subr.bf16.mxu0 %v1311_v2  ;;  %1132 = vmatpush3.bf16.msra.mxu1 %v1233_v7  ;;  %v547_v26 = vor.u32 %v546_v22, %v542_v21  ;;  %v410_v45 = vld [vmem:[#allocation2] sm:$0xff] }
  0x2c   : > { %1133 = vmatprep.subr.bf16.mxu1 %v1311_v2  ;;  %v659_v36 = vrot.slane %v1067_v34, 1 }
  0x2e   : > { %1114 = vmatpush3.bf16.msra.mxu0 %v1234_v8 }
  0x2f   : > { %1115 = vmatprep.subr.bf16.mxu0 %v1311_v2  ;;  %1134 = vmatpush3.bf16.msra.mxu1 %v1235_v9 }
  0x30   : > { %1135 = vmatprep.subr.bf16.mxu1 %v1311_v2 }
  0x32   : > { %1116 = vmatpush3.bf16.msra.mxu0 %v1236_v10 }
  0x33   : > { %1117 = vmatprep.subr.bf16.mxu0 %v1311_v2  ;;  %1136 = vmatpush3.bf16.msra.mxu1 %v1237_v11 }
  0x34   : > { %1137 = vmatprep.subr.bf16.mxu1 %v1311_v2 }
  0x36   : > { %1118 = vmatpush3.bf16.msra.mxu0 %v1238_v14 }
  0x37   : > { %1119 = vmatprep.subr.bf16.mxu0 %v1311_v2  ;;  %1138 = vmatpush3.bf16.msra.mxu1 %v1239_v16 }
  0x38   : > { %1139 = vmatprep.subr.bf16.mxu1 %v1311_v2 }
  0x3a   : > { %1120 = vmatpush3.bf16.msra.mxu0 %v1240_v17 }
  0x3b   : > { %1121 = vmatprep.subr.bf16.mxu0 %v1311_v2  ;;  %1140 = vmatpush3.bf16.msra.mxu1 %v1241_v19 }
  0x3c   : > { %1141 = vmatprep.subr.bf16.mxu1 %v1311_v2 }
  0x3e   : > { %1122 = vmatpush3.bf16.msra.mxu0 %v1242_v20 }
  0x3f   : > { %1142 = vmatpush3.bf16.msra.mxu1 %v1243_v23  ;;  %1147 = vmatprep.subr.bf16.mxu0 %v1311_v2 }
  0x41   : > { %1124 = vmatmul.mubr.bf16.vlgmr.msra.gmra.mxu0 %v411_v24 }
  0x42   : > { %1148 = vmatpush3.bf16.msra.mxu0 %v1244_v25  ;;  %1144 = vmatmul.mubr.bf16.vlgmr.msra.gmra.mxu1 %v547_v26 }
  0x43   : > { %1149 = vmatprep.subr.bf16.mxu0 %v1311_v2  ;;  %1163 = vmatprep.mubr.msk.bf16.mxu0 %vm1312_vm0, %v1311_v2 }
  0x46   : > { %1150 = vmatpush3.bf16.msra.mxu0 %v1246_v27 }
  0x47   : > { %1151 = vmatprep.subr.bf16.mxu0 %v1311_v2 }
  0x4a   : > { %1152 = vmatpush3.bf16.msra.mxu0 %v1247_v28 }
  0x4b   : > { %1153 = vmatprep.subr.bf16.mxu0 %v1311_v2 }
  0x4e   : > { %1154 = vmatpush3.bf16.msra.mxu0 %v1248_v29 }
  0x4f   : > { %1155 = vmatprep.subr.bf16.mxu0 %v1311_v2 }
  0x52   : > { %1156 = vmatpush3.bf16.msra.mxu0 %v1249_v30 }
  0x53   : > { %1157 = vmatprep.subr.bf16.mxu0 %v1311_v2 }
  0x56   : > { %1158 = vmatpush3.bf16.msra.mxu0 %v1250_v31 }
  0x57   : > { %1159 = vmatprep.subr.bf16.mxu0 %v1311_v2 }
  0x5a   : > { %1160 = vmatpush3.bf16.msra.mxu0 %v1251_v32 }
  0x5b   : > { %1161 = vmatprep.subr.bf16.mxu0 %v1311_v2 }
  0x5e   : > { %1162 = vmatpush3.bf16.msra.mxu0 %v1252_v35 }
  0x61   : > { %1164 = vmatmul.mubr.bf16.vlgmr.msra.gmra.mxu0 %v659_v36 }
 0x101   : > { %v510_v37 = vpop.f32.mrf.mxu0 }
 0x102   : > { %v631_v38 = vpop.f32.mrf.mxu1  ;;  %v516_v46 = vadd.f32 %v510_v37, %v410_v45 }
 0x103   : > { %v1125_v39 = vpop.f32.mrf.mxu0 }
 0x104   : > { %v1145_v40 = vpop.f32.mrf.mxu1  ;;  %v637_v47 = vadd.f32 %v631_v38, %v516_v46 }
 0x105   : > { %v513_v41 = vpop.f32.mrf.mxu0 }
 0x106   : > { %v634_v42 = vpop.f32.mrf.mxu1 }
 0x107   : > { %v1126_v43 = vpop.f32.mrf.mxu0 }
 0x108   : > { %v1146_v44 = vpop.f32.mrf.mxu1 }
 0x121   : > { %v743_v48 = vpop.f32.mrf.mxu0 }
 0x122   : > { %v749_v49 = vadd.f32 %v743_v48, %v637_v47 }
 0x123   : > { %v1165_v50 = vpop.f32.mrf.mxu0  ;;  %754 = sbr.rel (%p1076_p11) target bundleno = 320 (0x140), region = 44 }
 0x124   : > { %750 = vst [vmem:[#allocation2] sm:$0xff] %v749_v49 }
 0x125   : > { %v746_v51 = vpop.f32.mrf.mxu0 }
 0x127   : > { %v1166_v52 = vpop.f32.mrf.mxu0 }
 0x128   : > { %v1077_v54 = vld [vmem:[%s1509_s2] ss:$0 sm:$0xff]  ;;  %vm782_vm1 = vcmask 1040384  }
 0x129   : > { %v764_v55 = vld [vmem:[%s1408_s30] sm:$0xf] }
 0x12a   : > { %v765_v57 = vunpack.c.l.bf16 %v764_v55 }
 0x12b   : > { %v755_v53 = vld [vmem:[#allocation2] sm:$0xff] }
 0x12c   : > { %v763_v56 = vadd.f32 %v1077_v54, %v755_v53 }
 0x12e   : > { %v766_v58 = vadd.f32 %v765_v57, %v763_v56 }
 0x130   : > { %v767_v59 = vpack.c.bf16 %v766_v58, %v766_v58  ;;  %v769_v60 = vrot.slane %v766_v58, 4  ;;  %v775_v61 = vmul.f32 %v766_v58, %v766_v58 }
 0x132   : > { %768 = vst [vmem:[%s1413_s7] sm:$0xf] %v767_v59  ;;  %v770_v62 = vadd.f32 %v769_v60, %v766_v58  ;;  %v776_v63 = vrot.slane %v775_v61, 4 }
 0x134   : > { %v771_v0 = vrot.slane %v770_v62, 2  ;;  %v777_v1 = vadd.f32 %v776_v63, %v775_v61 }
 0x136   : > { %v772_v2 = vadd.f32 %v771_v0, %v770_v62  ;;  %v778_v3 = vrot.slane %v777_v1, 2 }
 0x138   : > { %v773_v4 = vrot.slane %v772_v2, 1  ;;  %v779_v5 = vadd.f32 %v778_v3, %v777_v1 }
 0x13a   : > { %v774_v6 = vadd.f32 %v773_v4, %v772_v2  ;;  %v780_v7 = vrot.slane %v779_v5, 1 }
 0x13c   : > { %v781_v8 = vadd.f32 %v780_v7, %v779_v5 }
 0x13e   : > { %v783_v9 = vsel %vm782_vm1, %v774_v6, %v781_v8 }
 0x13f   : > { %784 = vst [vmem:[%s1418_s19] sm:$0x3] %v783_v9 }
 0x140 PF: > { %s16_s24 = sadd.s32 1, %s1308_s24   ;;  %s1514_s11 = sld [smem:[#allocation3_spill]] }
 0x141   : > { %p13_p12 = scmp.ge.s32.totalorder %s16_s24, 50   ;;  %s1515_s18 = smov %s1296_s21 }
 0x142   : > { %s1516_s19 = smov %s1300_s22  ;;  %s1517_s20 = smov %s1304_s23 }
 0x143   : > { %s1518_s21 = smov %s1522_s25  ;;  %s1519_s22 = smov %s1526_s26 }
 0x144   :  { %15 = sbr.rel (!%p13_p12) target bundleno = 4 (0x4), region = 97 }
 0x146   : > { %s1520_s23 = smov %s1514_s11 }

// kernel: introvae_generator_forward.26
= control target key start
LH: loop header
LB: loop body
LE: loop exit
PB: predicated region body
PF: predicated region fallthrough
CT: control target
= control target key end

     0   :  { %s565_s12 = smov 0   ;;  %s567_s13 = smov 0   ;;  %s622_s0 = inlined_call_operand.vmem [shape: bf16[2,16,16,128], index: 0, kind: input, shape index: {}]   ;;  %s623_s1 = inlined_call_operand.vmem [shape: f32[1,128], index: 1, kind: input, shape index: {}]   ;;  %s624_s2 = inlined_call_operand.vmem [shape: f32[1,128], index: 2, kind: input, shape index: {}]   ;;  %s625_s3 = inlined_call_operand.vmem [shape: bf16[2,16,16,128], index: 3, kind: output, shape index: {}]  }
   0x1   :  { %s569_s14 = smov 0   ;;  %s571_s15 = smov 0  }
   0x2   :  { %s573_s16 = smov 0  }
   0x3 LB: > { %s28_s17 = sadd.s32 1, %s535_s14  ;;  %s32_s18 = sadd.s32 1, %s539_s15  ;;  %s543_s16 = sphi %s573_s16, %s13_s16   ;;  %s539_s15 = sphi %s571_s15, %s629_s15   ;;  %s535_s14 = sphi %s569_s14, %s628_s14   ;;  %s531_s13 = sphi %s567_s13, %s627_s13   ;;  %s527_s12 = sphi %s565_s12, %s626_s12  }
   0x4   : > { %p30_p0 = scmp.ge.s32.totalorder %s28_s17, 16  ;;  %p441_p1 = scmp.ge.s32.totalorder %s543_s16, 1 }
   0x5   : > { %p187_p2 = scmp.lt.s32.totalorder %s543_s16, 33 }
   0x6   : > { %s631_s17 = smov (%p30_p0, %s28_s17), 0  ;;  %s633_s18 = smov (!%p30_p0, %s32_s18), %s539_s15 }
   0x7   : > { %p188_p3 = pnand %p441_p1, %p187_p2  ;;  %p34_p4 = scmp.ge.s32.totalorder %s633_s18, 2 }
   0x8   : > { %p231_p5 = scmp.lt.s32.totalorder (!%p188_p3), %s531_s13, 1  ;;  %p233_p6 = scmp.lt.s32.totalorder (!%p188_p3), %s527_s12, 15 }
   0x9   : > { %s635_s18 = smov (%p34_p4, %s633_s18), 0  ;;  %191 = sbr.rel (%p188_p3) target bundleno = 32 (0x20), region = 32 }
   0xe   : > { %s637_s13 = smov (!%p231_p5, %s531_s13), 1  ;;  %s639_s12 = smov (!%p233_p6, %s527_s12), 15  ;;  %v448_v1 = vld [vmem:[%s623_s1] ss:$0 sm:$0xff] }
   0xf   : > { %s443_s19 = sshll.u32 %s637_s13, 5  ;;  %s442_s20 = sshll.u32 %s639_s12, 1  ;;  %v449_v4 = vld [vmem:[%s624_s2] ss:$0 sm:$0xff] }
  0x10   : > { %s240_s21 = sadd.s32 %s443_s19, %s442_s20 }
  0x11   : > { %s444_s22 = sshll.u32 %s240_s21, 2 }
  0x12   : > { %s242_s25 = scalar_lea.vmem %s622_s0, %s444_s22  ;;  %s260_s5 = scalar_lea.vmem %s625_s3, %s444_s22 }
  0x13   : > { %v457_v0 = vld [vmem:[%s242_s25] sm:$0xff]  }
  0x14   : > { %v458_v2 = vunpack.c.l.bf16 %v457_v0  ;;  %v459_v3 = vunpack.c.h.bf16 %v457_v0 }
  0x16   : > { %v272_v5 = vmul.f32 %v458_v2, %v448_v1  ;;  %v273_v6 = vmul.f32 %v459_v3, %v448_v1 }
  0x18   : > { %v281_v7 = vadd.f32 %v449_v4, %v272_v5  ;;  %v282_v8 = vadd.f32 %v449_v4, %v273_v6 }
  0x1a   : > { %vm283_vm0 = vcmp.ge.f32.partialorder %v281_v7, 0.0  ;;  %vm284_vm1 = vcmp.ge.f32.partialorder %v282_v8, 0.0  ;;  %v285_v9 = vmul.f32 0.2, %v281_v7  ;;  %v286_v10 = vmul.f32 0.2, %v282_v8 }
  0x1c   : > { %v287_v11 = vsel %vm283_vm0, %v281_v7, %v285_v9  ;;  %v288_v12 = vsel %vm284_vm1, %v282_v8, %v286_v10 }
  0x1d   : > { %v463_v13 = vpack.c.bf16 %v288_v12, %v287_v11 }
  0x1f   : > { %464 = vst [vmem:[%s260_s5] sm:$0xff] %v463_v13  }
  0x20 PF: > { %s13_s16 = sadd.s32 1, %s543_s16   ;;  %s626_s12 = smov %s535_s14 }
  0x21   : > { %p10_p7 = scmp.ge.s32.totalorder %s13_s16, 34   ;;  %s627_s13 = smov %s539_s15 }
  0x22   : > { %s628_s14 = smov %s631_s17  ;;  %s629_s15 = smov %s635_s18 }
  0x23   :  { %12 = sbr.rel (!%p10_p7) target bundleno = 3 (0x3), region = 68 }

// kernel: introvae_generator_forward.25
= control target key start
LH: loop header
LB: loop body
LE: loop exit
PB: predicated region body
PF: predicated region fallthrough
CT: control target
= control target key end

     0   :  { %s1307_s15 = smov 0   ;;  %s1309_s16 = smov 0   ;;  %s1466_s0 = inlined_call_operand.vmem [shape: bf16[2,18,18,128], index: 0, kind: input, shape index: {}]   ;;  %s1467_s1 = inlined_call_operand.vmem [shape: bf16[3,3,128,128], index: 1, kind: input, shape index: {}]   ;;  %s1468_s2 = inlined_call_operand.vmem [shape: f32[1,128], index: 2, kind: input, shape index: {}]   ;;  %s1469_s3 = inlined_call_operand.vmem [shape: bf16[2,16,16,128], index: 3, kind: output, shape index: {0}]   ;;  %s1470_s4 = inlined_call_operand.vmem [shape: f32[2,16,2,128], index: 4, kind: output, shape index: {1}]  }
   0x1   :  { %s1311_s17 = smov 0   ;;  %s1313_s18 = smov 0  }
   0x2   :  { %s1315_s19 = smov 0   ;;  %s1317_s20 = smov 0  }
   0x3   :  { %s1319_s21 = smov 0  }
   0x4 LB: > { %s30_s22 = sadd.s32 1, %s1265_s18  ;;  %s37_s23 = sadd.s32 1, %s1269_s19  ;;  %s1277_s21 = sphi %s1319_s21, %s15_s21   ;;  %s1273_s20 = sphi %s1317_s20, %s1480_s20   ;;  %s1269_s19 = sphi %s1315_s19, %s1479_s19   ;;  %s1265_s18 = sphi %s1313_s18, %s1478_s18   ;;  %s1261_s17 = sphi %s1311_s17, %s1477_s17   ;;  %s1257_s16 = sphi %s1309_s16, %s1476_s16   ;;  %s1253_s15 = sphi %s1307_s15, %s1475_s15  }
   0x5   : > { %p31_p0 = scmp.ge.s32.totalorder %s30_s22, 3  ;;  %p964_p1 = scmp.ge.s32.totalorder %s1277_s21, 1 }
   0x6   : > { %p232_p2 = scmp.lt.s32.totalorder %s1277_s21, 97  ;;  %s41_s24 = sadd.s32 1, %s1273_s20 }
   0x7   : > { %s1482_s22 = smov (%p31_p0, %s30_s22), 0  ;;  %s1484_s23 = smov (!%p31_p0, %s37_s23), %s1269_s19 }
   0x8   : > { %p233_p3 = pnand %p964_p1, %p232_p2  ;;  %p39_p4 = scmp.ge.s32.totalorder %s1484_s23, 16 }
   0x9   : > { %s292_s25 = sadd.s32 (!%p233_p3), %s1253_s15, %s1257_s16  ;;  %p293_p6 = scmp.lt.s32.totalorder (!%p233_p3), %s1261_s17, 1 }
   0xa   : > { %s1486_s23 = smov (%p39_p4, %s1484_s23), 0  ;;  %s1488_s24 = smov (!%p39_p4, %s41_s24), %s1273_s20 }
   0xb   : > { %1471 = sst [smem:[#allocation3_spill]] %s1486_s23  ;;  %p43_p5 = scmp.ge.s32.totalorder %s1488_s24, 2 }
   0xc   : > { %236 = sbr.rel (%p233_p3) target bundleno = 326 (0x146), region = 32  ;;  %p295_p7 = scmp.lt.s32.totalorder (!%p233_p3), %s292_s25, 17 }
   0xd   : > { %s1490_s24 = smov (%p43_p5, %s1488_s24), 0  ;;  %p303_p8 = scmp.lt.s32.totalorder (!%p233_p3), %s1253_s15, 2 }
   0xe   : > { %1472 = sst [smem:[#allocation4_spill]] %s1490_s24  ;;  %p316_p9 = scmp.lt.s32.totalorder (!%p233_p3), %s1257_s16, 15 }
   0xf   : > { %p972_p10 = scmp.ne.s32.totalorder (!%p233_p3), %s1253_s15, 0 }
  0x11   : > { %s1492_s17 = smov (!%p293_p6, %s1261_s17), 1  ;;  %s1494_s25 = smov (!%p295_p7, %s292_s25), 17 }
  0x12   : > { %s1134_s26 = smul.u32 54, %s1492_s17  ;;  %s968_s9 = sshll.u32 %s1492_s17, 5 }
  0x13   : > { %s1133_s27 = smul.u32 3, %s1494_s25  ;;  %s970_s13 = sshll.u32 %s1492_s17, 4 }
  0x14   : > { %s304_s28 = scalar_select %p303_p8, %s1253_s15, 2 }
  0x15   : > { %s299_s29 = sadd.s32 %s1134_s26, %s1133_s27  ;;  %s1496_s16 = smov (!%p316_p9, %s1257_s16), 15 }
  0x16   : > { %s965_s30 = sshll.u32 %s299_s29, 2  ;;  %s1135_s5 = smul.u32 192, %s304_s28 }
  0x17   : > { %s1361_s8 = scalar_lea.vmem %s1466_s0, %s965_s30  ;;  %s967_s14 = sshll.u32 %s1496_s16, 1 }
  0x18   : > { %s1366_s12 = scalar_lea.vmem %s1467_s1, %s1135_s5  ;;  %s334_s25 = sadd.s32 %s970_s13, %s1496_s16 }
  0x19   : > { %s323_s24 = sadd.s32 %s968_s9, %s967_s14  ;;  %s971_s26 = sshll.u32 %s334_s25, 1 }
  0x1a   : > { %s969_s27 = sshll.u32 %s323_s24, 2  ;;  %s1372_s23 = scalar_lea.vmem %s1470_s4, %s971_s26 }
  0x1b   : > { %s1377_s7 = scalar_lea.vmem %s1469_s3, %s969_s27  ;;  %341 = sbr.rel (%p972_p10) target bundleno = 34 (0x22), region = 36 }
  0x20   : > { %v1279_v0 = vmov 0.0  }
  0x21   : > { %342 = vst [vmem:[#allocation2] sm:$0xff] %v1279_v0  ;;  %343 = vst [vmem:[#allocation2 + $0x8] sm:$0xff] %v1279_v0 }
  0x22 PF: > { %v1195_v1 = vld [vmem:[%s1366_s12 + $0x38] sm:$0xff]   ;;  %v1280_v2 = vmov 0.0   ;;  %v1197_v4 = vld [vmem:[%s1366_s12 + $0x30] sm:$0xff]   ;;  %vm1281_vm0 = vmmov 0   ;;  %v1199_v6 = vld [vmem:[%s1366_s12 + $0x28] sm:$0xff]   ;;  %vm615_vm2 = vcmask 1046528  }
  0x23   : > { %1073 = vmatprep.subr.bf16.mxu0 %v1280_v2  ;;  %1093 = vmatprep.subr.bf16.mxu1 %v1280_v2  ;;  %v1196_v3 = vld [vmem:[%s1366_s12 + $0x78] sm:$0xff]   ;;  %v1198_v5 = vld [vmem:[%s1366_s12 + $0x70] sm:$0xff]   ;;  %v1200_v7 = vld [vmem:[%s1366_s12 + $0x68] sm:$0xff]   ;;  %vm489_vm1 = vsmask.f32 7424  ;;  %p1033_p11 = scmp.ne.s32.totalorder %s1253_s15, 2 }
  0x24   : > { %1074 = vmatpush3.bf16.msra.mxu0 %v1195_v1  ;;  %1089 = vmatprep.mubr.msk.bf16.mxu0 %vm1281_vm0, %v1280_v2  ;;  %v1201_v8 = vld [vmem:[%s1366_s12 + $0x20] sm:$0xff]   ;;  %v1203_v10 = vld [vmem:[%s1366_s12 + $0x18] sm:$0xff]   ;;  %v1205_v12 = vld [vmem:[%s1366_s12 + $0x10] sm:$0xff]  }
  0x25   : > { %1094 = vmatpush3.bf16.msra.mxu1 %v1196_v3  ;;  %1075 = vmatprep.subr.bf16.mxu0 %v1280_v2  ;;  %v1202_v9 = vld [vmem:[%s1366_s12 + $0x60] sm:$0xff]   ;;  %v1204_v11 = vld [vmem:[%s1366_s12 + $0x58] sm:$0xff]   ;;  %v1206_v15 = vld [vmem:[%s1366_s12 + $0x50] sm:$0xff]  }
  0x26   : > { %1095 = vmatprep.subr.bf16.mxu1 %v1280_v2  ;;  %1109 = vmatprep.mubr.msk.bf16.mxu1 %vm1281_vm0, %v1280_v2  ;;  %v461_v13 = vld [vmem:[%s1361_s8] sm:$0xf]  ;;  %v462_v14 = vld [vmem:[%s1361_s8 + $0x4] sm:$0xf]  ;;  %v1207_v18 = vld [vmem:[%s1366_s12 + $0x8] sm:$0xff]  }
  0x27   : > { %v998_v16 = vcombine.low %v461_v13, %v462_v14  ;;  %v1214_v17 = vld [vmem:[%s1361_s8 + $0x8] ss:$0 sps:$4 sm:$0x11]   ;;  %v1209_v24 = vld [vmem:[%s1366_s12] sm:$0xff]   ;;  %v1212_v29 = vld [vmem:[%s1366_s12 + $0xb8] sm:$0xff]  }
  0x28   : > { %1076 = vmatpush3.bf16.msra.mxu0 %v1197_v4  ;;  %v1208_v20 = vld [vmem:[%s1366_s12 + $0x48] sm:$0xff]   ;;  %v498_v23 = vshll.u32 %v1214_v17, 16  ;;  %v1210_v25 = vld [vmem:[%s1366_s12 + $0x40] sm:$0xff]   ;;  %v1215_v31 = vld [vmem:[%s1366_s12 + $0xb0] sm:$0xff]   ;;  %v617_v41 = vrot.slane %v1214_v17, 1 }
  0x29   : > { %1096 = vmatpush3.bf16.msra.mxu1 %v1198_v5  ;;  %1077 = vmatprep.subr.bf16.mxu0 %v1280_v2  ;;  %v493_v19 = vshll.u32 %v998_v16, 16  ;;  %v491_v21 = vshrl.u32 %v998_v16, 16  ;;  %v1211_v28 = vld [vmem:[%s1361_s8] sm:$0xff]   ;;  %v1216_v32 = vld [vmem:[%s1366_s12 + $0xa8] sm:$0xff]   ;;  %v1218_v34 = vld [vmem:[%s1366_s12 + $0x98] sm:$0xff]  }
  0x2a   : > { %1097 = vmatprep.subr.bf16.mxu1 %v1280_v2  ;;  %v500_v27 = vrot.slane %v498_v23, 1  ;;  %v1217_v33 = vld [vmem:[%s1366_s12 + $0xa0] sm:$0xff]   ;;  %v1219_v35 = vld [vmem:[%s1366_s12 + $0x90] sm:$0xff]   ;;  %v1220_v37 = vld [vmem:[%s1366_s12 + $0x88] sm:$0xff]  }
  0x2b   : > { %v495_v22 = vrot.slane %v493_v19, 1  ;;  %v594_v36 = vld [vmem:[%s1361_s8] sm:$0xe]  ;;  %v345_v53 = vld [vmem:[#allocation2 + $0x8] sm:$0xff] }
  0x2c   : > { %1078 = vmatpush3.bf16.msra.mxu0 %v1199_v6  ;;  %v1024_v38 = vcombine.low %v594_v36, %v462_v14  ;;  %v1221_v39 = vld [vmem:[%s1366_s12 + $0x80] sm:$0xff]  }
  0x2d   : > { %1098 = vmatpush3.bf16.msra.mxu1 %v1200_v7  ;;  %1079 = vmatprep.subr.bf16.mxu0 %v1280_v2  ;;  %v496_v26 = vor.u32 %v495_v22, %v491_v21  ;;  %v344_v51 = vld [vmem:[#allocation2] sm:$0xff] }
  0x2e   : > { %1099 = vmatprep.subr.bf16.mxu1 %v1280_v2  ;;  %v616_v40 = vrot.slane %v1024_v38, 1 }
  0x2f   : > { %v501_v30 = vsel %vm489_vm1, %v496_v26, %v500_v27 }
  0x30   : > { %1080 = vmatpush3.bf16.msra.mxu0 %v1201_v8  ;;  %v618_v42 = vsel %vm615_vm2, %v616_v40, %v617_v41 }
  0x31   : > { %1100 = vmatpush3.bf16.msra.mxu1 %v1202_v9  ;;  %1081 = vmatprep.subr.bf16.mxu0 %v1280_v2 }
  0x32   : > { %1101 = vmatprep.subr.bf16.mxu1 %v1280_v2 }
  0x34   : > { %1082 = vmatpush3.bf16.msra.mxu0 %v1203_v10 }
  0x35   : > { %1102 = vmatpush3.bf16.msra.mxu1 %v1204_v11  ;;  %1083 = vmatprep.subr.bf16.mxu0 %v1280_v2 }
  0x36   : > { %1103 = vmatprep.subr.bf16.mxu1 %v1280_v2 }
  0x38   : > { %1084 = vmatpush3.bf16.msra.mxu0 %v1205_v12 }
  0x39   : > { %1104 = vmatpush3.bf16.msra.mxu1 %v1206_v15  ;;  %1085 = vmatprep.subr.bf16.mxu0 %v1280_v2 }
  0x3a   : > { %1105 = vmatprep.subr.bf16.mxu1 %v1280_v2 }
  0x3c   : > { %1086 = vmatpush3.bf16.msra.mxu0 %v1207_v18 }
  0x3d   : > { %1106 = vmatpush3.bf16.msra.mxu1 %v1208_v20  ;;  %1087 = vmatprep.subr.bf16.mxu0 %v1280_v2 }
  0x3e   : > { %1107 = vmatprep.subr.bf16.mxu1 %v1280_v2 }
  0x40   : > { %1088 = vmatpush3.bf16.msra.mxu0 %v1209_v24 }
  0x41   : > { %1108 = vmatpush3.bf16.msra.mxu1 %v1210_v25  ;;  %1113 = vmatprep.subr.bf16.mxu0 %v1280_v2 }
  0x43   : > { %1090 = vmatmul.mubr.bf16.vlgmr.msra.gmra.mxu0 %v1211_v28 }
  0x44   : > { %1114 = vmatpush3.bf16.msra.mxu0 %v1212_v29  ;;  %1110 = vmatmul.mubr.bf16.vlgmr.msra.gmra.mxu1 %v501_v30 }
  0x45   : > { %1115 = vmatprep.subr.bf16.mxu0 %v1280_v2  ;;  %1129 = vmatprep.mubr.msk.bf16.mxu0 %vm1281_vm0, %v1280_v2 }
  0x48   : > { %1116 = vmatpush3.bf16.msra.mxu0 %v1215_v31 }
  0x49   : > { %1117 = vmatprep.subr.bf16.mxu0 %v1280_v2 }
  0x4c   : > { %1118 = vmatpush3.bf16.msra.mxu0 %v1216_v32 }
  0x4d   : > { %1119 = vmatprep.subr.bf16.mxu0 %v1280_v2 }
  0x50   : > { %1120 = vmatpush3.bf16.msra.mxu0 %v1217_v33 }
  0x51   : > { %1121 = vmatprep.subr.bf16.mxu0 %v1280_v2 }
  0x54   : > { %1122 = vmatpush3.bf16.msra.mxu0 %v1218_v34 }
  0x55   : > { %1123 = vmatprep.subr.bf16.mxu0 %v1280_v2 }
  0x58   : > { %1124 = vmatpush3.bf16.msra.mxu0 %v1219_v35 }
  0x59   : > { %1125 = vmatprep.subr.bf16.mxu0 %v1280_v2 }
  0x5c   : > { %1126 = vmatpush3.bf16.msra.mxu0 %v1220_v37 }
  0x5d   : > { %1127 = vmatprep.subr.bf16.mxu0 %v1280_v2 }
  0x60   : > { %1128 = vmatpush3.bf16.msra.mxu0 %v1221_v39 }
  0x63   : > { %1130 = vmatmul.mubr.bf16.vlgmr.msra.gmra.mxu0 %v618_v42 }
 0x103   : > { %v452_v43 = vpop.f32.mrf.mxu0 }
 0x104   : > { %v585_v44 = vpop.f32.mrf.mxu1  ;;  %v459_v52 = vadd.f32 %v452_v43, %v344_v51 }
 0x105   : > { %v1091_v45 = vpop.f32.mrf.mxu0 }
 0x106   : > { %v1111_v46 = vpop.f32.mrf.mxu1  ;;  %v592_v54 = vadd.f32 %v585_v44, %v459_v52 }
 0x107   : > { %v455_v47 = vpop.f32.mrf.mxu0 }
 0x108   : > { %v588_v48 = vpop.f32.mrf.mxu1  ;;  %v460_v55 = vadd.f32 %v455_v47, %v345_v53 }
 0x109   : > { %v1092_v49 = vpop.f32.mrf.mxu0 }
 0x10a   : > { %v1112_v50 = vpop.f32.mrf.mxu1  ;;  %v593_v59 = vadd.f32 %v588_v48, %v460_v55 }
 0x123   : > { %v702_v56 = vpop.f32.mrf.mxu0 }
 0x124   : > { %v709_v57 = vadd.f32 %v702_v56, %v592_v54 }
 0x125   : > { %v1131_v58 = vpop.f32.mrf.mxu0 }
 0x126   : > { %711 = vst [vmem:[#allocation2] sm:$0xff] %v709_v57  ;;  %716 = sbr.rel (%p1033_p11) target bundleno = 326 (0x146), region = 40 }
 0x127   : > { %v705_v60 = vpop.f32.mrf.mxu0 }
 0x128   : > { %v710_v61 = vadd.f32 %v705_v60, %v593_v59 }
 0x129   : > { %v1132_v62 = vpop.f32.mrf.mxu0 }
 0x12a   : > { %712 = vst [vmem:[#allocation2 + $0x8] sm:$0xff] %v710_v61 }
 0x12b   : > { %v1034_v1 = vld [vmem:[%s1468_s2] ss:$0 sm:$0xff]  ;;  %vm754_vm3 = vcmask 1040384  }
 0x12d   : > { %v717_v63 = vld [vmem:[#allocation2] sm:$0xff] }
 0x12e   : > { %v726_v2 = vadd.f32 %v1034_v1, %v717_v63 }
 0x130   : > { %v745_v6 = vmul.f32 %v726_v2, %v726_v2 }
 0x131   : > { %v718_v0 = vld [vmem:[#allocation2 + $0x8] sm:$0xff] }
 0x132   : > { %v727_v3 = vadd.f32 %v1034_v1, %v718_v0 }
 0x134   : > { %v1044_v4 = vpack.c.bf16 %v727_v3, %v726_v2  ;;  %v738_v5 = vadd.f32 %v727_v3, %v726_v2  ;;  %v746_v7 = vmul.f32 %v727_v3, %v727_v3 }
 0x136   : > { %1045 = vst [vmem:[%s1377_s7] sm:$0xff] %v1044_v4   ;;  %v739_v8 = vrot.slane %v738_v5, 4  ;;  %v747_v9 = vadd.f32 %v746_v7, %v745_v6 }
 0x138   : > { %v740_v10 = vadd.f32 %v739_v8, %v738_v5  ;;  %v748_v11 = vrot.slane %v747_v9, 4 }
 0x13a   : > { %v741_v12 = vrot.slane %v740_v10, 2  ;;  %v749_v13 = vadd.f32 %v748_v11, %v747_v9 }
 0x13c   : > { %v742_v14 = vadd.f32 %v741_v12, %v740_v10  ;;  %v750_v15 = vrot.slane %v749_v13, 2 }
 0x13e   : > { %v743_v16 = vrot.slane %v742_v14, 1  ;;  %v751_v17 = vadd.f32 %v750_v15, %v749_v13 }
 0x140   : > { %v744_v18 = vadd.f32 %v743_v16, %v742_v14  ;;  %v752_v19 = vrot.slane %v751_v17, 1 }
 0x142   : > { %v753_v20 = vadd.f32 %v752_v19, %v751_v17 }
 0x144   : > { %v755_v21 = vsel %vm754_vm3, %v744_v18, %v753_v20 }
 0x145   : > { %756 = vst [vmem:[%s1372_s23] sm:$0x3] %v755_v21 }
 0x146 PF: > { %s15_s21 = sadd.s32 1, %s1277_s21   ;;  %s1473_s24 = sld [smem:[#allocation3_spill]] }
 0x147   : > { %p12_p12 = scmp.ge.s32.totalorder %s15_s21, 98   ;;  %s1474_s5 = sld [smem:[#allocation4_spill]] }
 0x148   : > { %s1475_s15 = smov %s1265_s18  ;;  %s1476_s16 = smov %s1269_s19 }
 0x149   : > { %s1477_s17 = smov %s1273_s20  ;;  %s1478_s18 = smov %s1482_s22 }
 0x14a   :  { %14 = sbr.rel (!%p12_p12) target bundleno = 4 (0x4), region = 90 }
 0x14c   : > { %s1479_s19 = smov %s1473_s24 }
 0x14d   : > { %s1480_s20 = smov %s1474_s5 }

// kernel: introvae_generator_forward.27
= control target key start
LH: loop header
LB: loop body
LE: loop exit
PB: predicated region body
PF: predicated region fallthrough
CT: control target
= control target key end

     0   :  { %s1421_s18 = smov 0   ;;  %s1423_s19 = smov 0   ;;  %s1586_s0 = inlined_call_operand.vmem [shape: bf16[2,18,18,128], index: 0, kind: input, shape index: {}]   ;;  %s1587_s1 = inlined_call_operand.vmem [shape: bf16[3,3,128,128], index: 1, kind: input, shape index: {}]   ;;  %s1588_s2 = inlined_call_operand.vmem [shape: f32[1,128], index: 2, kind: input, shape index: {}]   ;;  %s1589_s3 = inlined_call_operand.vmem [shape: bf16[2,16,16,128], index: 3, kind: input, shape index: {}]   ;;  %s1590_s4 = inlined_call_operand.vmem [shape: bf16[2,16,16,128], index: 4, kind: output, shape index: {0}]   ;;  %s1591_s5 = inlined_call_operand.vmem [shape: f32[2,16,2,128], index: 5, kind: output, shape index: {1}]  }
   0x1   :  { %s1425_s20 = smov 0   ;;  %s1427_s21 = smov 0  }
   0x2   :  { %s1429_s22 = smov 0   ;;  %s1431_s23 = smov 0  }
   0x3   :  { %s1433_s24 = smov 0  }
   0x4 LB: > { %s31_s25 = sadd.s32 1, %s1374_s21  ;;  %s38_s26 = sadd.s32 1, %s1378_s22  ;;  %s1386_s24 = sphi %s1433_s24, %s16_s24   ;;  %s1382_s23 = sphi %s1431_s23, %s1603_s23   ;;  %s1378_s22 = sphi %s1429_s22, %s1602_s22   ;;  %s1374_s21 = sphi %s1427_s21, %s1601_s21   ;;  %s1370_s20 = sphi %s1425_s20, %s1600_s20   ;;  %s1366_s19 = sphi %s1423_s19, %s1599_s19   ;;  %s1362_s18 = sphi %s1421_s18, %s1598_s18  }
   0x5   : > { %p32_p0 = scmp.ge.s32.totalorder %s31_s25, 3  ;;  %p1066_p1 = scmp.ge.s32.totalorder %s1386_s24, 1 }
   0x6   : > { %p278_p2 = scmp.lt.s32.totalorder %s1386_s24, 97  ;;  %s42_s27 = sadd.s32 1, %s1382_s23 }
   0x7   : > { %s1605_s25 = smov (%p32_p0, %s31_s25), 0  ;;  %s1607_s26 = smov (!%p32_p0, %s38_s26), %s1378_s22 }
   0x8   : > { %1592 = sst [smem:[#allocation3_spill]] %s1605_s25  ;;  %p279_p3 = pnand %p1066_p1, %p278_p2 }
   0x9   : > { %p40_p4 = scmp.ge.s32.totalorder %s1607_s26, 16  ;;  %s352_s28 = sadd.s32 (!%p279_p3), %s1362_s18, %s1366_s19 }
   0xa   : > { %p353_p6 = scmp.lt.s32.totalorder (!%p279_p3), %s1370_s20, 1  ;;  %p355_p7 = scmp.lt.s32.totalorder (!%p279_p3), %s352_s28, 17 }
   0xb   : > { %s1609_s26 = smov (%p40_p4, %s1607_s26), 0  ;;  %s1611_s27 = smov (!%p40_p4, %s42_s27), %s1382_s23 }
   0xc   : > { %1593 = sst [smem:[#allocation4_spill]] %s1609_s26  ;;  %p44_p5 = scmp.ge.s32.totalorder %s1611_s27, 2 }
   0xd   : > { %282 = sbr.rel (%p279_p3) target bundleno = 330 (0x14a), region = 36  ;;  %p363_p8 = scmp.lt.s32.totalorder (!%p279_p3), %s1362_s18, 2 }
   0xe   : > { %s1613_s27 = smov (%p44_p5, %s1611_s27), 0  ;;  %p376_p9 = scmp.lt.s32.totalorder (!%p279_p3), %s1366_s19, 15 }
   0xf   : > { %1594 = sst [smem:[#allocation5_spill]] %s1613_s27  ;;  %p1077_p10 = scmp.ne.s32.totalorder (!%p279_p3), %s1362_s18, 0 }
  0x12   : > { %s1615_s20 = smov (!%p353_p6, %s1370_s20), 1  ;;  %s1617_s28 = smov (!%p355_p7, %s352_s28), 17 }
  0x13   : > { %s1243_s29 = smul.u32 54, %s1615_s20  ;;  %s1070_s13 = sshll.u32 %s1615_s20, 5 }
  0x14   : > { %s1242_s30 = smul.u32 3, %s1617_s28  ;;  %s1075_s17 = sshll.u32 %s1615_s20, 4 }
  0x15   : > { %s364_s6 = scalar_select %p363_p8, %s1362_s18, 2 }
  0x16   : > { %s359_s7 = sadd.s32 %s1243_s29, %s1242_s30  ;;  %s1619_s19 = smov (!%p376_p9, %s1366_s19), 15 }
  0x17   : > { %s1067_s8 = sshll.u32 %s359_s7, 2  ;;  %s1244_s9 = smul.u32 192, %s364_s6 }
  0x18   : > { %s1475_s12 = scalar_lea.vmem %s1586_s0, %s1067_s8  ;;  %s1069_s27 = sshll.u32 %s1619_s19, 1 }
  0x19   : > { %s1480_s16 = scalar_lea.vmem %s1587_s1, %s1244_s9  ;;  %s406_s28 = sadd.s32 %s1075_s17, %s1619_s19 }
  0x1a   : > { %s383_s26 = sadd.s32 %s1070_s13, %s1069_s27  ;;  %s1076_s29 = sshll.u32 %s406_s28, 1 }
  0x1b   : > { %s1071_s30 = sshll.u32 %s383_s26, 2  ;;  %s1486_s25 = scalar_lea.vmem %s1591_s5, %s1076_s29 }
  0x1c   : > { %s1491_s11 = scalar_lea.vmem %s1589_s3, %s1071_s30  ;;  %s1496_s20 = scalar_lea.vmem %s1590_s4, %s1071_s30 }
  0x1d   : > { %413 = sbr.rel (%p1077_p10) target bundleno = 36 (0x24), region = 40 }
  0x22   : > { %v1388_v0 = vmov 0.0  }
  0x23   : > { %414 = vst [vmem:[#allocation2] sm:$0xff] %v1388_v0  ;;  %415 = vst [vmem:[#allocation2 + $0x8] sm:$0xff] %v1388_v0 }
  0x24 PF: > { %v1304_v1 = vld [vmem:[%s1480_s16 + $0x38] sm:$0xff]   ;;  %v1389_v2 = vmov 0.0   ;;  %v1306_v4 = vld [vmem:[%s1480_s16 + $0x30] sm:$0xff]   ;;  %vm1390_vm0 = vmmov 0   ;;  %v1308_v6 = vld [vmem:[%s1480_s16 + $0x28] sm:$0xff]   ;;  %vm687_vm2 = vcmask 1046528  }
  0x25   : > { %1182 = vmatprep.subr.bf16.mxu0 %v1389_v2  ;;  %1202 = vmatprep.subr.bf16.mxu1 %v1389_v2  ;;  %v1305_v3 = vld [vmem:[%s1480_s16 + $0x78] sm:$0xff]   ;;  %v1307_v5 = vld [vmem:[%s1480_s16 + $0x70] sm:$0xff]   ;;  %v1309_v7 = vld [vmem:[%s1480_s16 + $0x68] sm:$0xff]   ;;  %vm561_vm1 = vsmask.f32 7424  ;;  %p1138_p11 = scmp.ne.s32.totalorder %s1362_s18, 2 }
  0x26   : > { %1183 = vmatpush3.bf16.msra.mxu0 %v1304_v1  ;;  %1198 = vmatprep.mubr.msk.bf16.mxu0 %vm1390_vm0, %v1389_v2  ;;  %v1310_v8 = vld [vmem:[%s1480_s16 + $0x20] sm:$0xff]   ;;  %v1312_v10 = vld [vmem:[%s1480_s16 + $0x18] sm:$0xff]   ;;  %v1314_v12 = vld [vmem:[%s1480_s16 + $0x10] sm:$0xff]  }
  0x27   : > { %1203 = vmatpush3.bf16.msra.mxu1 %v1305_v3  ;;  %1184 = vmatprep.subr.bf16.mxu0 %v1389_v2  ;;  %v1311_v9 = vld [vmem:[%s1480_s16 + $0x60] sm:$0xff]   ;;  %v1313_v11 = vld [vmem:[%s1480_s16 + $0x58] sm:$0xff]   ;;  %v1315_v15 = vld [vmem:[%s1480_s16 + $0x50] sm:$0xff]  }
  0x28   : > { %1204 = vmatprep.subr.bf16.mxu1 %v1389_v2  ;;  %1218 = vmatprep.mubr.msk.bf16.mxu1 %vm1390_vm0, %v1389_v2  ;;  %v533_v13 = vld [vmem:[%s1475_s12] sm:$0xf]  ;;  %v534_v14 = vld [vmem:[%s1475_s12 + $0x4] sm:$0xf]  ;;  %v1316_v18 = vld [vmem:[%s1480_s16 + $0x8] sm:$0xff]  }
  0x29   : > { %v1103_v16 = vcombine.low %v533_v13, %v534_v14  ;;  %v1323_v17 = vld [vmem:[%s1475_s12 + $0x8] ss:$0 sps:$4 sm:$0x11]   ;;  %v1318_v24 = vld [vmem:[%s1480_s16] sm:$0xff]   ;;  %v1321_v29 = vld [vmem:[%s1480_s16 + $0xb8] sm:$0xff]  }
  0x2a   : > { %1185 = vmatpush3.bf16.msra.mxu0 %v1306_v4  ;;  %v1317_v20 = vld [vmem:[%s1480_s16 + $0x48] sm:$0xff]   ;;  %v570_v23 = vshll.u32 %v1323_v17, 16  ;;  %v1319_v25 = vld [vmem:[%s1480_s16 + $0x40] sm:$0xff]   ;;  %v1324_v31 = vld [vmem:[%s1480_s16 + $0xb0] sm:$0xff]   ;;  %v689_v41 = vrot.slane %v1323_v17, 1 }
  0x2b   : > { %1205 = vmatpush3.bf16.msra.mxu1 %v1307_v5  ;;  %1186 = vmatprep.subr.bf16.mxu0 %v1389_v2  ;;  %v565_v19 = vshll.u32 %v1103_v16, 16  ;;  %v563_v21 = vshrl.u32 %v1103_v16, 16  ;;  %v1320_v28 = vld [vmem:[%s1475_s12] sm:$0xff]   ;;  %v1325_v32 = vld [vmem:[%s1480_s16 + $0xa8] sm:$0xff]   ;;  %v1327_v34 = vld [vmem:[%s1480_s16 + $0x98] sm:$0xff]  }
  0x2c   : > { %1206 = vmatprep.subr.bf16.mxu1 %v1389_v2  ;;  %v572_v27 = vrot.slane %v570_v23, 1  ;;  %v1326_v33 = vld [vmem:[%s1480_s16 + $0xa0] sm:$0xff]   ;;  %v1328_v35 = vld [vmem:[%s1480_s16 + $0x90] sm:$0xff]   ;;  %v1329_v37 = vld [vmem:[%s1480_s16 + $0x88] sm:$0xff]  }
  0x2d   : > { %v567_v22 = vrot.slane %v565_v19, 1  ;;  %v666_v36 = vld [vmem:[%s1475_s12] sm:$0xe]  ;;  %v417_v53 = vld [vmem:[#allocation2 + $0x8] sm:$0xff] }
  0x2e   : > { %1187 = vmatpush3.bf16.msra.mxu0 %v1308_v6  ;;  %v1129_v38 = vcombine.low %v666_v36, %v534_v14  ;;  %v1330_v39 = vld [vmem:[%s1480_s16 + $0x80] sm:$0xff]  }
  0x2f   : > { %1207 = vmatpush3.bf16.msra.mxu1 %v1309_v7  ;;  %1188 = vmatprep.subr.bf16.mxu0 %v1389_v2  ;;  %v568_v26 = vor.u32 %v567_v22, %v563_v21  ;;  %v416_v51 = vld [vmem:[#allocation2] sm:$0xff] }
  0x30   : > { %1208 = vmatprep.subr.bf16.mxu1 %v1389_v2  ;;  %v688_v40 = vrot.slane %v1129_v38, 1 }
  0x31   : > { %v573_v30 = vsel %vm561_vm1, %v568_v26, %v572_v27 }
  0x32   : > { %1189 = vmatpush3.bf16.msra.mxu0 %v1310_v8  ;;  %v690_v42 = vsel %vm687_vm2, %v688_v40, %v689_v41 }
  0x33   : > { %1209 = vmatpush3.bf16.msra.mxu1 %v1311_v9  ;;  %1190 = vmatprep.subr.bf16.mxu0 %v1389_v2 }
  0x34   : > { %1210 = vmatprep.subr.bf16.mxu1 %v1389_v2 }
  0x36   : > { %1191 = vmatpush3.bf16.msra.mxu0 %v1312_v10 }
  0x37   : > { %1211 = vmatpush3.bf16.msra.mxu1 %v1313_v11  ;;  %1192 = vmatprep.subr.bf16.mxu0 %v1389_v2 }
  0x38   : > { %1212 = vmatprep.subr.bf16.mxu1 %v1389_v2 }
  0x3a   : > { %1193 = vmatpush3.bf16.msra.mxu0 %v1314_v12 }
  0x3b   : > { %1213 = vmatpush3.bf16.msra.mxu1 %v1315_v15  ;;  %1194 = vmatprep.subr.bf16.mxu0 %v1389_v2 }
  0x3c   : > { %1214 = vmatprep.subr.bf16.mxu1 %v1389_v2 }
  0x3e   : > { %1195 = vmatpush3.bf16.msra.mxu0 %v1316_v18 }
  0x3f   : > { %1215 = vmatpush3.bf16.msra.mxu1 %v1317_v20  ;;  %1196 = vmatprep.subr.bf16.mxu0 %v1389_v2 }
  0x40   : > { %1216 = vmatprep.subr.bf16.mxu1 %v1389_v2 }
  0x42   : > { %1197 = vmatpush3.bf16.msra.mxu0 %v1318_v24 }
  0x43   : > { %1217 = vmatpush3.bf16.msra.mxu1 %v1319_v25  ;;  %1222 = vmatprep.subr.bf16.mxu0 %v1389_v2 }
  0x45   : > { %1199 = vmatmul.mubr.bf16.vlgmr.msra.gmra.mxu0 %v1320_v28 }
  0x46   : > { %1223 = vmatpush3.bf16.msra.mxu0 %v1321_v29  ;;  %1219 = vmatmul.mubr.bf16.vlgmr.msra.gmra.mxu1 %v573_v30 }
  0x47   : > { %1224 = vmatprep.subr.bf16.mxu0 %v1389_v2  ;;  %1238 = vmatprep.mubr.msk.bf16.mxu0 %vm1390_vm0, %v1389_v2 }
  0x4a   : > { %1225 = vmatpush3.bf16.msra.mxu0 %v1324_v31 }
  0x4b   : > { %1226 = vmatprep.subr.bf16.mxu0 %v1389_v2 }
  0x4e   : > { %1227 = vmatpush3.bf16.msra.mxu0 %v1325_v32 }
  0x4f   : > { %1228 = vmatprep.subr.bf16.mxu0 %v1389_v2 }
  0x52   : > { %1229 = vmatpush3.bf16.msra.mxu0 %v1326_v33 }
  0x53   : > { %1230 = vmatprep.subr.bf16.mxu0 %v1389_v2 }
  0x56   : > { %1231 = vmatpush3.bf16.msra.mxu0 %v1327_v34 }
  0x57   : > { %1232 = vmatprep.subr.bf16.mxu0 %v1389_v2 }
  0x5a   : > { %1233 = vmatpush3.bf16.msra.mxu0 %v1328_v35 }
  0x5b   : > { %1234 = vmatprep.subr.bf16.mxu0 %v1389_v2 }
  0x5e   : > { %1235 = vmatpush3.bf16.msra.mxu0 %v1329_v37 }
  0x5f   : > { %1236 = vmatprep.subr.bf16.mxu0 %v1389_v2 }
  0x62   : > { %1237 = vmatpush3.bf16.msra.mxu0 %v1330_v39 }
  0x65   : > { %1239 = vmatmul.mubr.bf16.vlgmr.msra.gmra.mxu0 %v690_v42 }
 0x105   : > { %v524_v43 = vpop.f32.mrf.mxu0 }
 0x106   : > { %v657_v44 = vpop.f32.mrf.mxu1  ;;  %v531_v52 = vadd.f32 %v524_v43, %v416_v51 }
 0x107   : > { %v1200_v45 = vpop.f32.mrf.mxu0 }
 0x108   : > { %v1220_v46 = vpop.f32.mrf.mxu1  ;;  %v664_v54 = vadd.f32 %v657_v44, %v531_v52 }
 0x109   : > { %v527_v47 = vpop.f32.mrf.mxu0 }
 0x10a   : > { %v660_v48 = vpop.f32.mrf.mxu1  ;;  %v532_v55 = vadd.f32 %v527_v47, %v417_v53 }
 0x10b   : > { %v1201_v49 = vpop.f32.mrf.mxu0 }
 0x10c   : > { %v1221_v50 = vpop.f32.mrf.mxu1  ;;  %v665_v59 = vadd.f32 %v660_v48, %v532_v55 }
 0x125   : > { %v774_v56 = vpop.f32.mrf.mxu0 }
 0x126   : > { %v781_v57 = vadd.f32 %v774_v56, %v664_v54 }
 0x127   : > { %v1240_v58 = vpop.f32.mrf.mxu0 }
 0x128   : > { %783 = vst [vmem:[#allocation2] sm:$0xff] %v781_v57  ;;  %788 = sbr.rel (%p1138_p11) target bundleno = 330 (0x14a), region = 44 }
 0x129   : > { %v777_v60 = vpop.f32.mrf.mxu0 }
 0x12a   : > { %v782_v61 = vadd.f32 %v777_v60, %v665_v59 }
 0x12b   : > { %v1241_v62 = vpop.f32.mrf.mxu0 }
 0x12c   : > { %784 = vst [vmem:[#allocation2 + $0x8] sm:$0xff] %v782_v61 }
 0x12d   : > { %v1139_v1 = vld [vmem:[%s1588_s2] ss:$0 sm:$0xff]  ;;  %vm832_vm3 = vcmask 1040384  }
 0x12e   : > { %v1147_v4 = vld [vmem:[%s1491_s11] sm:$0xff]  }
 0x12f   : > { %v789_v63 = vld [vmem:[#allocation2] sm:$0xff]  ;;  %v1148_v5 = vunpack.c.l.bf16 %v1147_v4  ;;  %v1149_v6 = vunpack.c.h.bf16 %v1147_v4 }
 0x130   : > { %v798_v2 = vadd.f32 %v1139_v1, %v789_v63 }
 0x132   : > { %v804_v7 = vadd.f32 %v1148_v5, %v798_v2 }
 0x133   : > { %v790_v0 = vld [vmem:[#allocation2 + $0x8] sm:$0xff] }
 0x134   : > { %v799_v3 = vadd.f32 %v1139_v1, %v790_v0  ;;  %v823_v11 = vmul.f32 %v804_v7, %v804_v7 }
 0x136   : > { %v805_v8 = vadd.f32 %v1149_v6, %v799_v3 }
 0x138   : > { %v1153_v9 = vpack.c.bf16 %v805_v8, %v804_v7  ;;  %v816_v10 = vadd.f32 %v805_v8, %v804_v7  ;;  %v824_v12 = vmul.f32 %v805_v8, %v805_v8 }
 0x13a   : > { %1154 = vst [vmem:[%s1496_s20] sm:$0xff] %v1153_v9   ;;  %v817_v13 = vrot.slane %v816_v10, 4  ;;  %v825_v14 = vadd.f32 %v824_v12, %v823_v11 }
 0x13c   : > { %v818_v15 = vadd.f32 %v817_v13, %v816_v10  ;;  %v826_v16 = vrot.slane %v825_v14, 4 }
 0x13e   : > { %v819_v17 = vrot.slane %v818_v15, 2  ;;  %v827_v18 = vadd.f32 %v826_v16, %v825_v14 }
 0x140   : > { %v820_v19 = vadd.f32 %v819_v17, %v818_v15  ;;  %v828_v20 = vrot.slane %v827_v18, 2 }
 0x142   : > { %v821_v21 = vrot.slane %v820_v19, 1  ;;  %v829_v22 = vadd.f32 %v828_v20, %v827_v18 }
 0x144   : > { %v822_v23 = vadd.f32 %v821_v21, %v820_v19  ;;  %v830_v24 = vrot.slane %v829_v22, 1 }
 0x146   : > { %v831_v25 = vadd.f32 %v830_v24, %v829_v22 }
 0x148   : > { %v833_v26 = vsel %vm832_vm3, %v822_v23, %v831_v25 }
 0x149   : > { %834 = vst [vmem:[%s1486_s25] sm:$0x3] %v833_v26 }
 0x14a PF: > { %s16_s24 = sadd.s32 1, %s1386_s24   ;;  %s1595_s27 = sld [smem:[#allocation3_spill]] }
 0x14b   : > { %p13_p12 = scmp.ge.s32.totalorder %s16_s24, 98   ;;  %s1596_s12 = sld [smem:[#allocation4_spill]] }
 0x14c   : > { %s1597_s13 = sld [smem:[#allocation5_spill]]  ;;  %s1598_s18 = smov %s1374_s21 }
 0x14d   : > { %s1599_s19 = smov %s1378_s22  ;;  %s1600_s20 = smov %s1382_s23 }
 0x14e   :  { %15 = sbr.rel (!%p13_p12) target bundleno = 4 (0x4), region = 97 }
 0x150   : > { %s1601_s21 = smov %s1595_s27 }
 0x151   : > { %s1602_s22 = smov %s1596_s12 }
 0x152   : > { %s1603_s23 = smov %s1597_s13 }

// kernel: introvae_generator_forward.29
= control target key start
LH: loop header
LB: loop body
LE: loop exit
PB: predicated region body
PF: predicated region fallthrough
CT: control target
= control target key end

     0   :  { %10 = vsyncpa [#allocation4], 0  ;;  %s2026_s0 = inlined_call_operand.vmem [shape: bf16[2,20,20,128], index: 0, kind: input, shape index: {}]   ;;  %s2027_s1 = inlined_call_operand.vmem [shape: bf16[5,5,128,128], index: 1, kind: input, shape index: {}]   ;;  %s2028_s2 = inlined_call_operand.vmem [shape: f32[1,128], index: 2, kind: input, shape index: {}]   ;;  %s2029_s3 = inlined_call_operand.vmem [shape: f32[2,16,16,128], index: 3, kind: output, shape index: {0}]   ;;  %s2030_s4 = inlined_call_operand.hbm [shape: f32[2,16,2,128], index: 4, kind: output, shape index: {1}]  }
   0x1   :  { %12 = vsyncpa [#allocation4 + $0x1], 0  ;;  %s1737_s15 = smov 0   ;;  %s1739_s16 = smov 0  }
   0x2   :  { %s1741_s17 = smov 0   ;;  %s1743_s18 = smov 0  }
   0x3   :  { %s1745_s19 = smov 0   ;;  %s1747_s20 = smov 0  }
   0x4   :  { %s1749_s21 = smov 0   ;;  %s1751_s22 = smov 0  }
   0x5   :  { %s1753_s23 = smov 0   ;;  %s1755_s24 = smov 0  }
   0x6 LB: > { %2040 = sst [smem:[#allocation6_spill]] %s1670_s15  ;;  %s1184_s25 = sadd.s32 4294967295, %s1706_s24   ;;  %s1706_s24 = sphi %s1755_s24, %s18_s24   ;;  %s1702_s23 = sphi %s1753_s23, %s2062_s23   ;;  %s1698_s22 = sphi %s1751_s22, %s2061_s22   ;;  %s1694_s21 = sphi %s1749_s21, %s2060_s21   ;;  %s1690_s20 = sphi %s1747_s20, %s2059_s20   ;;  %s1686_s19 = sphi %s1745_s19, %s2058_s19   ;;  %s1682_s18 = sphi %s1743_s18, %s2065_s18   ;;  %s1678_s17 = sphi %s1741_s17, %s2056_s17   ;;  %s1674_s16 = sphi %s1739_s16, %s2064_s16   ;;  %s1670_s15 = sphi %s1737_s15, %s2063_s15  }
   0x7   : > { %2041 = sst [smem:[#allocation7_spill]] %s1678_s17  ;;  %s1185_s26 = sadd.s32 4294967294, %s1706_s24  }
   0x8   : > { %2042 = sst [smem:[#allocation8_spill]] %s1694_s21  ;;  %s33_s27 = sadd.s32 1, %s1694_s21 }
   0x9   : > { %2043 = sst [smem:[#allocation9_spill]] %s1698_s22  ;;  %p34_p0 = scmp.ge.s32.totalorder %s33_s27, 5 }
   0xa   : > { %2044 = sst [smem:[#allocation10_spill]] %s1702_s23  ;;  %s40_s28 = sadd.s32 1, %s1698_s22 }
   0xb   : > { %s44_s29 = sadd.s32 1, %s1702_s23  ;;  %p179_p1 = scmp.ne.s32.totalorder %s1678_s17, %s1674_s16 }
   0xc   : > { %s2067_s27 = smov (%p34_p0, %s33_s27), 0  ;;  %s2069_s28 = smov (!%p34_p0, %s40_s28), %s1698_s22 }
   0xd   : > { %2045 = sst [smem:[#allocation11_spill]] %s2067_s27  ;;  %p180_p2 = scmp.eq.s32.totalorder %s1184_s25, 159 }
   0xe   : > { %p185_p3 = scmp.ne.s32.totalorder %s1674_s16, %s1670_s15  ;;  %p42_p4 = scmp.ge.s32.totalorder %s2069_s28, 16 }
   0xf   : > { %p186_p5 = scmp.eq.s32.totalorder %s1185_s26, 159  ;;  %p1799_p6 = por %p180_p2, %p179_p1 }
  0x10   : > { %s2071_s28 = smov (%p42_p4, %s2069_s28), 0  ;;  %s2073_s29 = smov (!%p42_p4, %s44_s29), %s1702_s23 }
  0x11   : > { %2047 = sst [smem:[#allocation12_spill]] %s2071_s28  ;;  %p1806_p7 = por %p186_p5, %p185_p3 }
  0x12   : > { %p1189_p8 = scmp.ge.s32.totalorder %s1706_s24, 1  ;;  %p46_p9 = scmp.ge.s32.totalorder %s2073_s29, 2 }
  0x13   : > { %s2048_s5 = scalar_select %p1806_p7, 1, 0 }
  0x14   : > { %p235_p10 = scmp.lt.s32.totalorder %s1706_s24, 161  ;;  %s163_s6 = ssub.s32 %s1698_s22, %s2071_s28 }
  0x15   : > { %2049 = sst [smem:[#allocation13_spill]] %s2048_s5  ;;  %s2075_s29 = smov (%p46_p9, %s2073_s29), 0 }
  0x16   : > { %2050 = sst [smem:[#allocation14_spill]] %s2075_s29  ;;  %p236_p11 = pnand %p1189_p8, %p235_p10 }
  0x17   : > { %s162_s7 = ssub.s32 %s1702_s23, %s2075_s29  ;;  %s169_s9 = sadd.s32 1, %s1678_s17 }
  0x18   : > { %s164_s8 = sor.u32 %s163_s6, %s162_s7  ;;  %s2033_s11 = sand.u32 (!%p236_p11), 1, %s1674_s16  }
  0x19   : > { %p167_p12 = scmp.eq.s32.totalorder %s164_s8, 0  ;;  %239 = sbr.rel (%p236_p11) target bundleno = 396 (0x18c), region = 32 }
  0x1a   : > { %s289_s12 = sadd.s32 (!%p236_p11), %s1682_s18, %s1686_s19  ;;  %s1827_s13 = sshll.u32 (!%p236_p11), %s2033_s11, 1 }
  0x1b   : > { %s1820_s10 = scalar_select %p167_p12, %s1678_s17, %s169_s9  }
  0x1c   : > { %p290_p13 = scmp.lt.s32.totalorder (!%p236_p11), %s1690_s20, 1  ;;  %p292_p0 = scmp.lt.s32.totalorder (!%p236_p11), %s289_s12, 19 }
  0x1d   : > { %2051 = sst [smem:[#allocation15_spill]] %s1820_s10  ;;  %p300_p1 = scmp.lt.s32.totalorder (!%p236_p11), %s1682_s18, 4 }
  0x1e   : > { %s291_s14 = scalar_select %p290_p13, %s1690_s20, 1 }
  0x1f   : > { %s2077_s12 = smov (!%p292_p0, %s289_s12), 19  ;;  %p313_p2 = scmp.lt.s32.totalorder %s1686_s19, 15 }
  0x20   : > { %s1460_s25 = smul.u32 60, %s291_s14  ;;  %s1194_s21 = sshll.u32 %s291_s14, 5 }
  0x21   : > { %s1459_s26 = smul.u32 3, %s2077_s12  ;;  %p1196_p3 = scmp.ne.s32.totalorder %s1682_s18, 0 }
  0x22   : > { %s301_s6 = scalar_select %p300_p1, %s1682_s18, 4 }
  0x23   : > { %s296_s7 = sadd.s32 %s1460_s25, %s1459_s26 }
  0x24   : > { %s1191_s8 = sshll.u32 %s296_s7, 2  ;;  %s1461_s9 = smul.u32 320, %s301_s6 }
  0x25   : > { %s1837_s27 = scalar_lea.vmem %s2026_s0, %s1191_s8  ;;  %s288_s6 = scalar_lea.vmem [#allocation3], %s1827_s13 }
  0x26   : > { %s1842_s22 = scalar_lea.vmem %s2027_s1, %s1461_s9 }
  0x27   : > { %s314_s10 = scalar_select %p313_p2, %s1686_s19, 15 }
  0x28   : > { %327 = sbr.rel (%p1196_p3) target bundleno = 47 (0x2f), region = 36 }
  0x29   : > { %s1193_s17 = sshll.u32 %s314_s10, 1 }
  0x2a   : > { %s320_s5 = sadd.s32 %s1194_s21, %s1193_s17 }
  0x2b   : > { %s1195_s12 = sshll.u32 %s320_s5, 3 }
  0x2c   : > { %s1848_s26 = scalar_lea.vmem %s2029_s3, %s1195_s12 }
  0x2d   : > { %v1708_v0 = vmov 0.0  }
  0x2e   : > { %328 = vst [vmem:[#allocation2] sm:$0xff] %v1708_v0  ;;  %329 = vst [vmem:[#allocation2 + $0x8] sm:$0xff] %v1708_v0 }
  0x2f PF: > { %v1552_v1 = vld [vmem:[%s1842_s22 + $0x38] sm:$0xff]   ;;  %v1709_v2 = vmov 0.0   ;;  %v1554_v4 = vld [vmem:[%s1842_s22 + $0x30] sm:$0xff]   ;;  %vm1710_vm0 = vmmov 0   ;;  %v1556_v6 = vld [vmem:[%s1842_s22 + $0x28] sm:$0xff]   ;;  %vm601_vm2 = vcmask 1046528  }
  0x30   : > { %1359 = vmatprep.subr.bf16.mxu0 %v1709_v2  ;;  %1379 = vmatprep.subr.bf16.mxu1 %v1709_v2  ;;  %v1553_v3 = vld [vmem:[%s1842_s22 + $0x78] sm:$0xff]   ;;  %v1555_v5 = vld [vmem:[%s1842_s22 + $0x70] sm:$0xff]   ;;  %v1557_v7 = vld [vmem:[%s1842_s22 + $0x68] sm:$0xff]   ;;  %vm475_vm1 = vsmask.f32 7424  ;;  %vm849_vm4 = vcmask 1045504  }
  0x31   : > { %1360 = vmatpush3.bf16.msra.mxu0 %v1552_v1  ;;  %1375 = vmatprep.mubr.msk.bf16.mxu0 %vm1710_vm0, %v1709_v2  ;;  %v1558_v8 = vld [vmem:[%s1842_s22 + $0x20] sm:$0xff]   ;;  %v1560_v10 = vld [vmem:[%s1842_s22 + $0x18] sm:$0xff]   ;;  %v1562_v12 = vld [vmem:[%s1842_s22 + $0x10] sm:$0xff]   ;;  %vm718_vm3 = vsmask.f32 6400  ;;  %p1307_p4 = scmp.ne.s32.totalorder %s1682_s18, 4 }
  0x32   : > { %1380 = vmatpush3.bf16.msra.mxu1 %v1553_v3  ;;  %1361 = vmatprep.subr.bf16.mxu0 %v1709_v2  ;;  %v1559_v9 = vld [vmem:[%s1842_s22 + $0x60] sm:$0xff]   ;;  %v1561_v11 = vld [vmem:[%s1842_s22 + $0x58] sm:$0xff]   ;;  %v1563_v15 = vld [vmem:[%s1842_s22 + $0x50] sm:$0xff]  }
  0x33   : > { %1381 = vmatprep.subr.bf16.mxu1 %v1709_v2  ;;  %1395 = vmatprep.mubr.msk.bf16.mxu1 %vm1710_vm0, %v1709_v2  ;;  %v447_v13 = vld [vmem:[%s1837_s27] sm:$0xf]  ;;  %v1879_v14 = vld [vmem:[%s1837_s27 + $0x4] sm:$0xf]  ;;  %v1564_v18 = vld [vmem:[%s1842_s22 + $0x8] sm:$0xff]  }
  0x34   : > { %v1222_v16 = vcombine.low %v447_v13, %v1879_v14  ;;  %v1885_v17 = vld [vmem:[%s1837_s27 + $0x8] ss:$0 sps:$4 sm:$0x11]   ;;  %v1566_v24 = vld [vmem:[%s1842_s22] sm:$0xff]   ;;  %v1569_v29 = vld [vmem:[%s1842_s22 + $0xb8] sm:$0xff]  }
  0x35   : > { %1362 = vmatpush3.bf16.msra.mxu0 %v1554_v4  ;;  %v1565_v20 = vld [vmem:[%s1842_s22 + $0x48] sm:$0xff]   ;;  %v484_v23 = vshll.u32 %v1885_v17, 16  ;;  %v1567_v25 = vld [vmem:[%s1842_s22 + $0x40] sm:$0xff]   ;;  %v1572_v31 = vld [vmem:[%s1842_s22 + $0xf8] sm:$0xff]   ;;  %v603_v57 = vrot.slane %v1885_v17, 1 }
  0x36   : > { %1382 = vmatpush3.bf16.msra.mxu1 %v1555_v5  ;;  %1363 = vmatprep.subr.bf16.mxu0 %v1709_v2  ;;  %v479_v19 = vshll.u32 %v1222_v16, 16  ;;  %v477_v21 = vshrl.u32 %v1222_v16, 16  ;;  %v1568_v28 = vld [vmem:[%s1837_s27] sm:$0xff]   ;;  %v1573_v32 = vld [vmem:[%s1842_s22 + $0xb0] sm:$0xff]   ;;  %v1575_v34 = vld [vmem:[%s1842_s22 + $0xa8] sm:$0xff]  }
  0x37   : > { %1383 = vmatprep.subr.bf16.mxu1 %v1709_v2  ;;  %v486_v27 = vrot.slane %v484_v23, 1  ;;  %v1574_v33 = vld [vmem:[%s1842_s22 + $0xf0] sm:$0xff]   ;;  %v1576_v35 = vld [vmem:[%s1842_s22 + $0xe8] sm:$0xff]   ;;  %v1577_v36 = vld [vmem:[%s1842_s22 + $0xa0] sm:$0xff]  }
  0x38   : > { %v481_v22 = vrot.slane %v479_v19, 1  ;;  %v1578_v37 = vld [vmem:[%s1842_s22 + $0xe0] sm:$0xff]   ;;  %v1579_v39 = vld [vmem:[%s1842_s22 + $0x98] sm:$0xff]   ;;  %v1924_v42 = vld [vmem:[%s1837_s27 + $0x8] ss:$0 sps:$4 sm:$0x33]  }
  0x39   : > { %1364 = vmatpush3.bf16.msra.mxu0 %v1556_v6  ;;  %v580_v38 = vld [vmem:[%s1837_s27] sm:$0xe]  ;;  %v1580_v40 = vld [vmem:[%s1842_s22 + $0xd8] sm:$0xff]   ;;  %v1581_v43 = vld [vmem:[%s1842_s22 + $0x90] sm:$0xff]   ;;  %v728_v47 = vshrl.u32 %v1924_v42, 16  ;;  %v731_v48 = vshll.u32 %v1924_v42, 16 }
  0x3a   : > { %1384 = vmatpush3.bf16.msra.mxu1 %v1557_v7  ;;  %1365 = vmatprep.subr.bf16.mxu0 %v1709_v2  ;;  %v482_v26 = vor.u32 %v481_v22, %v477_v21  ;;  %v1248_v41 = vcombine.low %v580_v38, %v1879_v14  ;;  %v1582_v44 = vld [vmem:[%s1842_s22 + $0xd0] sm:$0xff]   ;;  %v1583_v49 = vld [vmem:[%s1842_s22 + $0x88] sm:$0xff]   ;;  %v1585_v55 = vld [vmem:[%s1842_s22 + $0x80] sm:$0xff]  }
  0x3b   : > { %1385 = vmatprep.subr.bf16.mxu1 %v1709_v2  ;;  %v1584_v50 = vld [vmem:[%s1842_s22 + $0xc8] sm:$0xff]   ;;  %v730_v53 = vrot.slane %v728_v47, 1  ;;  %v733_v54 = vrot.slane %v731_v48, 2  ;;  %v1586_v58 = vld [vmem:[%s1842_s22 + $0xc0] sm:$0xff]   ;;  %v1588_v62 = vld [vmem:[%s1842_s22 + $0x138] sm:$0xff]  }
  0x3c   : > { %v487_v30 = vsel %vm475_vm1, %v482_v26, %v486_v27  ;;  %v720_v45 = vshrl.u32 %v1248_v41, 16  ;;  %v723_v46 = vshll.u32 %v1248_v41, 16  ;;  %v602_v56 = vrot.slane %v1248_v41, 1  ;;  %v1590_v0 = vld [vmem:[%s1842_s22 + $0x130] sm:$0xff]   ;;  %v1591_v1 = vld [vmem:[%s1842_s22 + $0x128] sm:$0xff]   ;;  %v1592_v3 = vld [vmem:[%s1842_s22 + $0x120] sm:$0xff]  }
  0x3d   : > { %1366 = vmatpush3.bf16.msra.mxu0 %v1558_v8  ;;  %v734_v60 = vor.u32 %v733_v54, %v730_v53  ;;  %v1593_v4 = vld [vmem:[%s1842_s22 + $0x118] sm:$0xff]   ;;  %v1594_v5 = vld [vmem:[%s1842_s22 + $0x110] sm:$0xff]   ;;  %v828_v6 = vld [vmem:[%s1837_s27] sm:$0xc] }
  0x3e   : > { %1386 = vmatpush3.bf16.msra.mxu1 %v1559_v9  ;;  %1367 = vmatprep.subr.bf16.mxu0 %v1709_v2  ;;  %v722_v51 = vrot.slane %v720_v45, 1  ;;  %v725_v52 = vrot.slane %v723_v46, 2  ;;  %v604_v61 = vsel %vm601_vm2, %v602_v56, %v603_v57  ;;  %v1595_v7 = vld [vmem:[%s1842_s22 + $0x108] sm:$0xff]   ;;  %v1298_v8 = vcombine.low %v828_v6, %v1879_v14  ;;  %v1596_v9 = vld [vmem:[%s1842_s22 + $0x100] sm:$0xff]  }
  0x3f   : > { %1387 = vmatprep.subr.bf16.mxu1 %v1709_v2 }
  0x40   : > { %v726_v59 = vor.u32 %v725_v52, %v722_v51 }
  0x41   : > { %1368 = vmatpush3.bf16.msra.mxu0 %v1560_v10  ;;  %v850_v10 = vrot.slane %v1298_v8, 2 }
  0x42   : > { %1388 = vmatpush3.bf16.msra.mxu1 %v1561_v11  ;;  %1369 = vmatprep.subr.bf16.mxu0 %v1709_v2  ;;  %v735_v63 = vsel %vm718_vm3, %v726_v59, %v734_v60  ;;  %v851_v11 = vrot.slane %v1924_v42, 2 }
  0x43   : > { %1389 = vmatprep.subr.bf16.mxu1 %v1709_v2 }
  0x45   : > { %1370 = vmatpush3.bf16.msra.mxu0 %v1562_v12  ;;  %v852_v12 = vsel %vm849_vm4, %v850_v10, %v851_v11 }
  0x46   : > { %1390 = vmatpush3.bf16.msra.mxu1 %v1563_v15  ;;  %1371 = vmatprep.subr.bf16.mxu0 %v1709_v2 }
  0x47   : > { %1391 = vmatprep.subr.bf16.mxu1 %v1709_v2 }
  0x49   : > { %1372 = vmatpush3.bf16.msra.mxu0 %v1564_v18 }
  0x4a   : > { %1392 = vmatpush3.bf16.msra.mxu1 %v1565_v20  ;;  %1373 = vmatprep.subr.bf16.mxu0 %v1709_v2 }
  0x4b   : > { %1393 = vmatprep.subr.bf16.mxu1 %v1709_v2 }
  0x4d   : > { %1374 = vmatpush3.bf16.msra.mxu0 %v1566_v24 }
  0x4e   : > { %1394 = vmatpush3.bf16.msra.mxu1 %v1567_v25  ;;  %1399 = vmatprep.subr.bf16.mxu0 %v1709_v2 }
  0x4f   : > { %1419 = vmatprep.subr.bf16.mxu1 %v1709_v2 }
  0x50   : > { %1376 = vmatmul.mubr.bf16.vlgmr.msra.gmra.mxu0 %v1568_v28  ;;  %v330_v28 = vld [vmem:[#allocation2] sm:$0xff] }
  0x51   : > { %1400 = vmatpush3.bf16.msra.mxu0 %v1569_v29  ;;  %1396 = vmatmul.mubr.bf16.vlgmr.msra.gmra.mxu1 %v487_v30  ;;  %v331_v30 = vld [vmem:[#allocation2 + $0x8] sm:$0xff] }
  0x52   : > { %1420 = vmatpush3.bf16.msra.mxu1 %v1572_v31  ;;  %1401 = vmatprep.subr.bf16.mxu0 %v1709_v2 }
  0x53   : > { %1421 = vmatprep.subr.bf16.mxu1 %v1709_v2  ;;  %1415 = vmatprep.mubr.msk.bf16.mxu0 %vm1710_vm0, %v1709_v2 }
  0x54   : > { %1435 = vmatprep.mubr.msk.bf16.mxu1 %vm1710_vm0, %v1709_v2 }
  0x55   : > { %1402 = vmatpush3.bf16.msra.mxu0 %v1573_v32 }
  0x56   : > { %1422 = vmatpush3.bf16.msra.mxu1 %v1574_v33  ;;  %1403 = vmatprep.subr.bf16.mxu0 %v1709_v2 }
  0x57   : > { %1423 = vmatprep.subr.bf16.mxu1 %v1709_v2 }
  0x59   : > { %1404 = vmatpush3.bf16.msra.mxu0 %v1575_v34 }
  0x5a   : > { %1424 = vmatpush3.bf16.msra.mxu1 %v1576_v35  ;;  %1405 = vmatprep.subr.bf16.mxu0 %v1709_v2 }
  0x5b   : > { %1425 = vmatprep.subr.bf16.mxu1 %v1709_v2 }
  0x5d   : > { %1406 = vmatpush3.bf16.msra.mxu0 %v1577_v36 }
  0x5e   : > { %1426 = vmatpush3.bf16.msra.mxu1 %v1578_v37  ;;  %1407 = vmatprep.subr.bf16.mxu0 %v1709_v2 }
  0x5f   : > { %1427 = vmatprep.subr.bf16.mxu1 %v1709_v2 }
  0x61   : > { %1408 = vmatpush3.bf16.msra.mxu0 %v1579_v39 }
  0x62   : > { %1428 = vmatpush3.bf16.msra.mxu1 %v1580_v40  ;;  %1409 = vmatprep.subr.bf16.mxu0 %v1709_v2 }
  0x63   : > { %1429 = vmatprep.subr.bf16.mxu1 %v1709_v2 }
  0x65   : > { %1410 = vmatpush3.bf16.msra.mxu0 %v1581_v43 }
  0x66   : > { %1430 = vmatpush3.bf16.msra.mxu1 %v1582_v44  ;;  %1411 = vmatprep.subr.bf16.mxu0 %v1709_v2 }
  0x67   : > { %1431 = vmatprep.subr.bf16.mxu1 %v1709_v2 }
  0x69   : > { %1412 = vmatpush3.bf16.msra.mxu0 %v1583_v49 }
  0x6a   : > { %1432 = vmatpush3.bf16.msra.mxu1 %v1584_v50  ;;  %1413 = vmatprep.subr.bf16.mxu0 %v1709_v2 }
  0x6b   : > { %1433 = vmatprep.subr.bf16.mxu1 %v1709_v2 }
  0x6d   : > { %1414 = vmatpush3.bf16.msra.mxu0 %v1585_v55 }
  0x6e   : > { %1434 = vmatpush3.bf16.msra.mxu1 %v1586_v58  ;;  %1439 = vmatprep.subr.bf16.mxu0 %v1709_v2 }
  0x70   : > { %1416 = vmatmul.mubr.bf16.vlgmr.msra.gmra.mxu0 %v604_v61 }
  0x71   : > { %1440 = vmatpush3.bf16.msra.mxu0 %v1588_v62  ;;  %1436 = vmatmul.mubr.bf16.vlgmr.msra.gmra.mxu1 %v735_v63 }
  0x72   : > { %1441 = vmatprep.subr.bf16.mxu0 %v1709_v2  ;;  %1455 = vmatprep.mubr.msk.bf16.mxu0 %vm1710_vm0, %v1709_v2 }
  0x75   : > { %1442 = vmatpush3.bf16.msra.mxu0 %v1590_v0 }
  0x76   : > { %1443 = vmatprep.subr.bf16.mxu0 %v1709_v2 }
  0x79   : > { %1444 = vmatpush3.bf16.msra.mxu0 %v1591_v1 }
  0x7a   : > { %1445 = vmatprep.subr.bf16.mxu0 %v1709_v2 }
  0x7d   : > { %1446 = vmatpush3.bf16.msra.mxu0 %v1592_v3 }
  0x7e   : > { %1447 = vmatprep.subr.bf16.mxu0 %v1709_v2 }
  0x81   : > { %1448 = vmatpush3.bf16.msra.mxu0 %v1593_v4 }
  0x82   : > { %1449 = vmatprep.subr.bf16.mxu0 %v1709_v2 }
  0x85   : > { %1450 = vmatpush3.bf16.msra.mxu0 %v1594_v5 }
  0x86   : > { %1451 = vmatprep.subr.bf16.mxu0 %v1709_v2 }
  0x89   : > { %1452 = vmatpush3.bf16.msra.mxu0 %v1595_v7 }
  0x8a   : > { %1453 = vmatprep.subr.bf16.mxu0 %v1709_v2 }
  0x8d   : > { %1454 = vmatpush3.bf16.msra.mxu0 %v1596_v9 }
  0x90   : > { %1456 = vmatmul.mubr.bf16.vlgmr.msra.gmra.mxu0 %v852_v12 }
 0x110   : > { %v438_v13 = vpop.f32.mrf.mxu0 }
 0x111   : > { %v571_v15 = vpop.f32.mrf.mxu1  ;;  %v445_v29 = vadd.f32 %v438_v13, %v330_v28 }
 0x112   : > { %v1377_v16 = vpop.f32.mrf.mxu0 }
 0x113   : > { %v1397_v17 = vpop.f32.mrf.mxu1  ;;  %v578_v31 = vadd.f32 %v571_v15, %v445_v29 }
 0x114   : > { %v441_v18 = vpop.f32.mrf.mxu0 }
 0x115   : > { %v574_v19 = vpop.f32.mrf.mxu1  ;;  %v446_v32 = vadd.f32 %v441_v18, %v331_v30 }
 0x116   : > { %v1378_v14 = vpop.f32.mrf.mxu0 }
 0x117   : > { %v1398_v20 = vpop.f32.mrf.mxu1  ;;  %v579_v34 = vadd.f32 %v574_v19, %v446_v32 }
 0x130   : > { %v688_v21 = vpop.f32.mrf.mxu0 }
 0x131   : > { %v819_v22 = vpop.f32.mrf.mxu1  ;;  %v695_v33 = vadd.f32 %v688_v21, %v578_v31 }
 0x132   : > { %v1417_v23 = vpop.f32.mrf.mxu0 }
 0x133   : > { %v1437_v24 = vpop.f32.mrf.mxu1  ;;  %v826_v35 = vadd.f32 %v819_v22, %v695_v33 }
 0x134   : > { %v691_v25 = vpop.f32.mrf.mxu0 }
 0x135   : > { %v822_v26 = vpop.f32.mrf.mxu1  ;;  %v696_v36 = vadd.f32 %v691_v25, %v579_v34 }
 0x136   : > { %v1418_v27 = vpop.f32.mrf.mxu0 }
 0x137   : > { %v1438_v2 = vpop.f32.mrf.mxu1  ;;  %v827_v40 = vadd.f32 %v822_v26, %v696_v36 }
 0x150   : > { %v936_v37 = vpop.f32.mrf.mxu0 }
 0x151   : > { %v943_v38 = vadd.f32 %v936_v37, %v826_v35 }
 0x152   : > { %v1457_v39 = vpop.f32.mrf.mxu0 }
 0x153   : > { %945 = vst [vmem:[#allocation2] sm:$0xff] %v943_v38  ;;  %950 = sbr.rel (%p1307_p4) target bundleno = 371 (0x173), region = 40 }
 0x154   : > { %v939_v41 = vpop.f32.mrf.mxu0 }
 0x155   : > { %v944_v42 = vadd.f32 %v939_v41, %v827_v40 }
 0x156   : > { %v1458_v43 = vpop.f32.mrf.mxu0 }
 0x157   : > { %946 = vst [vmem:[#allocation2 + $0x8] sm:$0xff] %v944_v42 }
 0x158   : > { %v1308_v45 = vld [vmem:[%s2028_s2] ss:$0 sm:$0xff]  ;;  %vm980_vm5 = vcmask 1040384  }
 0x15a   : > { %v951_v44 = vld [vmem:[#allocation2] sm:$0xff] }
 0x15b   : > { %v960_v47 = vadd.f32 %v1308_v45, %v951_v44 }
 0x15d   : > { %962 = vst [vmem:[%s1848_s26] sm:$0xff] %v960_v47  ;;  %v971_v49 = vmul.f32 %v960_v47, %v960_v47 }
 0x15e   : > { %v952_v46 = vld [vmem:[#allocation2 + $0x8] sm:$0xff] }
 0x15f   : > { %v961_v48 = vadd.f32 %v1308_v45, %v952_v46 }
 0x161   : > { %963 = vst [vmem:[%s1848_s26 + $0x8] sm:$0xff] %v961_v48  ;;  %v964_v50 = vadd.f32 %v961_v48, %v960_v47  ;;  %v972_v51 = vmul.f32 %v961_v48, %v961_v48 }
 0x163   : > { %v965_v52 = vrot.slane %v964_v50, 4  ;;  %v973_v53 = vadd.f32 %v972_v51, %v971_v49 }
 0x165   : > { %v966_v54 = vadd.f32 %v965_v52, %v964_v50  ;;  %v974_v55 = vrot.slane %v973_v53, 4 }
 0x167   : > { %v967_v56 = vrot.slane %v966_v54, 2  ;;  %v975_v57 = vadd.f32 %v974_v55, %v973_v53 }
 0x169   : > { %v968_v58 = vadd.f32 %v967_v56, %v966_v54  ;;  %v976_v59 = vrot.slane %v975_v57, 2 }
 0x16b   : > { %v969_v60 = vrot.slane %v968_v58, 1  ;;  %v977_v61 = vadd.f32 %v976_v59, %v975_v57 }
 0x16d   : > { %v970_v62 = vadd.f32 %v969_v60, %v968_v58  ;;  %v978_v63 = vrot.slane %v977_v61, 1 }
 0x16f   : > { %v979_v0 = vadd.f32 %v978_v63, %v977_v61 }
 0x171   : > { %v981_v1 = vsel %vm980_vm5, %v970_v62, %v979_v0 }
 0x172   : > { %982 = vst [vmem:[%s288_s6] sm:$0x3] %v981_v1 }
 0x173 PF: > { %s1310_s18 = sshll.u32 %s1690_s20, 4  ;;  %s1015_s22 = sshll.u32 %s288_s6, 4  ;;  %s1016_s22 = int_to_ptr.vmem [resolvable:$true] %s1015_s22 }
 0x174   : > { %s1011_s21 = sadd.s32 %s1686_s19, %s1310_s18  ;;  %s2052_s5 = sand.u32 1, %s1674_s16  }
 0x175   : > { %s1311_s23 = sshll.u32 %s1011_s21, 5  ;;  %s996_s10 = scalar_lea.sflag [#allocation4], %s2052_s5 }
 0x176   : > { %s1013_s29 = scalar_lea.hbm %s2030_s4, %s1311_s23  ;;  %s1598_s11 = scalar_lea.vmem %s1016_s22, 32 }
 0x177   : > { %p1599_p5 = scmp.ne.s32.totalorder %s1016_s22, %s1598_s11  ;;  %s1711_s14 = smov [#allocation3]  }
 0x178   : > { %s1602_s7 = sshll.u32 %s1711_s14, 4  ;;  %s1603_s7 = int_to_ptr.vmem [resolvable:$false] %s1602_s7 }
 0x179   : > { %p1600_p8 = pnand %p1599_p5, %p1799_p6  ;;  %s1604_s20 = scalar_lea.vmem %s1603_s7, 64 }
 0x17a   : > { %p1605_p10 = scmp.lt.s32.totalorder %s1016_s22, %s1603_s7  ;;  %p1606_p11 = scmp.lt.s32.totalorder %s1604_s20, %s1598_s11 }
 0x17b   : > { %p1601_p9 = pneg %p1600_p8 }
 0x17c   : > { %p1607_p12 = por %p1606_p11, %p1605_p10 }
 0x17e   : > { %p1608_p13 = pnand %p1607_p12, %p1601_p9 }
 0x180   : > { %1611 = shalt.err (!%p1608_p13)
}
 0x181   : > { %s1612_s19 = scalar_lea.hbm %s1013_s29, 32  ;;  %s1616_s9 = scalar_lea.hbm %s2030_s4, 1024 }
 0x182   : > { %p1613_p0 = scmp.ne.s32.totalorder %s1013_s29, %s1612_s19  ;;  %p1617_p3 = scmp.lt.s32.totalorder %s1013_s29, %s2030_s4 }
 0x183   : > { %p1618_p4 = scmp.lt.s32.totalorder %s1616_s9, %s1612_s19 }
 0x184   : > { %p1614_p1 = pnand %p1613_p0, %p1799_p6 }
 0x185   : > { %p1619_p5 = por %p1618_p4, %p1617_p3 }
 0x186   : > { %p1615_p2 = pneg %p1614_p1 }
 0x188   : > { %p1620_p8 = pnand %p1619_p5, %p1615_p2 }
 0x18a   : > { %1623 = shalt.err (!%p1620_p8)
}
 0x18b   : > { %1462 = dma.vmem_to_hbm [thread:$0]  (%p1799_p6), %s1016_s22, 32, %s1013_s29, %s996_s10  }
 0x18c PF: > { %s2053_s26 = sld [smem:[#allocation6_spill]]  ;;  %p1468_p9 = scmp.ge.s32.totalorder %s1706_s24, 2 }
 0x18e   : > { %p1465_p10 = pnand %p1468_p9, %p1806_p7 }
 0x190   : > { %p1466_p11 = pneg %p1465_p10 }
 0x192   : > { %s1042_s15 = sand.u32 1, %s2053_s26  }
 0x193   : > { %s1043_s17 = scalar_lea.sflag [#allocation4], %s1042_s15 }
 0x194   : > { %1665 = dma.done.wait (%p1466_p11), %s1043_s17, 32  }
 0x195   : > { %1667 = vsyncadd (%p1466_p11), %s1043_s17, 4294967264  ;;  %s18_s24 = sadd.s32 1, %s1706_s24   ;;  %s2055_s18 = sld [smem:[#allocation7_spill]] }
 0x196   : > { %p15_p12 = scmp.ge.s32.totalorder %s18_s24, 162   ;;  %s2056_s17 = sld [smem:[#allocation15_spill]] }
 0x197   : > { %s2057_s30 = sld [smem:[#allocation8_spill]]  ;;  %s2063_s15 = smov %s1674_s16 }
 0x198   : > { %s2058_s19 = sld [smem:[#allocation9_spill]] }
 0x199   : > { %s2059_s20 = sld [smem:[#allocation10_spill]]  ;;  %17 = sbr.rel (!%p15_p12) target bundleno = 6 (0x6), region = 97 }
 0x19a   : > { %s2060_s21 = sld [smem:[#allocation11_spill]] }
 0x19b   : > { %s2061_s22 = sld [smem:[#allocation12_spill]]  ;;  %s2064_s16 = smov %s2055_s18 }
 0x19c   : > { %s2062_s23 = sld [smem:[#allocation14_spill]] }
 0x19d   : > { %s2065_s18 = smov %s2057_s30 }
 0x19e   :  { %1048 = vsyncpa [#allocation4], 1 }
 0x19f   :  { %1050 = vsyncpa [#allocation4 + $0x1], 1 }

</bundles_post_ra>
